<compile_context>
chip_gen: v7x
topology: tpu7x:2x2x1
jax: 0.10.0
libtpu: 0.0.40
codegen_flags: <defaults>
</compile_context>

<pallas_src>
import functools

import jax
import jax.numpy as jnp
from jax.experimental import pallas as pl
from jax.experimental.pallas import tpu as pltpu

NEG_SLOPE = 0.2          # LeakyReLU negative slope (module default)
MASK_VAL = -1e30         # finite "exclude from max" value for masked logits
TILE_N = 512             # node tile for the projection kernel (HBM-bound -> big tiles)
TILE_DST = 256           # dst tile (parallel axis; keep N/TILE_DST >= 2 for v7x's 2 TCs)
TILE_SRC = 256           # src tile (reduction axis)


def _proj_kernel(h_ref, w_ref, wres_ref, bres_ref, alr_ref,
                 emb_ref, res_ref, hlr_ref, *, num_heads):
    """Per node tile: emb_hm[h] = nan_scrub(h @ W_h) (bf16, head-major),
    res = h @ W_res + b, hlr = [hl || hr] via the fused (H, F_out, 2H) operand."""
    # TODO(synk): feat_drop (p=0.0) is identity in eval mode and not applied.
    hb = h_ref[...].astype(jnp.bfloat16)
    res_ref[...] = (jnp.dot(hb, wres_ref[...], preferred_element_type=jnp.float32)
                    + bres_ref[...])
    hlr = jnp.zeros(hlr_ref.shape, jnp.float32)
    for hh in range(num_heads):
        emb_h = jnp.dot(hb, w_ref[hh], preferred_element_type=jnp.float32)
        emb_h = jnp.where(jnp.isnan(emb_h), 0.0, emb_h)       # emb[isnan] = 0
        emb_b = emb_h.astype(jnp.bfloat16)
        emb_ref[hh] = emb_b
        # block-diagonal a_l/a_r: head hh only feeds columns hh and H+hh
        hlr = hlr + jnp.dot(emb_b, alr_ref[hh], preferred_element_type=jnp.float32)
    hlr_ref[...] = hlr


def _attn_kernel(hr_ref, res_ref, hlte_ref, emb_ref, et_ref,
                 out_ref,
                 m_ref, l_ref, acc_ref,
                 *, num_heads, num_etype):
    """Streaming (online-softmax) edge attention + per-head aggregation over src tiles."""
    j = pl.program_id(1)

    @pl.when(j == 0)
    def _init():
        m_ref[...] = jnp.full(m_ref.shape, MASK_VAL, m_ref.dtype)
        l_ref[...] = jnp.zeros(l_ref.shape, l_ref.dtype)
        acc_ref[...] = jnp.zeros(acc_ref.shape, acc_ref.dtype)

    # ---- hoisted per-tile edge-type masks (shared by all heads) ----
    et = et_ref[...].astype(jnp.int32)                        # (Tdst, Tsrc); int8 in HBM
    sel = [(et == t).astype(jnp.float32) for t in range(num_etype)]
    edge_b = et < num_etype                                    # sentinel == num_etype
    edge_f = edge_b.astype(jnp.float32)

    for hh in range(num_heads):
        base = hh * num_etype
        # logit = LeakyReLU(hr[dst] + hl[src] + h_e[type]), rebuilt from the
        # hoisted masks and the per-(head, type) fused row table.
        raw = hr_ref[:, hh:hh + 1]                             # (Tdst, 1)
        for t in range(num_etype):
            raw = raw + sel[t] * hlte_ref[base + t:base + t + 1, :]
        logit = jnp.where(raw > 0, raw, NEG_SLOPE * raw)       # LeakyReLU
        logit = jnp.where(edge_b, logit, MASK_VAL)             # keep non-edges out of the max

        # online softmax over the incoming edges of each dst row
        m_prev = m_ref[:, hh:hh + 1]
        m_new = jnp.maximum(m_prev, jnp.max(logit, axis=-1, keepdims=True))
        corr = jnp.exp(m_prev - m_new)
        p = jnp.exp(logit - m_new) * edge_f                    # exactly 0 on non-edges
        l_ref[:, hh:hh + 1] = (corr * l_ref[:, hh:hh + 1]
                               + jnp.sum(p, axis=-1, keepdims=True))
        # TODO(synk): attn_drop (p=0.5) is identity in eval mode; not applied.
        pv = jnp.dot(p.astype(jnp.bfloat16), emb_ref[hh],
                     preferred_element_type=jnp.float32)       # (Tdst, F_out)
        acc_ref[hh] = corr * acc_ref[hh] + pv
        m_ref[:, hh:hh + 1] = m_new

    @pl.when(j == pl.num_programs(1) - 1)
    def _finalize():
        l = l_ref[...]
        inv = pl.reciprocal(jnp.where(l > 0, l, 1.0), approx=True)
        scale = jnp.where(l > 0, inv, 0.0)                     # (Tdst, H); 0 => no in-edges
        agg = jnp.concatenate(
            [acc_ref[hh] * scale[:, hh:hh + 1] for hh in range(num_heads)], axis=-1)
        h_out = agg + res_ref[...]                             # residual
        out_ref[...] = jnp.where(h_out > 0, h_out,
                                 jnp.exp(jnp.minimum(h_out, 0.0)) - 1.0
                                 ).astype(out_ref.dtype)       # ELU, lane-dense store
    # TODO(synk): beta / g.edata['alpha'] residual-attention blend is skipped
    # (beta=0.0 and no prior alpha, as in the reference defaults).


def simple_hgn_conv(h, W, W_res, b_res, a_l, a_r, h_e_type, etype_map, *,
                    num_heads, out_features, num_etype,
                    tile_n=TILE_N, tile_dst=TILE_DST, tile_src=TILE_SRC):
    N, F_in = h.shape
    HF = num_heads * out_features
    assert N % tile_n == 0 and N % tile_dst == 0 and N % tile_src == 0, \
        "node count must be divisible by the tile sizes"
    assert etype_map.shape == (N, N)
    assert num_etype < 127, "int8 edge-type map needs num_etype (+sentinel) < 128"
    f32, bf16 = jnp.float32, jnp.bfloat16

    # Head-major weights + fused block-diagonal a_l/a_r (parameter-only, done once).
    W_hm = W.reshape(F_in, num_heads, out_features).transpose(1, 0, 2).astype(bf16)
    eye = jnp.eye(num_heads, dtype=f32)
    A_l = a_l[:, :, None] * eye[:, None, :]                    # (H, F_out, H)
    A_r = a_r[:, :, None] * eye[:, None, :]
    A_lr = jnp.concatenate([A_l, A_r], axis=-1).astype(bf16)   # (H, F_out, 2H)

    # int8 edge-type map (sentinel value == num_etype means "no edge")
    et_i8 = etype_map.astype(jnp.int8)

    # ---------------- kernel 1: projections ----------------
    proj = functools.partial(_proj_kernel, num_heads=num_heads)
    emb_hm, res, hlr = pl.pallas_call(
        proj,
        grid=(N // tile_n,),
        in_specs=[
            pl.BlockSpec((tile_n, F_in), lambda i: (i, 0)),
            pl.BlockSpec((num_heads, F_in, out_features), lambda i: (0, 0, 0)),
            pl.BlockSpec((F_in, HF), lambda i: (0, 0)),
            pl.BlockSpec((1, HF), lambda i: (0, 0)),
            pl.BlockSpec((num_heads, out_features, 2 * num_heads), lambda i: (0, 0, 0)),
        ],
        out_specs=[
            pl.BlockSpec((num_heads, tile_n, out_features), lambda i: (0, i, 0)),
            pl.BlockSpec((tile_n, HF), lambda i: (i, 0)),
            pl.BlockSpec((tile_n, 2 * num_heads), lambda i: (i, 0)),
        ],
        out_shape=(jax.ShapeDtypeStruct((num_heads, N, out_features), bf16),
                   jax.ShapeDtypeStruct((N, HF), f32),
                   jax.ShapeDtypeStruct((N, 2 * num_heads), f32)),
        compiler_params=pltpu.CompilerParams(dimension_semantics=("parallel",)),
    )(h, W_hm, W_res.astype(bf16), b_res.astype(f32), A_lr)

    hl = hlr[:, :num_heads]                                    # src-side (a_l)
    hr = hlr[:, num_heads:]                                    # dst-side (a_r)

    # Tiny glue (O(N*H*E)): fold hl and the per-(head, edge-type) h_e scalar
    # into one selectable row table; row (h*E + t) is hl[:, h] + h_e[t, h].
    hlTe = (hl.T[:, None, :] + h_e_type.astype(f32).T[:, :, None]).reshape(
        num_heads * num_etype, N)

    # ---------------- kernel 2: streaming attention ----------------
    attn = functools.partial(_attn_kernel, num_heads=num_heads, num_etype=num_etype)
    out = pl.pallas_call(
        attn,
        grid=(N // tile_dst, N // tile_src),
        in_specs=[
            pl.BlockSpec((tile_dst, num_heads), lambda i, j: (i, 0)),                 # hr
            pl.BlockSpec((tile_dst, HF), lambda i, j: (i, 0)),                        # res
            pl.BlockSpec((num_heads * num_etype, tile_src), lambda i, j: (0, j)),     # hl + h_e rows
            pl.BlockSpec((num_heads, tile_src, out_features), lambda i, j: (0, j, 0)),  # emb, head-major bf16
            pl.BlockSpec((tile_dst, tile_src), lambda i, j: (i, j)),                  # int8 edge-type map
        ],
        out_specs=pl.BlockSpec((tile_dst, HF), lambda i, j: (i, 0)),
        out_shape=jax.ShapeDtypeStruct((N, HF), f32),
        scratch_shapes=[
            pltpu.VMEM((tile_dst, num_heads), f32),                  # running max
            pltpu.VMEM((tile_dst, num_heads), f32),                  # running sum
            pltpu.VMEM((num_heads, tile_dst, out_features), f32),    # head-major accumulator
        ],
        compiler_params=pltpu.CompilerParams(
            dimension_semantics=("parallel", "arbitrary"),
            vmem_limit_bytes=32 * 1024 * 1024),
    )(hr, res, hlTe, emb_hm, et_i8)
    return out


if __name__ == "__main__":
    key = jax.random.PRNGKey(0)
    # small-but-tiled shapes: every "parallel" grid axis gets >= 2 tiles (v7x 2-TC)
    N, F_in, F_out, H = 1024, 64, 32, 4        # H * F_out = 128 -> lane-dense output
    edge_feats, num_etype = 16, 3

    ks = jax.random.split(key, 11)

    def xavier(k, shape, gain=1.414):
        fan_in, fan_out = shape[-2], shape[-1]
        limit = gain * (6.0 / (fan_in + fan_out)) ** 0.5
        return jax.random.uniform(k, shape, jnp.float32, -limit, limit)

    h = jax.random.normal(ks[0], (N, F_in), jnp.float32)
    W = xavier(ks[1], (F_in, F_out * H))
    W_e = xavier(ks[2], (edge_feats, edge_feats * H))
    edge_emb = xavier(ks[3], (num_etype, edge_feats))
    a_l = xavier(ks[4], (1, H, F_out))
    a_r = xavier(ks[5], (1, H, F_out))
    a_e = xavier(ks[6], (1, H, edge_feats))
    W_res = xavier(ks[7], (F_in, F_out * H), gain=1.0)    # nn.Linear weight, pre-transposed
    b_res = jax.random.uniform(ks[8], (1, F_out * H), jnp.float32, -0.1, 0.1)

    # synthetic graph: dense int8 edge-type map, sentinel num_etype == "no edge".
    # TODO(synk): genuinely sparse graphs want a CSR/neighbor-list layout with
    # scalar-prefetched gathers instead of this dense O(N^2) map.
    adj = jax.random.uniform(ks[9], (N, N)) < 0.15
    rand_type = jax.random.randint(ks[10], (N, N), 0, num_etype)
    adj = adj.at[0, :].set(False)                          # dst node 0: no in-edges
    etype_map = jnp.where(adj, rand_type, num_etype).astype(jnp.int8)

    # tiny parameter-only glue: per-(edge type, head) attention contribution
    e = (edge_emb @ W_e).reshape(num_etype, H, edge_feats)
    h_e_type = jnp.sum(a_e * e, axis=-1)                   # (num_etype, H)

    out = simple_hgn_conv(h, W, W_res, b_res, a_l[0], a_r[0], h_e_type, etype_map,
                          num_heads=H, out_features=F_out, num_etype=num_etype)
    out = jax.block_until_ready(out)
    assert out.shape == (N, H * F_out)
    assert bool(jnp.all(jnp.isfinite(out)))

    # pure-JAX dense reference of the eval-mode forward for a sanity check
    def reference():
        emb = h @ W
        emb = jnp.where(jnp.isnan(emb), 0.0, emb)
        emb_h = emb.reshape(N, H, F_out)
        hl = jnp.sum(emb_h * a_l, axis=-1)                 # (N, H)
        hr = jnp.sum(emb_h * a_r, axis=-1)
        tab = jnp.concatenate([h_e_type, jnp.zeros((1, H), jnp.float32)], axis=0)
        he = tab[etype_map.astype(jnp.int32)]              # (Ndst, Nsrc, H)
        logits = hl[None, :, :] + hr[:, None, :] + he
        logits = jnp.where(logits > 0, logits, NEG_SLOPE * logits)
        logits = jnp.where(adj[:, :, None], logits, -jnp.inf)
        m = jnp.max(logits, axis=1, keepdims=True)
        m = jnp.where(jnp.isfinite(m), m, 0.0)
        p = jnp.exp(logits - m) * adj[:, :, None]
        denom = jnp.sum(p, axis=1, keepdims=True)
        alpha = p / jnp.where(denom > 0, denom, 1.0)
        agg = jnp.einsum('dsh,shf->dhf', alpha, emb_h).reshape(N, H * F_out)
        ho = agg + (h @ W_res + b_res)
        return jnp.where(ho > 0, ho, jnp.exp(jnp.minimum(ho, 0.0)) - 1.0)

    ref = reference()
    assert float(jnp.max(jnp.abs(out - ref))) < 0.3        # bf16 MXU + approx-recip tolerance
    print("KERNEL_OK")
</pallas_src>

<mosaic_0001>
module attributes {stable_mosaic.version = 11 : i64} {
  func.func @_proj_kernel(%arg0: i32, %arg1: memref<512x64xf32, #tpu.memory_space<vmem>>, %arg2: memref<4x64x32xbf16, #tpu.memory_space<vmem>>, %arg3: memref<64x128xbf16, #tpu.memory_space<vmem>>, %arg4: memref<1x128xf32, #tpu.memory_space<vmem>>, %arg5: memref<4x32x8xbf16, #tpu.memory_space<vmem>>, %arg6: memref<4x512x32xbf16, #tpu.memory_space<vmem>>, %arg7: memref<512x128xf32, #tpu.memory_space<vmem>>, %arg8: memref<512x8xf32, #tpu.memory_space<vmem>>) attributes {dimension_semantics = [#tpu.dimension_semantics<parallel>], iteration_bounds = array<i64: 2>, scalar_prefetch = 0 : i64, scratch_operands = 0 : i64, tpu.core_type = #tpu.core_type<tc>, window_params = [{transform_indices = @transform_0, window_bounds = array<i64: 512, 64>}, {pipeline_mode = #tpu.pipeline_mode<synchronous>, transform_indices = @transform_1, window_bounds = array<i64: 4, 64, 32>}, {pipeline_mode = #tpu.pipeline_mode<synchronous>, transform_indices = @transform_2, window_bounds = array<i64: 64, 128>}, {pipeline_mode = #tpu.pipeline_mode<synchronous>, transform_indices = @transform_3, window_bounds = array<i64: 1, 128>}, {pipeline_mode = #tpu.pipeline_mode<synchronous>, transform_indices = @transform_4, window_bounds = array<i64: 4, 32, 8>}, {transform_indices = @transform_5, window_bounds = array<i64: 4, 512, 32>}, {transform_indices = @transform_6, window_bounds = array<i64: 512, 128>}, {transform_indices = @transform_7, window_bounds = array<i64: 512, 8>}]} {
    %c0 = arith.constant 0 : index
    %c0_0 = arith.constant 0 : index
    %0 = vector.load %arg1[%c0, %c0_0] : memref<512x64xf32, #tpu.memory_space<vmem>>, vector<512x64xf32>
    %1 = arith.truncf %0 : vector<512x64xf32> to vector<512x64xbf16>
    %c0_1 = arith.constant 0 : index
    %c0_2 = arith.constant 0 : index
    %2 = vector.load %arg3[%c0_1, %c0_2] : memref<64x128xbf16, #tpu.memory_space<vmem>>, vector<64x128xbf16>
    %cst = arith.constant dense<0.000000e+00> : vector<512x128xf32>
    %3 = tpu.matmul %1, %2, %cst {dimension_numbers = #tpu.dot_dimension_numbers<[1], [0], [0], [1], [0, 0, 1, 1], [], []>} : vector<512x64xbf16>, vector<64x128xbf16>, vector<512x128xf32> -> vector<512x128xf32>
    %c0_3 = arith.constant 0 : index
    %c0_4 = arith.constant 0 : index
    %4 = vector.load %arg4[%c0_3, %c0_4] : memref<1x128xf32, #tpu.memory_space<vmem>>, vector<1x128xf32>
    %5 = vector.broadcast %4 : vector<1x128xf32> to vector<512x128xf32>
    %6 = arith.addf %3, %5 : vector<512x128xf32>
    %c0_5 = arith.constant 0 : index
    %c0_6 = arith.constant 0 : index
    %7 = vector.load %arg7[%c0_5, %c0_6] : memref<512x128xf32, #tpu.memory_space<vmem>>, vector<512x128xf32>
    tpu.vector_store %arg7[%c0_5, %c0_6], %6 {strides = array<i32>} : memref<512x128xf32, #tpu.memory_space<vmem>>, vector<512x128xf32>,
    %cst_7 = arith.constant 0.000000e+00 : f32
    %8 = vector.broadcast %cst_7 : f32 to vector<512x8xf32>
    %c0_8 = arith.constant 0 : index
    %c0_9 = arith.constant 0 : index
    %c0_10 = arith.constant 0 : index
    %9 = vector.load %arg2[%c0_8, %c0_9, %c0_10] : memref<4x64x32xbf16, #tpu.memory_space<vmem>>, vector<1x64x32xbf16>
    %10 = vector.shape_cast %9 : vector<1x64x32xbf16> to vector<64x32xbf16>
    %cst_11 = arith.constant dense<0.000000e+00> : vector<512x32xf32>
    %11 = tpu.matmul %1, %10, %cst_11 {dimension_numbers = #tpu.dot_dimension_numbers<[1], [0], [0], [1], [0, 0, 1, 1], [], []>} : vector<512x64xbf16>, vector<64x32xbf16>, vector<512x32xf32> -> vector<512x32xf32>
    %12 = arith.cmpf one, %11, %11 : vector<512x32xf32>
    %cst_12 = arith.constant 0.000000e+00 : f32
    %13 = vector.broadcast %cst_12 : f32 to vector<512x32xf32>
    %14 = arith.select %12, %13, %11 : vector<512x32xi1>, vector<512x32xf32>
    %15 = arith.truncf %14 : vector<512x32xf32> to vector<512x32xbf16>
    %c0_13 = arith.constant 0 : index
    %c0_14 = arith.constant 0 : index
    %c0_15 = arith.constant 0 : index
    %16 = vector.load %arg6[%c0_13, %c0_14, %c0_15] : memref<4x512x32xbf16, #tpu.memory_space<vmem>>, vector<1x512x32xbf16>
    %17 = vector.shape_cast %16 : vector<1x512x32xbf16> to vector<512x32xbf16>
    %18 = vector.shape_cast %15 : vector<512x32xbf16> to vector<1x512x32xbf16>
    tpu.vector_store %arg6[%c0_13, %c0_14, %c0_15], %18 {strides = array<i32>} : memref<4x512x32xbf16, #tpu.memory_space<vmem>>, vector<1x512x32xbf16>,
    %c0_16 = arith.constant 0 : index
    %c0_17 = arith.constant 0 : index
    %c0_18 = arith.constant 0 : index
    %19 = vector.load %arg5[%c0_16, %c0_17, %c0_18] : memref<4x32x8xbf16, #tpu.memory_space<vmem>>, vector<1x32x8xbf16>
    %20 = vector.shape_cast %19 : vector<1x32x8xbf16> to vector<32x8xbf16>
    %cst_19 = arith.constant dense<0.000000e+00> : vector<512x8xf32>
    %21 = tpu.matmul %15, %20, %cst_19 {dimension_numbers = #tpu.dot_dimension_numbers<[1], [0], [0], [1], [0, 0, 1, 1], [], []>} : vector<512x32xbf16>, vector<32x8xbf16>, vector<512x8xf32> -> vector<512x8xf32>
    %22 = arith.addf %8, %21 : vector<512x8xf32>
    %c1 = arith.constant 1 : index
    %c0_20 = arith.constant 0 : index
    %c0_21 = arith.constant 0 : index
    %23 = vector.load %arg2[%c1, %c0_20, %c0_21] : memref<4x64x32xbf16, #tpu.memory_space<vmem>>, vector<1x64x32xbf16>
    %24 = vector.shape_cast %23 : vector<1x64x32xbf16> to vector<64x32xbf16>
    %cst_22 = arith.constant dense<0.000000e+00> : vector<512x32xf32>
    %25 = tpu.matmul %1, %24, %cst_22 {dimension_numbers = #tpu.dot_dimension_numbers<[1], [0], [0], [1], [0, 0, 1, 1], [], []>} : vector<512x64xbf16>, vector<64x32xbf16>, vector<512x32xf32> -> vector<512x32xf32>
    %26 = arith.cmpf one, %25, %25 : vector<512x32xf32>
    %cst_23 = arith.constant 0.000000e+00 : f32
    %27 = vector.broadcast %cst_23 : f32 to vector<512x32xf32>
    %28 = arith.select %26, %27, %25 : vector<512x32xi1>, vector<512x32xf32>
    %29 = arith.truncf %28 : vector<512x32xf32> to vector<512x32xbf16>
    %c1_24 = arith.constant 1 : index
    %c0_25 = arith.constant 0 : index
    %c0_26 = arith.constant 0 : index
    %30 = vector.load %arg6[%c1_24, %c0_25, %c0_26] : memref<4x512x32xbf16, #tpu.memory_space<vmem>>, vector<1x512x32xbf16>
    %31 = vector.shape_cast %30 : vector<1x512x32xbf16> to vector<512x32xbf16>
    %32 = vector.shape_cast %29 : vector<512x32xbf16> to vector<1x512x32xbf16>
    tpu.vector_store %arg6[%c1_24, %c0_25, %c0_26], %32 {strides = array<i32>} : memref<4x512x32xbf16, #tpu.memory_space<vmem>>, vector<1x512x32xbf16>,
    %c1_27 = arith.constant 1 : index
    %c0_28 = arith.constant 0 : index
    %c0_29 = arith.constant 0 : index
    %33 = vector.load %arg5[%c1_27, %c0_28, %c0_29] : memref<4x32x8xbf16, #tpu.memory_space<vmem>>, vector<1x32x8xbf16>
    %34 = vector.shape_cast %33 : vector<1x32x8xbf16> to vector<32x8xbf16>
    %cst_30 = arith.constant dense<0.000000e+00> : vector<512x8xf32>
    %35 = tpu.matmul %29, %34, %cst_30 {dimension_numbers = #tpu.dot_dimension_numbers<[1], [0], [0], [1], [0, 0, 1, 1], [], []>} : vector<512x32xbf16>, vector<32x8xbf16>, vector<512x8xf32> -> vector<512x8xf32>
    %36 = arith.addf %22, %35 : vector<512x8xf32>
    %c2 = arith.constant 2 : index
    %c0_31 = arith.constant 0 : index
    %c0_32 = arith.constant 0 : index
    %37 = vector.load %arg2[%c2, %c0_31, %c0_32] : memref<4x64x32xbf16, #tpu.memory_space<vmem>>, vector<1x64x32xbf16>
    %38 = vector.shape_cast %37 : vector<1x64x32xbf16> to vector<64x32xbf16>
    %cst_33 = arith.constant dense<0.000000e+00> : vector<512x32xf32>
    %39 = tpu.matmul %1, %38, %cst_33 {dimension_numbers = #tpu.dot_dimension_numbers<[1], [0], [0], [1], [0, 0, 1, 1], [], []>} : vector<512x64xbf16>, vector<64x32xbf16>, vector<512x32xf32> -> vector<512x32xf32>
    %40 = arith.cmpf one, %39, %39 : vector<512x32xf32>
    %cst_34 = arith.constant 0.000000e+00 : f32
    %41 = vector.broadcast %cst_34 : f32 to vector<512x32xf32>
    %42 = arith.select %40, %41, %39 : vector<512x32xi1>, vector<512x32xf32>
    %43 = arith.truncf %42 : vector<512x32xf32> to vector<512x32xbf16>
    %c2_35 = arith.constant 2 : index
    %c0_36 = arith.constant 0 : index
    %c0_37 = arith.constant 0 : index
    %44 = vector.load %arg6[%c2_35, %c0_36, %c0_37] : memref<4x512x32xbf16, #tpu.memory_space<vmem>>, vector<1x512x32xbf16>
    %45 = vector.shape_cast %44 : vector<1x512x32xbf16> to vector<512x32xbf16>
    %46 = vector.shape_cast %43 : vector<512x32xbf16> to vector<1x512x32xbf16>
    tpu.vector_store %arg6[%c2_35, %c0_36, %c0_37], %46 {strides = array<i32>} : memref<4x512x32xbf16, #tpu.memory_space<vmem>>, vector<1x512x32xbf16>,
    %c2_38 = arith.constant 2 : index
    %c0_39 = arith.constant 0 : index
    %c0_40 = arith.constant 0 : index
    %47 = vector.load %arg5[%c2_38, %c0_39, %c0_40] : memref<4x32x8xbf16, #tpu.memory_space<vmem>>, vector<1x32x8xbf16>
    %48 = vector.shape_cast %47 : vector<1x32x8xbf16> to vector<32x8xbf16>
    %cst_41 = arith.constant dense<0.000000e+00> : vector<512x8xf32>
    %49 = tpu.matmul %43, %48, %cst_41 {dimension_numbers = #tpu.dot_dimension_numbers<[1], [0], [0], [1], [0, 0, 1, 1], [], []>} : vector<512x32xbf16>, vector<32x8xbf16>, vector<512x8xf32> -> vector<512x8xf32>
    %50 = arith.addf %36, %49 : vector<512x8xf32>
    %c3 = arith.constant 3 : index
    %c0_42 = arith.constant 0 : index
    %c0_43 = arith.constant 0 : index
    %51 = vector.load %arg2[%c3, %c0_42, %c0_43] : memref<4x64x32xbf16, #tpu.memory_space<vmem>>, vector<1x64x32xbf16>
    %52 = vector.shape_cast %51 : vector<1x64x32xbf16> to vector<64x32xbf16>
    %cst_44 = arith.constant dense<0.000000e+00> : vector<512x32xf32>
    %53 = tpu.matmul %1, %52, %cst_44 {dimension_numbers = #tpu.dot_dimension_numbers<[1], [0], [0], [1], [0, 0, 1, 1], [], []>} : vector<512x64xbf16>, vector<64x32xbf16>, vector<512x32xf32> -> vector<512x32xf32>
    %54 = arith.cmpf one, %53, %53 : vector<512x32xf32>
    %cst_45 = arith.constant 0.000000e+00 : f32
    %55 = vector.broadcast %cst_45 : f32 to vector<512x32xf32>
    %56 = arith.select %54, %55, %53 : vector<512x32xi1>, vector<512x32xf32>
    %57 = arith.truncf %56 : vector<512x32xf32> to vector<512x32xbf16>
    %c3_46 = arith.constant 3 : index
    %c0_47 = arith.constant 0 : index
    %c0_48 = arith.constant 0 : index
    %58 = vector.load %arg6[%c3_46, %c0_47, %c0_48] : memref<4x512x32xbf16, #tpu.memory_space<vmem>>, vector<1x512x32xbf16>
    %59 = vector.shape_cast %58 : vector<1x512x32xbf16> to vector<512x32xbf16>
    %60 = vector.shape_cast %57 : vector<512x32xbf16> to vector<1x512x32xbf16>
    tpu.vector_store %arg6[%c3_46, %c0_47, %c0_48], %60 {strides = array<i32>} : memref<4x512x32xbf16, #tpu.memory_space<vmem>>, vector<1x512x32xbf16>,
    %c3_49 = arith.constant 3 : index
    %c0_50 = arith.constant 0 : index
    %c0_51 = arith.constant 0 : index
    %61 = vector.load %arg5[%c3_49, %c0_50, %c0_51] : memref<4x32x8xbf16, #tpu.memory_space<vmem>>, vector<1x32x8xbf16>
    %62 = vector.shape_cast %61 : vector<1x32x8xbf16> to vector<32x8xbf16>
    %cst_52 = arith.constant dense<0.000000e+00> : vector<512x8xf32>
    %63 = tpu.matmul %57, %62, %cst_52 {dimension_numbers = #tpu.dot_dimension_numbers<[1], [0], [0], [1], [0, 0, 1, 1], [], []>} : vector<512x32xbf16>, vector<32x8xbf16>, vector<512x8xf32> -> vector<512x8xf32>
    %64 = arith.addf %50, %63 : vector<512x8xf32>
    %c0_53 = arith.constant 0 : index
    %c0_54 = arith.constant 0 : index
    %65 = vector.load %arg8[%c0_53, %c0_54] : memref<512x8xf32, #tpu.memory_space<vmem>>, vector<512x8xf32>
    tpu.vector_store %arg8[%c0_53, %c0_54], %64 {strides = array<i32>} : memref<512x8xf32, #tpu.memory_space<vmem>>, vector<512x8xf32>,
    return
  }
  func.func @transform_0(%arg0: i32) -> (i32, i32) {
    %c0_i32 = arith.constant 0 : i32
    %c0_i32_0 = arith.constant 0 : i32
    return %arg0, %c0_i32 : i32, i32
  }
  func.func @transform_1(%arg0: i32) -> (i32, i32, i32) {
    %c0_i32 = arith.constant 0 : i32
    %c0_i32_0 = arith.constant 0 : i32
    %c0_i32_1 = arith.constant 0 : i32
    %c0_i32_2 = arith.constant 0 : i32
    return %c0_i32, %c0_i32_0, %c0_i32_1 : i32, i32, i32
  }
  func.func @transform_2(%arg0: i32) -> (i32, i32) {
    %c0_i32 = arith.constant 0 : i32
    %c0_i32_0 = arith.constant 0 : i32
    %c0_i32_1 = arith.constant 0 : i32
    return %c0_i32, %c0_i32_0 : i32, i32
  }
  func.func @transform_3(%arg0: i32) -> (i32, i32) {
    %c0_i32 = arith.constant 0 : i32
    %c0_i32_0 = arith.constant 0 : i32
    %c0_i32_1 = arith.constant 0 : i32
    return %c0_i32, %c0_i32_0 : i32, i32
  }
  func.func @transform_4(%arg0: i32) -> (i32, i32, i32) {
    %c0_i32 = arith.constant 0 : i32
    %c0_i32_0 = arith.constant 0 : i32
    %c0_i32_1 = arith.constant 0 : i32
    %c0_i32_2 = arith.constant 0 : i32
    return %c0_i32, %c0_i32_0, %c0_i32_1 : i32, i32, i32
  }
  func.func @transform_5(%arg0: i32) -> (i32, i32, i32) {
    %c0_i32 = arith.constant 0 : i32
    %c0_i32_0 = arith.constant 0 : i32
    %c0_i32_1 = arith.constant 0 : i32
    return %c0_i32, %arg0, %c0_i32_0 : i32, i32, i32
  }
  func.func @transform_6(%arg0: i32) -> (i32, i32) {
    %c0_i32 = arith.constant 0 : i32
    %c0_i32_0 = arith.constant 0 : i32
    return %arg0, %c0_i32 : i32, i32
  }
  func.func @transform_7(%arg0: i32) -> (i32, i32) {
    %c0_i32 = arith.constant 0 : i32
    %c0_i32_0 = arith.constant 0 : i32
    return %arg0, %c0_i32 : i32, i32
  }
}

</mosaic_0001>

<bundles_post_ra>
// kernel: tpu_custom_call.1
= control target key start
LH: loop header
LB: loop body
LE: loop exit
PB: predicated region body
PF: predicated region fallthrough
CT: control target
= control target key end

     0   :  { %13 = vsyncpa [#allocation4], 0  ;;  %s12428_s0 = inlined_call_operand.vmem [shape: f32[1024,64], index: 0, kind: input, shape index: {}]   ;;  %s12429_s1 = inlined_call_operand.vmem [shape: bf16[4,64,32], index: 1, kind: input, shape index: {}]   ;;  %s12430_s2 = inlined_call_operand.vmem [shape: bf16[64,128], index: 2, kind: input, shape index: {}]   ;;  %s12431_s3 = inlined_call_operand.vmem [shape: f32[1,128], index: 3, kind: input, shape index: {}]   ;;  %s12432_s4 = inlined_call_operand.vmem [shape: bf16[4,32,8], index: 4, kind: input, shape index: {}]   ;;  %s12433_s5 = inlined_call_operand.vmem [shape: bf16[4,1024,32], index: 5, kind: output, shape index: {0}]   ;;  %s12434_s6 = inlined_call_operand.hbm [shape: f32[1024,128], index: 6, kind: output, shape index: {1}]   ;;  %s12435_s7 = inlined_call_operand.vmem [shape: f32[1024,8], index: 7, kind: output, shape index: {2}]  }
   0x1   :  { %15 = vsyncpa [#allocation4 + $0x1], 0  ;;  %s9380_s24 = smov 0   ;;  %s9382_s25 = smov 0  }
   0x2   :  { %s9384_s26 = smov 0   ;;  %s9386_s27 = smov 0  }
   0x3 LB: > { %s9401_s28 = sadd.s32 4294967295, %s9335_s27   ;;  %s6978_s29 = sadd.s32 4294967294, %s9335_s27   ;;  %s9335_s27 = sphi %s9386_s27, %s12695_s27   ;;  %s9331_s26 = sphi %s9384_s26, %s12694_s26   ;;  %s9327_s25 = sphi %s9382_s25, %s12693_s25   ;;  %s9323_s24 = sphi %s9380_s24, %s12692_s24  }
   0x4   : > { %s9405_s30 = sadd.s32 1, %s9335_s27   ;;  %s138_s8 = sadd.s32 1, %s9331_s26 }
   0x5   : > { %s135_s9 = ssub.s32 %s9335_s27, %s9405_s30  ;;  %p148_p0 = scmp.ne.s32.totalorder %s9331_s26, %s9327_s25 }
   0x6   : > { %p136_p1 = scmp.eq.s32.totalorder %s135_s9, 0  ;;  %p149_p2 = scmp.eq.s32.totalorder %s9401_s28, 1 }
   0x7   : > { %p180_p3 = scmp.ne.s32.totalorder %s9327_s25, %s9323_s24  ;;  %p181_p4 = scmp.eq.s32.totalorder %s6978_s29, 1 }
   0x8   : > { %s9416_s10 = scalar_select %p136_p1, %s9331_s26, %s138_s8  }
   0x9   : > { %p9418_p5 = por %p149_p2, %p148_p0  ;;  %p9422_p6 = por %p181_p4, %p180_p3 }
   0xa   : > { %p6981_p7 = scmp.ge.s32.totalorder %s9335_s27, 1  ;;  %p246_p8 = scmp.lt.s32.totalorder %s9335_s27, 3 }
   0xc   : > { %p247_p9 = pnand %p6981_p7, %p246_p8 }
   0xe   : > { %250 = sbr.rel (%p247_p9) target bundleno = 1198 (0x4ae), region = 40 }
  0x15   : > { %v9244_v0 = vld [vmem:[%s12430_s2] sm:$0xff]   ;;  %s6984_s15 = sshll.u32 %s9401_s28, 6  ;;  %v9245_v1 = vld [vmem:[%s12430_s2 + $0x8] sm:$0xff]   ;;  %v9246_v2 = vld [vmem:[%s12430_s2 + $0x10] sm:$0xff]   ;;  %vm437_vm0 = vcmask 523264   ;;  %s9749_s19 = sand.u32 1, %s9327_s25  }
  0x16   : > { %p288_p10 = scmp.lt.s32.totalorder %s6984_s15, 127  ;;  %8371 = vmatprep.subr.bf16.mxu0 %v9244_v0  ;;  %v9248_v3 = vld [vmem:[%s12429_s1] sm:$0xff]   ;;  %v9249_v4 = vld [vmem:[%s12429_s1 + $0x8] sm:$0xff]   ;;  %v9247_v7 = vld [vmem:[%s12430_s2 + $0x18] sm:$0xff]   ;;  %s6983_s20 = sshll.u32 %s9749_s19, 9  ;;  %vm1592_vm2 = vcmask 257024  }
  0x17   : > { %8372 = vmatpush3.bf16.msra.mxu0 %v9244_v0  ;;  %9003 = vmatprep.subr.bf16.mxu1 %v9248_v3  ;;  %v9250_v9 = vld [vmem:[%s12429_s1 + $0x10] sm:$0xff]   ;;  %v9251_v25 = vld [vmem:[%s12429_s1 + $0x18] sm:$0xff]   ;;  %v9514_v36 = vld [vmem:[%s12429_s1 + $0x20] sm:$0xff]   ;;  %s9763_s29 = scalar_lea.vmem [#allocation3], %s6983_s20  ;;  %s6982_s16 = sshll.u32 %s9749_s19, 10 }
  0x18   : > { %s12697_s15 = smov (!%p288_p10, %s6984_s15), 127  ;;  %8373 = vmatprep.subr.bf16.mxu0 %v9245_v1  ;;  %9007 = vmatpush3.bf16.msra.mxu1 %v9248_v3  ;;  %s9990_s17 = scalar_lea.vmem [#allocation2], %s6982_s16 }
  0x19   : > { %s6985_s22 = sshll.u32 %s12697_s15, 3  ;;  %9004 = vmatprep.subr.bf16.mxu1 %v9249_v4  ;;  %s5776_s15 = scalar_lea.sflag [#allocation4], %s9749_s19 }
  0x1a   : > { %s9449_s8 = scalar_lea.vmem %s12428_s0, %s6985_s22  ;;  %s11984_s21 = scalar_lea.vmem %s12435_s7, %s6985_s22 }
  0x1b   : > { %8374 = vmatpush3.bf16.msra.mxu0 %v9245_v1  ;;  %v302_v5 = vld [vmem:[%s9449_s8] sm:$0xff]  ;;  %v303_v6 = vld [vmem:[%s9449_s8 + $0x8] sm:$0xff]  ;;  %v304_v10 = vld [vmem:[%s9449_s8 + $0x10] sm:$0xff]  ;;  %s8053_s22 = sshll.u32 (%p9418_p5), %s9401_s28, 8 }
  0x1c   : > { %8375 = vmatprep.subr.bf16.mxu0 %v9246_v2  ;;  %v9459_v8 = vpack.c.bf16 %v303_v6, %v302_v5  ;;  %v305_v11 = vld [vmem:[%s9449_s8 + $0x18] sm:$0xff]  ;;  %9008 = vmatpush3.bf16.msra.mxu1 %v9249_v4  ;;  %v306_v12 = vld [vmem:[%s9449_s8 + $0x20] sm:$0xff]  ;;  %v307_v13 = vld [vmem:[%s9449_s8 + $0x28] sm:$0xff]  ;;  %s12124_s9 = scalar_lea.vmem (%p9418_p5), %s12433_s5, %s8053_s22 }
  0x1d   : > { %9005 = vmatprep.subr.bf16.mxu1 %v9250_v9  ;;  %v9470_v14 = vpack.c.bf16 %v305_v11, %v304_v10  ;;  %v9472_v15 = vpack.c.bf16 %v307_v13, %v306_v12  ;;  %v334_v16 = vld [vmem:[%s9449_s8 + $0x100] sm:$0xff]  ;;  %v335_v17 = vld [vmem:[%s9449_s8 + $0x108] sm:$0xff]  ;;  %v308_v18 = vld [vmem:[%s9449_s8 + $0x30] sm:$0xff] }
  0x1e   : > { %8379 = vmatprep.mubr.msk.bf16.mxu0 %vm437_vm0, %v9459_v8  ;;  %v309_v19 = vld [vmem:[%s9449_s8 + $0x38] sm:$0xff]  ;;  %v9482_v20 = vpack.c.bf16 %v335_v17, %v334_v16  ;;  %v310_v21 = vld [vmem:[%s9449_s8 + $0x40] sm:$0xff]  ;;  %v311_v22 = vld [vmem:[%s9449_s8 + $0x48] sm:$0xff] }
  0x1f   : > { %8376 = vmatpush3.bf16.msra.mxu0 %v9246_v2  ;;  %v9488_v23 = vpack.c.bf16 %v309_v19, %v308_v18  ;;  %v9490_v24 = vpack.c.bf16 %v311_v22, %v310_v21  ;;  %v312_v26 = vld [vmem:[%s9449_s8 + $0x50] sm:$0xff]  ;;  %v313_v27 = vld [vmem:[%s9449_s8 + $0x58] sm:$0xff]  ;;  %v314_v28 = vld [vmem:[%s9449_s8 + $0x60] sm:$0xff] }
  0x20   : > { %8377 = vmatprep.subr.bf16.mxu0 %v9247_v7  ;;  %9009 = vmatpush3.bf16.msra.mxu1 %v9250_v9  ;;  %v336_v29 = vld [vmem:[%s9449_s8 + $0x110] sm:$0xff]  ;;  %v337_v30 = vld [vmem:[%s9449_s8 + $0x118] sm:$0xff]  ;;  %v315_v31 = vld [vmem:[%s9449_s8 + $0x68] sm:$0xff]  ;;  %v9507_v34 = vpack.c.bf16 %v313_v27, %v312_v26 }
  0x21   : > { %8483 = vmatprep.mubr.msk.bf16.mxu1 %vm437_vm0, %v9482_v20  ;;  %v338_v32 = vld [vmem:[%s9449_s8 + $0x120] sm:$0xff]  ;;  %v339_v33 = vld [vmem:[%s9449_s8 + $0x128] sm:$0xff]  ;;  %9006 = vmatprep.subr.bf16.mxu1 %v9251_v25  ;;  %v9509_v35 = vpack.c.bf16 %v337_v30, %v336_v29  ;;  %v9516_v37 = vpack.c.bf16 %v315_v31, %v314_v28  ;;  %v316_v39 = vld [vmem:[%s9449_s8 + $0x70] sm:$0xff] }
  0x22   : > { %v9518_v38 = vpack.c.bf16 %v339_v33, %v338_v32  ;;  %v317_v40 = vld [vmem:[%s9449_s8 + $0x78] sm:$0xff]  ;;  %v340_v41 = vld [vmem:[%s9449_s8 + $0x130] sm:$0xff]  ;;  %v318_v43 = vld [vmem:[%s9449_s8 + $0x80] sm:$0xff] }
  0x23   : > { %8378 = vmatpush3.bf16.msra.mxu0 %v9247_v7  ;;  %v341_v42 = vld [vmem:[%s9449_s8 + $0x138] sm:$0xff]  ;;  %v319_v44 = vld [vmem:[%s9449_s8 + $0x88] sm:$0xff]  ;;  %v342_v45 = vld [vmem:[%s9449_s8 + $0x140] sm:$0xff]  ;;  %v9537_v47 = vpack.c.bf16 %v317_v40, %v316_v39 }
  0x24   : > { %8443 = vmatprep.subr.bf16.mxu0 %v9248_v3  ;;  %9010 = vmatpush3.bf16.msra.mxu1 %v9251_v25  ;;  %v343_v46 = vld [vmem:[%s9449_s8 + $0x148] sm:$0xff]  ;;  %v9539_v48 = vpack.c.bf16 %v341_v42, %v340_v41  ;;  %v9541_v49 = vpack.c.bf16 %v319_v44, %v318_v43  ;;  %v320_v51 = vld [vmem:[%s9449_s8 + $0x90] sm:$0xff]  ;;  %v321_v52 = vld [vmem:[%s9449_s8 + $0x98] sm:$0xff] }
  0x25   : > { %v9543_v50 = vpack.c.bf16 %v343_v46, %v342_v45  ;;  %v322_v53 = vld [vmem:[%s9449_s8 + $0xa0] sm:$0xff]  ;;  %v344_v54 = vld [vmem:[%s9449_s8 + $0x150] sm:$0xff]  ;;  %v345_v55 = vld [vmem:[%s9449_s8 + $0x158] sm:$0xff]  ;;  %v9561_v59 = vpack.c.bf16 %v321_v52, %v320_v51 }
  0x26   : > { %8380 = vmatmul.mubr.msk.bf16.vlgmr.msra.gmra.mrb[0].mxu0 %vm437_vm0, %v9470_v14  ;;  %v323_v56 = vld [vmem:[%s9449_s8 + $0xa8] sm:$0xff]  ;;  %v346_v57 = vld [vmem:[%s9449_s8 + $0x160] sm:$0xff]  ;;  %v9563_v60 = vpack.c.bf16 %v345_v55, %v344_v54  ;;  %v324_v63 = vld [vmem:[%s9449_s8 + $0xb0] sm:$0xff] }
  0x27   : > { %8444 = vmatpush3.bf16.msra.mxu0 %v9248_v3  ;;  %8383 = vmatprep.mubr.msk.bf16.mxu0 %vm437_vm0, %v9472_v15  ;;  %v347_v58 = vld [vmem:[%s9449_s8 + $0x168] sm:$0xff]  ;;  %v9565_v61 = vpack.c.bf16 %v323_v56, %v322_v53  ;;  %v325_v0 = vld [vmem:[%s9449_s8 + $0xb8] sm:$0xff]  ;;  %v326_v1 = vld [vmem:[%s9449_s8 + $0xc0] sm:$0xff] }
  0x28   : > { %8445 = vmatprep.subr.bf16.mxu0 %v9249_v4  ;;  %8484 = vmatmul.mubr.msk.bf16.vlgmr.msra.gmra.mrb[0].mxu1 %vm437_vm0, %v9509_v35  ;;  %v9567_v62 = vpack.c.bf16 %v347_v58, %v346_v57  ;;  %v348_v2 = vld [vmem:[%s9449_s8 + $0x170] sm:$0xff]  ;;  %v349_v3 = vld [vmem:[%s9449_s8 + $0x178] sm:$0xff]  ;;  %v350_v5 = vld [vmem:[%s9449_s8 + $0x180] sm:$0xff]  ;;  %v9585_v7 = vpack.c.bf16 %v325_v0, %v324_v63 }
  0x29   : > { %8487 = vmatprep.mubr.msk.bf16.mxu1 %vm437_vm0, %v9518_v38  ;;  %v351_v6 = vld [vmem:[%s9449_s8 + $0x188] sm:$0xff]  ;;  %v328_v12 = vld [vmem:[%s9449_s8 + $0xd0] sm:$0xff]  ;;  %v329_v13 = vld [vmem:[%s9449_s8 + $0xd8] sm:$0xff] }
  0x2a   : > { %v9591_v11 = vpack.c.bf16 %v351_v6, %v350_v5  ;;  %v330_v16 = vld [vmem:[%s9449_s8 + $0xe0] sm:$0xff]  ;;  %v352_v17 = vld [vmem:[%s9449_s8 + $0x190] sm:$0xff]  ;;  %v353_v18 = vld [vmem:[%s9449_s8 + $0x198] sm:$0xff] }
  0x2b   : > { %8446 = vmatpush3.bf16.msra.mxu0 %v9249_v4  ;;  %v327_v4 = vld [vmem:[%s9449_s8 + $0xc8] sm:$0xff]  ;;  %v354_v21 = vld [vmem:[%s9449_s8 + $0x1a0] sm:$0xff]  ;;  %v9611_v26 = vpack.c.bf16 %v353_v18, %v352_v17  ;;  %v332_v29 = vld [vmem:[%s9449_s8 + $0xf0] sm:$0xff] }
  0x2c   : > { %8447 = vmatprep.subr.bf16.mxu0 %v9250_v9  ;;  %v9589_v10 = vpack.c.bf16 %v327_v4, %v326_v1  ;;  %v331_v19 = vld [vmem:[%s9449_s8 + $0xe8] sm:$0xff]  ;;  %v333_v30 = vld [vmem:[%s9449_s8 + $0xf8] sm:$0xff]  ;;  %v356_v31 = vld [vmem:[%s9449_s8 + $0x1b0] sm:$0xff] }
  0x2d   : > { %v355_v22 = vld [vmem:[%s9449_s8 + $0x1a8] sm:$0xff]  ;;  %v9613_v27 = vpack.c.bf16 %v331_v19, %v330_v16  ;;  %v357_v32 = vld [vmem:[%s9449_s8 + $0x1b8] sm:$0xff]  ;;  %v358_v33 = vld [vmem:[%s9449_s8 + $0x1c0] sm:$0xff]  ;;  %v9631_v40 = vpack.c.bf16 %v333_v30, %v332_v29 }
  0x2e   : > { %8384 = vmatmul.mubr.msk.bf16.gmra.mrb[4].mxu0 %vm437_vm0, %v9488_v23  ;;  %v9615_v28 = vpack.c.bf16 %v355_v22, %v354_v21  ;;  %v359_v39 = vld [vmem:[%s9449_s8 + $0x1c8] sm:$0xff]  ;;  %v9633_v41 = vpack.c.bf16 %v357_v32, %v356_v31  ;;  %v360_v43 = vld [vmem:[%s9449_s8 + $0x1d0] sm:$0xff]  ;;  %v361_v44 = vld [vmem:[%s9449_s8 + $0x1d8] sm:$0xff] }
  0x2f   : > { %8387 = vmatprep.mubr.msk.bf16.mxu0 %vm437_vm0, %v9490_v24  ;;  %8448 = vmatpush3.bf16.msra.mxu0 %v9250_v9  ;;  %v9587_v9 = vpack.c.bf16 %v349_v3, %v348_v2  ;;  %v9635_v42 = vpack.c.bf16 %v359_v39, %v358_v33  ;;  %v362_v45 = vld [vmem:[%s9449_s8 + $0x1e0] sm:$0xff]  ;;  %v363_v46 = vld [vmem:[%s9449_s8 + $0x1e8] sm:$0xff]  ;;  %v9649_v51 = vpack.c.bf16 %v361_v44, %v360_v43  ;;  %v364_v53 = vld [vmem:[%s9449_s8 + $0x1f0] sm:$0xff] }
  0x30   : > { %8449 = vmatprep.subr.bf16.mxu0 %v9251_v25  ;;  %8488 = vmatmul.mubr.msk.bf16.gmra.mrb[4].mxu1 %vm437_vm0, %v9539_v48  ;;  %v9651_v52 = vpack.c.bf16 %v363_v46, %v362_v45  ;;  %v365_v54 = vld [vmem:[%s9449_s8 + $0x1f8] sm:$0xff]  ;;  %v9253_v56 = vld [vmem:[%s12429_s1 + $0x28] sm:$0xff]   ;;  %v9254_v57 = vld [vmem:[%s12429_s1 + $0x30] sm:$0xff]  }
  0x31   : > { %8491 = vmatprep.mubr.msk.bf16.mxu1 %vm437_vm0, %v9543_v50  ;;  %v9663_v55 = vpack.c.bf16 %v365_v54, %v364_v53  ;;  %v9255_v58 = vld [vmem:[%s12429_s1 + $0x38] sm:$0xff]   ;;  %v9757_v63 = vld [vmem:[%s12431_s3] ss:$0 sm:$0xff]  ;;  %v9257_v30 = vld [vmem:[%s12432_s4 + $0x10] sm:$0xff]  }
  0x32   : > { %8587 = vmatprep.subr.bf16.mxu1 %v9257_v30  ;;  %v9258_v32 = vld [vmem:[%s12429_s1 + $0x48] sm:$0xff]  }
  0x33   : > { %8450 = vmatpush3.bf16.msra.mxu0 %v9251_v25  ;;  %v9609_v25 = vpack.c.bf16 %v329_v13, %v328_v12  ;;  %8588 = vmatpush3.bf16.msra.mxu1 %v9257_v30 }
  0x34   : > { %8515 = vmatprep.subr.bf16.mxu0 %v9514_v36 }
  0x36   : > { %8388 = vmatmul.mubr.msk.bf16.gmra.mrb[8].mxu0 %vm437_vm0, %v9507_v34 }
  0x37   : > { %8391 = vmatprep.mubr.msk.bf16.mxu0 %vm437_vm0, %v9516_v37 }
  0x38   : > { %8492 = vmatmul.mubr.msk.bf16.gmra.mrb[8].mxu1 %vm437_vm0, %v9563_v60 }
  0x39   : > { %8495 = vmatprep.mubr.msk.bf16.mxu1 %vm437_vm0, %v9567_v62 }
  0x3e   : > { %8392 = vmatmul.mubr.msk.bf16.gmra.mrb[12].mxu0 %vm437_vm0, %v9537_v47 }
  0x3f   : > { %8395 = vmatprep.mubr.msk.bf16.mxu0 %vm437_vm0, %v9541_v49 }
  0x40   : > { %8496 = vmatmul.mubr.msk.bf16.gmra.mrb[12].mxu1 %vm437_vm0, %v9587_v9 }
  0x41   : > { %8499 = vmatprep.mubr.msk.bf16.mxu1 %vm437_vm0, %v9591_v11 }
  0x46   : > { %8396 = vmatmul.mubr.msk.bf16.gmra.mrb[16].mxu0 %vm437_vm0, %v9561_v59 }
  0x47   : > { %8399 = vmatprep.mubr.msk.bf16.mxu0 %vm437_vm0, %v9565_v61 }
  0x48   : > { %8500 = vmatmul.mubr.msk.bf16.gmra.mrb[16].mxu1 %vm437_vm0, %v9611_v26 }
  0x49   : > { %8503 = vmatprep.mubr.msk.bf16.mxu1 %vm437_vm0, %v9615_v28 }
  0x4e   : > { %8400 = vmatmul.mubr.msk.bf16.gmra.mrb[20].mxu0 %vm437_vm0, %v9585_v7 }
  0x4f   : > { %8403 = vmatprep.mubr.msk.bf16.mxu0 %vm437_vm0, %v9589_v10 }
  0x50   : > { %8504 = vmatmul.mubr.msk.bf16.gmra.mrb[20].mxu1 %vm437_vm0, %v9633_v41 }
  0x51   : > { %8507 = vmatprep.mubr.msk.bf16.mxu1 %vm437_vm0, %v9635_v42 }
  0x56   : > { %8404 = vmatmul.mubr.msk.bf16.gmra.mrb[24].mxu0 %vm437_vm0, %v9609_v25 }
  0x57   : > { %8407 = vmatprep.mubr.msk.bf16.mxu0 %vm437_vm0, %v9613_v27 }
  0x58   : > { %8508 = vmatmul.mubr.msk.bf16.gmra.mrb[24].mxu1 %vm437_vm0, %v9649_v51 }
  0x59   : > { %8511 = vmatprep.mubr.msk.bf16.mxu1 %vm437_vm0, %v9651_v52 }
  0x5e   : > { %8408 = vmatmul.mubr.msk.bf16.gmra.mrb[28].mxu0 %vm437_vm0, %v9631_v40 }
  0x5f   : > { %8411 = vmatprep.mubr.msk.bf16.mxu0 %vm437_vm0, %v9482_v20 }
  0x60   : > { %8512 = vmatmul.mubr.msk.bf16.gmra.mrb[28].mxu1 %vm437_vm0, %v9663_v55 }
  0x66   : > { %8412 = vmatmul.mubr.msk.bf16.gmra.mrb[32].mxu0 %vm437_vm0, %v9509_v35 }
  0x67   : > { %8415 = vmatprep.mubr.msk.bf16.mxu0 %vm437_vm0, %v9518_v38 }
  0x6e   : > { %8416 = vmatmul.mubr.msk.bf16.gmra.mrb[36].mxu0 %vm437_vm0, %v9539_v48 }
  0x6f   : > { %8419 = vmatprep.mubr.msk.bf16.mxu0 %vm437_vm0, %v9543_v50 }
  0x76   : > { %8420 = vmatmul.mubr.msk.bf16.gmra.mrb[40].mxu0 %vm437_vm0, %v9563_v60 }
  0x77   : > { %8423 = vmatprep.mubr.msk.bf16.mxu0 %vm437_vm0, %v9567_v62 }
  0x7e   : > { %8424 = vmatmul.mubr.msk.bf16.gmra.mrb[44].mxu0 %vm437_vm0, %v9587_v9 }
  0x7f   : > { %8427 = vmatprep.mubr.msk.bf16.mxu0 %vm437_vm0, %v9591_v11 }
  0x86   : > { %8428 = vmatmul.mubr.msk.bf16.gmra.mrb[48].mxu0 %vm437_vm0, %v9611_v26 }
  0x87   : > { %8431 = vmatprep.mubr.msk.bf16.mxu0 %vm437_vm0, %v9615_v28 }
  0x8e   : > { %8432 = vmatmul.mubr.msk.bf16.gmra.mrb[52].mxu0 %vm437_vm0, %v9633_v41 }
  0x8f   : > { %8435 = vmatprep.mubr.msk.bf16.mxu0 %vm437_vm0, %v9635_v42 }
  0x96   : > { %8436 = vmatmul.mubr.msk.bf16.gmra.mrb[56].mxu0 %vm437_vm0, %v9649_v51 }
  0x97   : > { %8439 = vmatprep.mubr.msk.bf16.mxu0 %vm437_vm0, %v9651_v52 }
  0x9e   : > { %8440 = vmatmul.mubr.msk.bf16.gmra.mrb[60].mxu0 %vm437_vm0, %v9663_v55 }
  0x9f   : > { %8451 = vmatprep.mubr.msk.bf16.mxu0 %vm437_vm0, %v9459_v8 }
  0xa6   : > { %8452 = vmatmul.mubr.msk.bf16.vlgmr.msra.gmra.mrb[64].mxu0 %vm437_vm0, %v9470_v14 }
  0xa7   : > { %8516 = vmatpush3.bf16.msra.mxu0 %v9514_v36  ;;  %8455 = vmatprep.mubr.msk.bf16.mxu0 %vm437_vm0, %v9472_v15  ;;  %v9256_v36 = vld [vmem:[%s12429_s1 + $0x40] sm:$0xff]  }
  0xa8   : > { %8517 = vmatprep.subr.bf16.mxu0 %v9253_v56 }
  0xab   : > { %8518 = vmatpush3.bf16.msra.mxu0 %v9253_v56 }
  0xac   : > { %8519 = vmatprep.subr.bf16.mxu0 %v9254_v57 }
  0xae   : > { %8456 = vmatmul.mubr.msk.bf16.gmra.mrb[68].mxu0 %vm437_vm0, %v9488_v23 }
  0xaf   : > { %8459 = vmatprep.mubr.msk.bf16.mxu0 %vm437_vm0, %v9490_v24  ;;  %8520 = vmatpush3.bf16.msra.mxu0 %v9254_v57 }
  0xb0   : > { %8521 = vmatprep.subr.bf16.mxu0 %v9255_v58 }
  0xb3   : > { %8522 = vmatpush3.bf16.msra.mxu0 %v9255_v58 }
  0xb4   : > { %8723 = vmatprep.subr.bf16.mxu0 %v9256_v36 }
  0xb6   : > { %8460 = vmatmul.mubr.msk.bf16.gmra.mrb[72].mxu0 %vm437_vm0, %v9507_v34 }
  0xb7   : > { %8463 = vmatprep.mubr.msk.bf16.mxu0 %vm437_vm0, %v9516_v37 }
  0xbe   : > { %8464 = vmatmul.mubr.msk.bf16.gmra.mrb[76].mxu0 %vm437_vm0, %v9537_v47 }
  0xbf   : > { %8467 = vmatprep.mubr.msk.bf16.mxu0 %vm437_vm0, %v9541_v49 }
  0xc6   : > { %8468 = vmatmul.mubr.msk.bf16.gmra.mrb[80].mxu0 %vm437_vm0, %v9561_v59 }
  0xc7   : > { %8471 = vmatprep.mubr.msk.bf16.mxu0 %vm437_vm0, %v9565_v61 }
  0xce   : > { %8472 = vmatmul.mubr.msk.bf16.gmra.mrb[84].mxu0 %vm437_vm0, %v9585_v7 }
  0xcf   : > { %8475 = vmatprep.mubr.msk.bf16.mxu0 %vm437_vm0, %v9589_v10 }
  0xd6   : > { %8476 = vmatmul.mubr.msk.bf16.gmra.mrb[88].mxu0 %vm437_vm0, %v9609_v25 }
  0xd7   : > { %8479 = vmatprep.mubr.msk.bf16.mxu0 %vm437_vm0, %v9613_v27 }
  0xde   : > { %8480 = vmatmul.mubr.msk.bf16.gmra.mrb[92].mxu0 %vm437_vm0, %v9631_v40 }
  0xdf   : > { %8523 = vmatprep.mubr.msk.bf16.mxu0 %vm437_vm0, %v9459_v8 }
  0xe6   : > { %8524 = vmatmul.mubr.msk.bf16.vlgmr.msra.gmra.mrb[96].mxu0 %vm437_vm0, %v9470_v14 }
  0xe7   : > { %8527 = vmatprep.mubr.msk.bf16.mxu0 %vm437_vm0, %v9472_v15  ;;  %8724 = vmatpush3.bf16.msra.mxu0 %v9256_v36 }
  0xe8   : > { %8725 = vmatprep.subr.bf16.mxu0 %v9258_v32 }
  0xeb   : > { %8726 = vmatpush3.bf16.msra.mxu0 %v9258_v32 }
  0xee   : > { %8528 = vmatmul.mubr.msk.bf16.gmra.mrb[100].mxu0 %vm437_vm0, %v9488_v23 }
  0xef   : > { %8531 = vmatprep.mubr.msk.bf16.mxu0 %vm437_vm0, %v9490_v24 }
  0xf6   : > { %8532 = vmatmul.mubr.msk.bf16.gmra.mrb[104].mxu0 %vm437_vm0, %v9507_v34 }
  0xf7   : > { %8535 = vmatprep.mubr.msk.bf16.mxu0 %vm437_vm0, %v9516_v37 }
  0xf9   : > { %v8381_v0 = vpop.f32.mrb[0].mxu0 }
  0xfa   : > { %v577_v1 = vadd.f32 %v8381_v0, %v9757_v63  ;;  %v568_v2 = vpop.f32.mrb[1].mxu0 }
  0xfb   : > { %v569_v3 = vadd.f32 %v9757_v63, %v568_v2  ;;  %v8382_v4 = vpop.f32.mrb[2].mxu0 }
  0xfc   : > { %825 = vst [vmem:[%s9763_s29 + $0x10] sm:$0xff] %v577_v1  ;;  %v580_v5 = vadd.f32 %v8382_v4, %v9757_v63  ;;  %v571_v6 = vpop.f32.mrb[3].mxu0 }
  0xfd   : > { %823 = vst [vmem:[%s9763_s29] sm:$0xff] %v569_v3  ;;  %v572_v12 = vadd.f32 %v9757_v63, %v571_v6 }
  0xfe   : > { %826 = vst [vmem:[%s9763_s29 + $0x18] sm:$0xff] %v580_v5  ;;  %8536 = vmatmul.mubr.msk.bf16.gmra.mrb[108].mxu0 %vm437_vm0, %v9537_v47 }
  0xff   : > { %824 = vst [vmem:[%s9763_s29 + $0x8] sm:$0xff] %v572_v12  ;;  %8539 = vmatprep.mubr.msk.bf16.mxu0 %vm437_vm0, %v9541_v49 }
 0x101   : > { %v8385_v13 = vpop.f32.mrb[4].mxu0 }
 0x102   : > { %v593_v16 = vadd.f32 %v8385_v13, %v9757_v63  ;;  %v584_v17 = vpop.f32.mrb[5].mxu0 }
 0x103   : > { %v585_v18 = vadd.f32 %v9757_v63, %v584_v17  ;;  %v8386_v19 = vpop.f32.mrb[6].mxu0 }
 0x104   : > { %829 = vst [vmem:[%s9763_s29 + $0x30] sm:$0xff] %v593_v16  ;;  %v596_v21 = vadd.f32 %v8386_v19, %v9757_v63  ;;  %v587_v22 = vpop.f32.mrb[7].mxu0 }
 0x105   : > { %827 = vst [vmem:[%s9763_s29 + $0x20] sm:$0xff] %v585_v18  ;;  %v588_v29 = vadd.f32 %v9757_v63, %v587_v22 }
 0x106   : > { %830 = vst [vmem:[%s9763_s29 + $0x38] sm:$0xff] %v596_v21  ;;  %8540 = vmatmul.mubr.msk.bf16.gmra.mrb[112].mxu0 %vm437_vm0, %v9561_v59 }
 0x107   : > { %828 = vst [vmem:[%s9763_s29 + $0x28] sm:$0xff] %v588_v29  ;;  %8543 = vmatprep.mubr.msk.bf16.mxu0 %vm437_vm0, %v9565_v61 }
 0x109   : > { %v8389_v31 = vpop.f32.mrb[8].mxu0 }
 0x10a   : > { %v609_v33 = vadd.f32 %v8389_v31, %v9757_v63  ;;  %v600_v39 = vpop.f32.mrb[9].mxu0 }
 0x10b   : > { %v601_v43 = vadd.f32 %v9757_v63, %v600_v39  ;;  %v8390_v44 = vpop.f32.mrb[10].mxu0 }
 0x10c   : > { %833 = vst [vmem:[%s9763_s29 + $0x50] sm:$0xff] %v609_v33  ;;  %v612_v45 = vadd.f32 %v8390_v44, %v9757_v63  ;;  %v603_v46 = vpop.f32.mrb[11].mxu0  ;;  %v9259_v33 = vld [vmem:[%s12432_s4 + $0x18] sm:$0xff]  }
 0x10d   : > { %831 = vst [vmem:[%s9763_s29 + $0x40] sm:$0xff] %v601_v43  ;;  %v604_v53 = vadd.f32 %v9757_v63, %v603_v46  ;;  %8589 = vmatprep.subr.bf16.mxu1 %v9259_v33  ;;  %v9260_v43 = vld [vmem:[%s12429_s1 + $0x50] sm:$0xff]  }
 0x10e   : > { %834 = vst [vmem:[%s9763_s29 + $0x58] sm:$0xff] %v612_v45  ;;  %8544 = vmatmul.mubr.msk.bf16.gmra.mrb[116].mxu0 %vm437_vm0, %v9585_v7  ;;  %8590 = vmatpush3.bf16.msra.mxu1 %v9259_v33 }
 0x10f   : > { %832 = vst [vmem:[%s9763_s29 + $0x48] sm:$0xff] %v604_v53  ;;  %8547 = vmatprep.mubr.msk.bf16.mxu0 %vm437_vm0, %v9589_v10  ;;  %8727 = vmatprep.subr.bf16.mxu0 %v9260_v43 }
 0x110   : > { %8728 = vmatpush3.bf16.msra.mxu0 %v9260_v43 }
 0x111   : > { %v8393_v54 = vpop.f32.mrb[12].mxu0 }
 0x112   : > { %v625_v56 = vadd.f32 %v8393_v54, %v9757_v63  ;;  %v616_v57 = vpop.f32.mrb[13].mxu0 }
 0x113   : > { %v617_v58 = vadd.f32 %v9757_v63, %v616_v57  ;;  %v8394_v36 = vpop.f32.mrb[14].mxu0 }
 0x114   : > { %837 = vst [vmem:[%s9763_s29 + $0x70] sm:$0xff] %v625_v56  ;;  %v628_v0 = vadd.f32 %v8394_v36, %v9757_v63  ;;  %v619_v1 = vpop.f32.mrb[15].mxu0 }
 0x115   : > { %835 = vst [vmem:[%s9763_s29 + $0x60] sm:$0xff] %v617_v58  ;;  %v620_v2 = vadd.f32 %v9757_v63, %v619_v1 }
 0x116   : > { %838 = vst [vmem:[%s9763_s29 + $0x78] sm:$0xff] %v628_v0  ;;  %8548 = vmatmul.mubr.msk.bf16.gmra.mrb[120].mxu0 %vm437_vm0, %v9609_v25 }
 0x117   : > { %836 = vst [vmem:[%s9763_s29 + $0x68] sm:$0xff] %v620_v2  ;;  %8551 = vmatprep.mubr.msk.bf16.mxu0 %vm437_vm0, %v9613_v27 }
 0x119   : > { %v8397_v3 = vpop.f32.mrb[16].mxu0 }
 0x11a   : > { %v641_v4 = vadd.f32 %v8397_v3, %v9757_v63  ;;  %v632_v5 = vpop.f32.mrb[17].mxu0 }
 0x11b   : > { %v633_v6 = vadd.f32 %v9757_v63, %v632_v5  ;;  %v8398_v12 = vpop.f32.mrb[18].mxu0 }
 0x11c   : > { %841 = vst [vmem:[%s9763_s29 + $0x90] sm:$0xff] %v641_v4  ;;  %v644_v13 = vadd.f32 %v8398_v12, %v9757_v63  ;;  %v635_v16 = vpop.f32.mrb[19].mxu0 }
 0x11d   : > { %839 = vst [vmem:[%s9763_s29 + $0x80] sm:$0xff] %v633_v6  ;;  %v636_v17 = vadd.f32 %v9757_v63, %v635_v16 }
 0x11e   : > { %842 = vst [vmem:[%s9763_s29 + $0x98] sm:$0xff] %v644_v13  ;;  %8552 = vmatmul.mubr.msk.bf16.gmra.mrb[124].mxu0 %vm437_vm0, %v9631_v40 }
 0x11f   : > { %840 = vst [vmem:[%s9763_s29 + $0x88] sm:$0xff] %v636_v17  ;;  %8555 = vmatprep.mubr.msk.bf16.mxu0 %vm437_vm0, %v9482_v20 }
 0x121   : > { %v8401_v18 = vpop.f32.mrb[20].mxu0 }
 0x122   : > { %v657_v19 = vadd.f32 %v8401_v18, %v9757_v63  ;;  %v648_v21 = vpop.f32.mrb[21].mxu0 }
 0x123   : > { %v649_v22 = vadd.f32 %v9757_v63, %v648_v21  ;;  %v8402_v29 = vpop.f32.mrb[22].mxu0 }
 0x124   : > { %845 = vst [vmem:[%s9763_s29 + $0xb0] sm:$0xff] %v657_v19  ;;  %v660_v30 = vadd.f32 %v8402_v29, %v9757_v63  ;;  %v651_v31 = vpop.f32.mrb[23].mxu0 }
 0x125   : > { %843 = vst [vmem:[%s9763_s29 + $0xa0] sm:$0xff] %v649_v22  ;;  %v652_v32 = vadd.f32 %v9757_v63, %v651_v31 }
 0x126   : > { %846 = vst [vmem:[%s9763_s29 + $0xb8] sm:$0xff] %v660_v30  ;;  %8556 = vmatmul.mubr.msk.bf16.gmra.mrb[128].mxu0 %vm437_vm0, %v9509_v35 }
 0x127   : > { %844 = vst [vmem:[%s9763_s29 + $0xa8] sm:$0xff] %v652_v32  ;;  %8559 = vmatprep.mubr.msk.bf16.mxu0 %vm437_vm0, %v9518_v38 }
 0x129   : > { %v8405_v39 = vpop.f32.mrb[24].mxu0 }
 0x12a   : > { %v673_v44 = vadd.f32 %v8405_v39, %v9757_v63  ;;  %v664_v45 = vpop.f32.mrb[25].mxu0 }
 0x12b   : > { %v665_v46 = vadd.f32 %v9757_v63, %v664_v45  ;;  %v8406_v53 = vpop.f32.mrb[26].mxu0 }
 0x12c   : > { %849 = vst [vmem:[%s9763_s29 + $0xd0] sm:$0xff] %v673_v44  ;;  %v676_v54 = vadd.f32 %v8406_v53, %v9757_v63  ;;  %v667_v56 = vpop.f32.mrb[27].mxu0  ;;  %v9898_v44 = vld [vmem:[%s12432_s4] sm:$0xff]  }
 0x12d   : > { %847 = vst [vmem:[%s9763_s29 + $0xc0] sm:$0xff] %v665_v46  ;;  %v668_v57 = vadd.f32 %v9757_v63, %v667_v56  ;;  %8655 = vmatprep.subr.bf16.mxu1 %v9898_v44  ;;  %v9262_v46 = vld [vmem:[%s12429_s1 + $0x58] sm:$0xff]  }
 0x12e   : > { %850 = vst [vmem:[%s9763_s29 + $0xd8] sm:$0xff] %v676_v54  ;;  %8560 = vmatmul.mubr.msk.bf16.gmra.mrb[132].mxu0 %vm437_vm0, %v9539_v48  ;;  %8729 = vmatprep.subr.bf16.mxu0 %v9262_v46 }
 0x12f   : > { %848 = vst [vmem:[%s9763_s29 + $0xc8] sm:$0xff] %v668_v57  ;;  %8563 = vmatprep.mubr.msk.bf16.mxu0 %vm437_vm0, %v9543_v50  ;;  %8730 = vmatpush3.bf16.msra.mxu0 %v9262_v46 }
 0x131   : > { %v8409_v58 = vpop.f32.mrb[28].mxu0 }
 0x132   : > { %v689_v36 = vadd.f32 %v8409_v58, %v9757_v63  ;;  %v680_v0 = vpop.f32.mrb[29].mxu0 }
 0x133   : > { %v681_v1 = vadd.f32 %v9757_v63, %v680_v0  ;;  %v8410_v2 = vpop.f32.mrb[30].mxu0 }
 0x134   : > { %853 = vst [vmem:[%s9763_s29 + $0xf0] sm:$0xff] %v689_v36  ;;  %v692_v3 = vadd.f32 %v8410_v2, %v9757_v63  ;;  %v683_v4 = vpop.f32.mrb[31].mxu0 }
 0x135   : > { %851 = vst [vmem:[%s9763_s29 + $0xe0] sm:$0xff] %v681_v1  ;;  %v684_v5 = vadd.f32 %v9757_v63, %v683_v4 }
 0x136   : > { %854 = vst [vmem:[%s9763_s29 + $0xf8] sm:$0xff] %v692_v3  ;;  %8564 = vmatmul.mubr.msk.bf16.gmra.mrb[136].mxu0 %vm437_vm0, %v9563_v60 }
 0x137   : > { %852 = vst [vmem:[%s9763_s29 + $0xe8] sm:$0xff] %v684_v5  ;;  %8567 = vmatprep.mubr.msk.bf16.mxu0 %vm437_vm0, %v9567_v62 }
 0x139   : > { %v8413_v6 = vpop.f32.mrb[32].mxu0 }
 0x13a   : > { %v705_v12 = vadd.f32 %v8413_v6, %v9757_v63  ;;  %v696_v13 = vpop.f32.mrb[33].mxu0 }
 0x13b   : > { %v697_v16 = vadd.f32 %v9757_v63, %v696_v13  ;;  %v8414_v17 = vpop.f32.mrb[34].mxu0 }
 0x13c   : > { %857 = vst [vmem:[%s9763_s29 + $0x110] sm:$0xff] %v705_v12  ;;  %v708_v18 = vadd.f32 %v8414_v17, %v9757_v63  ;;  %v699_v19 = vpop.f32.mrb[35].mxu0 }
 0x13d   : > { %855 = vst [vmem:[%s9763_s29 + $0x100] sm:$0xff] %v697_v16  ;;  %v700_v21 = vadd.f32 %v9757_v63, %v699_v19 }
 0x13e   : > { %858 = vst [vmem:[%s9763_s29 + $0x118] sm:$0xff] %v708_v18  ;;  %8568 = vmatmul.mubr.msk.bf16.gmra.mrb[140].mxu0 %vm437_vm0, %v9587_v9 }
 0x13f   : > { %856 = vst [vmem:[%s9763_s29 + $0x108] sm:$0xff] %v700_v21  ;;  %8571 = vmatprep.mubr.msk.bf16.mxu0 %vm437_vm0, %v9591_v11 }
 0x141   : > { %v8417_v22 = vpop.f32.mrb[36].mxu0 }
 0x142   : > { %v721_v29 = vadd.f32 %v8417_v22, %v9757_v63  ;;  %v712_v30 = vpop.f32.mrb[37].mxu0 }
 0x143   : > { %v713_v31 = vadd.f32 %v9757_v63, %v712_v30  ;;  %v8418_v32 = vpop.f32.mrb[38].mxu0 }
 0x144   : > { %861 = vst [vmem:[%s9763_s29 + $0x130] sm:$0xff] %v721_v29  ;;  %v724_v33 = vadd.f32 %v8418_v32, %v9757_v63  ;;  %v715_v39 = vpop.f32.mrb[39].mxu0 }
 0x145   : > { %859 = vst [vmem:[%s9763_s29 + $0x120] sm:$0xff] %v713_v31  ;;  %v716_v43 = vadd.f32 %v9757_v63, %v715_v39 }
 0x146   : > { %862 = vst [vmem:[%s9763_s29 + $0x138] sm:$0xff] %v724_v33  ;;  %8572 = vmatmul.mubr.msk.bf16.gmra.mrb[144].mxu0 %vm437_vm0, %v9611_v26 }
 0x147   : > { %860 = vst [vmem:[%s9763_s29 + $0x128] sm:$0xff] %v716_v43  ;;  %8575 = vmatprep.mubr.msk.bf16.mxu0 %vm437_vm0, %v9615_v28 }
 0x149   : > { %v8421_v45 = vpop.f32.mrb[40].mxu0 }
 0x14a   : > { %v737_v53 = vadd.f32 %v8421_v45, %v9757_v63  ;;  %v728_v54 = vpop.f32.mrb[41].mxu0 }
 0x14b   : > { %v729_v56 = vadd.f32 %v9757_v63, %v728_v54  ;;  %v8422_v57 = vpop.f32.mrb[42].mxu0 }
 0x14c   : > { %865 = vst [vmem:[%s9763_s29 + $0x150] sm:$0xff] %v737_v53  ;;  %v740_v58 = vadd.f32 %v8422_v57, %v9757_v63  ;;  %v731_v36 = vpop.f32.mrb[43].mxu0 }
 0x14d   : > { %863 = vst [vmem:[%s9763_s29 + $0x140] sm:$0xff] %v729_v56  ;;  %v732_v0 = vadd.f32 %v9757_v63, %v731_v36  ;;  %v9263_v56 = vld [vmem:[%s12429_s1 + $0x60] sm:$0xff]  }
 0x14e   : > { %866 = vst [vmem:[%s9763_s29 + $0x158] sm:$0xff] %v740_v58  ;;  %8576 = vmatmul.mubr.msk.bf16.gmra.mrb[148].mxu0 %vm437_vm0, %v9633_v41  ;;  %8863 = vmatprep.subr.bf16.mxu0 %v9263_v56 }
 0x14f   : > { %864 = vst [vmem:[%s9763_s29 + $0x148] sm:$0xff] %v732_v0  ;;  %8579 = vmatprep.mubr.msk.bf16.mxu0 %vm437_vm0, %v9635_v42 }
 0x151   : > { %v8425_v1 = vpop.f32.mrb[44].mxu0 }
 0x152   : > { %v753_v2 = vadd.f32 %v8425_v1, %v9757_v63  ;;  %v744_v3 = vpop.f32.mrb[45].mxu0 }
 0x153   : > { %v745_v4 = vadd.f32 %v9757_v63, %v744_v3  ;;  %v8426_v5 = vpop.f32.mrb[46].mxu0 }
 0x154   : > { %869 = vst [vmem:[%s9763_s29 + $0x170] sm:$0xff] %v753_v2  ;;  %v756_v6 = vadd.f32 %v8426_v5, %v9757_v63  ;;  %v747_v12 = vpop.f32.mrb[47].mxu0 }
 0x155   : > { %867 = vst [vmem:[%s9763_s29 + $0x160] sm:$0xff] %v745_v4  ;;  %v748_v13 = vadd.f32 %v9757_v63, %v747_v12 }
 0x156   : > { %870 = vst [vmem:[%s9763_s29 + $0x178] sm:$0xff] %v756_v6  ;;  %8580 = vmatmul.mubr.msk.bf16.gmra.mrb[152].mxu0 %vm437_vm0, %v9649_v51 }
 0x157   : > { %868 = vst [vmem:[%s9763_s29 + $0x168] sm:$0xff] %v748_v13  ;;  %8583 = vmatprep.mubr.msk.bf16.mxu0 %vm437_vm0, %v9651_v52 }
 0x159   : > { %v8429_v16 = vpop.f32.mrb[48].mxu0 }
 0x15a   : > { %v769_v17 = vadd.f32 %v8429_v16, %v9757_v63  ;;  %v760_v18 = vpop.f32.mrb[49].mxu0 }
 0x15b   : > { %v761_v19 = vadd.f32 %v9757_v63, %v760_v18  ;;  %v8430_v21 = vpop.f32.mrb[50].mxu0 }
 0x15c   : > { %873 = vst [vmem:[%s9763_s29 + $0x190] sm:$0xff] %v769_v17  ;;  %v772_v22 = vadd.f32 %v8430_v21, %v9757_v63  ;;  %v763_v29 = vpop.f32.mrb[51].mxu0 }
 0x15d   : > { %871 = vst [vmem:[%s9763_s29 + $0x180] sm:$0xff] %v761_v19  ;;  %v764_v30 = vadd.f32 %v9757_v63, %v763_v29 }
 0x15e   : > { %874 = vst [vmem:[%s9763_s29 + $0x198] sm:$0xff] %v772_v22  ;;  %8584 = vmatmul.mubr.msk.bf16.gmra.mrb[156].mxu0 %vm437_vm0, %v9663_v55 }
 0x15f   : > { %872 = vst [vmem:[%s9763_s29 + $0x188] sm:$0xff] %v764_v30  ;;  %8731 = vmatprep.mubr.msk.bf16.mxu0 %vm437_vm0, %v9459_v8 }
 0x161   : > { %v8433_v31 = vpop.f32.mrb[52].mxu0 }
 0x162   : > { %v785_v32 = vadd.f32 %v8433_v31, %v9757_v63  ;;  %v776_v33 = vpop.f32.mrb[53].mxu0 }
 0x163   : > { %v777_v39 = vadd.f32 %v9757_v63, %v776_v33  ;;  %v8434_v43 = vpop.f32.mrb[54].mxu0 }
 0x164   : > { %877 = vst [vmem:[%s9763_s29 + $0x1b0] sm:$0xff] %v785_v32  ;;  %v788_v45 = vadd.f32 %v8434_v43, %v9757_v63  ;;  %v779_v46 = vpop.f32.mrb[55].mxu0 }
 0x165   : > { %875 = vst [vmem:[%s9763_s29 + $0x1a0] sm:$0xff] %v777_v39  ;;  %v780_v53 = vadd.f32 %v9757_v63, %v779_v46 }
 0x166   : > { %878 = vst [vmem:[%s9763_s29 + $0x1b8] sm:$0xff] %v788_v45  ;;  %8732 = vmatmul.mubr.msk.bf16.vlgmr.msra.gmra.mrb[160].mxu0 %vm437_vm0, %v9470_v14 }
 0x167   : > { %876 = vst [vmem:[%s9763_s29 + $0x1a8] sm:$0xff] %v780_v53  ;;  %8735 = vmatprep.mubr.msk.bf16.mxu0 %vm437_vm0, %v9472_v15  ;;  %8864 = vmatpush3.bf16.msra.mxu0 %v9263_v56 }
 0x169   : > { %v8437_v54 = vpop.f32.mrb[56].mxu0 }
 0x16a   : > { %v801_v57 = vadd.f32 %v8437_v54, %v9757_v63  ;;  %v792_v58 = vpop.f32.mrb[57].mxu0 }
 0x16b   : > { %v793_v36 = vadd.f32 %v9757_v63, %v792_v58  ;;  %v8438_v0 = vpop.f32.mrb[58].mxu0 }
 0x16c   : > { %881 = vst [vmem:[%s9763_s29 + $0x1d0] sm:$0xff] %v801_v57  ;;  %v804_v1 = vadd.f32 %v8438_v0, %v9757_v63  ;;  %v795_v2 = vpop.f32.mrb[59].mxu0 }
 0x16d   : > { %879 = vst [vmem:[%s9763_s29 + $0x1c0] sm:$0xff] %v793_v36  ;;  %v796_v3 = vadd.f32 %v9757_v63, %v795_v2 }
 0x16e   : > { %882 = vst [vmem:[%s9763_s29 + $0x1d8] sm:$0xff] %v804_v1  ;;  %8736 = vmatmul.mubr.msk.bf16.gmra.mrb[164].mxu0 %vm437_vm0, %v9488_v23 }
 0x16f   : > { %880 = vst [vmem:[%s9763_s29 + $0x1c8] sm:$0xff] %v796_v3  ;;  %8739 = vmatprep.mubr.msk.bf16.mxu0 %vm437_vm0, %v9490_v24 }
 0x171   : > { %v8441_v4 = vpop.f32.mrb[60].mxu0 }
 0x172   : > { %v817_v5 = vadd.f32 %v8441_v4, %v9757_v63  ;;  %v808_v6 = vpop.f32.mrb[61].mxu0 }
 0x173   : > { %v809_v12 = vadd.f32 %v9757_v63, %v808_v6  ;;  %v8442_v13 = vpop.f32.mrb[62].mxu0 }
 0x174   : > { %885 = vst [vmem:[%s9763_s29 + $0x1f0] sm:$0xff] %v817_v5  ;;  %v820_v16 = vadd.f32 %v8442_v13, %v9757_v63  ;;  %v811_v17 = vpop.f32.mrb[63].mxu0 }
 0x175   : > { %883 = vst [vmem:[%s9763_s29 + $0x1e0] sm:$0xff] %v809_v12  ;;  %v812_v18 = vadd.f32 %v9757_v63, %v811_v17  ;;  %v9265_v17 = vld [vmem:[%s12429_s1 + $0x68] sm:$0xff]  }
 0x176   : > { %886 = vst [vmem:[%s9763_s29 + $0x1f8] sm:$0xff] %v820_v16  ;;  %8740 = vmatmul.mubr.msk.bf16.gmra.mrb[168].mxu0 %vm437_vm0, %v9507_v34  ;;  %8865 = vmatprep.subr.bf16.mxu0 %v9265_v17 }
 0x177   : > { %884 = vst [vmem:[%s9763_s29 + $0x1e8] sm:$0xff] %v812_v18  ;;  %8743 = vmatprep.mubr.msk.bf16.mxu0 %vm437_vm0, %v9516_v37  ;;  %8866 = vmatpush3.bf16.msra.mxu0 %v9265_v17 }
 0x179   : > { %v8453_v19 = vpop.f32.mrb[64].mxu0 }
 0x17a   : > { %vm1210_vm1 = vcmp.ne.f32.partialorder %v8453_v19, %v8453_v19  ;;  %v953_v21 = vpop.f32.mrb[65].mxu0 }
 0x17b   : > { %v9980_v22 = vsel %vm1210_vm1, 0.0, %v8453_v19  ;;  %vm1208_vm3 = vcmp.ne.f32.partialorder %v953_v21, %v953_v21  ;;  %v8454_v29 = vpop.f32.mrb[66].mxu0 }
 0x17c   : > { %v7799_v63 = vpack.c.bf16 %v9980_v22, %v9980_v22  ;;  %v9984_v30 = vsel %vm1208_vm3, 0.0, %v953_v21  ;;  %vm1211_vm4 = vcmp.ne.f32.partialorder %v8454_v29, %v8454_v29  ;;  %v956_v31 = vpop.f32.mrb[67].mxu0 }
 0x17d   : > { %v7797_v32 = vpack.c.bf16 %v9984_v30, %v9984_v30  ;;  %v9988_v33 = vsel %vm1211_vm4, 0.0, %v8454_v29  ;;  %vm1209_vm5 = vcmp.ne.f32.partialorder %v956_v31, %v956_v31 }
 0x17e   : > { %1595 = vst.msk [vmem:[%s9990_s17 + $0x8] sm:$0xf] %vm1592_vm2, %v7799_v63  ;;  %v7800_v43 = vpack.c.bf16 %v9988_v33, %v9988_v33  ;;  %v9998_v45 = vsel %vm1209_vm5, 0.0, %v956_v31  ;;  %8744 = vmatmul.mubr.msk.bf16.gmra.mrb[172].mxu0 %vm437_vm0, %v9537_v47 }
 0x17f   : > { %1593 = vst.msk [vmem:[%s9990_s17] sm:$0xf] %vm1592_vm2, %v7797_v32  ;;  %v7798_v53 = vpack.c.bf16 %v9998_v45, %v9998_v45  ;;  %8747 = vmatprep.mubr.msk.bf16.mxu0 %vm437_vm0, %v9541_v49 }
 0x180   : > { %1596 = vst.msk [vmem:[%s9990_s17 + $0xc] sm:$0xf] %vm1592_vm2, %v7800_v43 }
 0x181   : > { %1594 = vst.msk [vmem:[%s9990_s17 + $0x4] sm:$0xf] %vm1592_vm2, %v7798_v53  ;;  %v8457_v54 = vpop.f32.mrb[68].mxu0 }
 0x182   : > { %vm1214_vm6 = vcmp.ne.f32.partialorder %v8457_v54, %v8457_v54  ;;  %v969_v56 = vpop.f32.mrb[69].mxu0 }
 0x183   : > { %v10014_v57 = vsel %vm1214_vm6, 0.0, %v8457_v54  ;;  %vm1212_vm7 = vcmp.ne.f32.partialorder %v969_v56, %v969_v56  ;;  %v8458_v58 = vpop.f32.mrb[70].mxu0 }
 0x184   : > { %v7803_v36 = vpack.c.bf16 %v10014_v57, %v10014_v57  ;;  %v10018_v0 = vsel %vm1212_vm7, 0.0, %v969_v56  ;;  %vm1215_vm8 = vcmp.ne.f32.partialorder %v8458_v58, %v8458_v58  ;;  %v972_v1 = vpop.f32.mrb[71].mxu0 }
 0x185   : > { %v7801_v2 = vpack.c.bf16 %v10018_v0, %v10018_v0  ;;  %v10022_v3 = vsel %vm1215_vm8, 0.0, %v8458_v58  ;;  %vm1213_vm9 = vcmp.ne.f32.partialorder %v972_v1, %v972_v1 }
 0x186   : > { %1599 = vst.msk [vmem:[%s9990_s17 + $0x18] sm:$0xf] %vm1592_vm2, %v7803_v36  ;;  %v7804_v5 = vpack.c.bf16 %v10022_v3, %v10022_v3  ;;  %v10030_v6 = vsel %vm1213_vm9, 0.0, %v972_v1  ;;  %8748 = vmatmul.mubr.msk.bf16.gmra.mrb[176].mxu0 %vm437_vm0, %v9561_v59 }
 0x187   : > { %1597 = vst.msk [vmem:[%s9990_s17 + $0x10] sm:$0xf] %vm1592_vm2, %v7801_v2  ;;  %v7802_v13 = vpack.c.bf16 %v10030_v6, %v10030_v6  ;;  %8751 = vmatprep.mubr.msk.bf16.mxu0 %vm437_vm0, %v9565_v61 }
 0x188   : > { %1600 = vst.msk [vmem:[%s9990_s17 + $0x1c] sm:$0xf] %vm1592_vm2, %v7804_v5 }
 0x189   : > { %1598 = vst.msk [vmem:[%s9990_s17 + $0x14] sm:$0xf] %vm1592_vm2, %v7802_v13  ;;  %v8461_v16 = vpop.f32.mrb[72].mxu0 }
 0x18a   : > { %vm1218_vm10 = vcmp.ne.f32.partialorder %v8461_v16, %v8461_v16  ;;  %v985_v18 = vpop.f32.mrb[73].mxu0 }
 0x18b   : > { %v10049_v19 = vsel %vm1218_vm10, 0.0, %v8461_v16  ;;  %vm1216_vm11 = vcmp.ne.f32.partialorder %v985_v18, %v985_v18  ;;  %v8462_v21 = vpop.f32.mrb[74].mxu0 }
 0x18c   : > { %v7807_v29 = vpack.c.bf16 %v10049_v19, %v10049_v19  ;;  %v10053_v63 = vsel %vm1216_vm11, 0.0, %v985_v18  ;;  %vm1219_vm12 = vcmp.ne.f32.partialorder %v8462_v21, %v8462_v21  ;;  %v988_v31 = vpop.f32.mrb[75].mxu0 }
 0x18d   : > { %v7805_v32 = vpack.c.bf16 %v10053_v63, %v10053_v63  ;;  %v10057_v43 = vsel %vm1219_vm12, 0.0, %v8462_v21  ;;  %vm1217_vm13 = vcmp.ne.f32.partialorder %v988_v31, %v988_v31 }
 0x18e   : > { %1603 = vst.msk [vmem:[%s9990_s17 + $0x28] sm:$0xf] %vm1592_vm2, %v7807_v29  ;;  %v7808_v54 = vpack.c.bf16 %v10057_v43, %v10057_v43  ;;  %v10065_v56 = vsel %vm1217_vm13, 0.0, %v988_v31  ;;  %8752 = vmatmul.mubr.msk.bf16.gmra.mrb[180].mxu0 %vm437_vm0, %v9585_v7 }
 0x18f   : > { %1601 = vst.msk [vmem:[%s9990_s17 + $0x20] sm:$0xf] %vm1592_vm2, %v7805_v32  ;;  %v7806_v36 = vpack.c.bf16 %v10065_v56, %v10065_v56  ;;  %8755 = vmatprep.mubr.msk.bf16.mxu0 %vm437_vm0, %v9589_v10 }
 0x190   : > { %1604 = vst.msk [vmem:[%s9990_s17 + $0x2c] sm:$0xf] %vm1592_vm2, %v7808_v54 }
 0x191   : > { %1602 = vst.msk [vmem:[%s9990_s17 + $0x24] sm:$0xf] %vm1592_vm2, %v7806_v36  ;;  %v8465_v1 = vpop.f32.mrb[76].mxu0 }
 0x192   : > { %vm1222_vm14 = vcmp.ne.f32.partialorder %v8465_v1, %v8465_v1  ;;  %v1001_v2 = vpop.f32.mrb[77].mxu0 }
 0x193   : > { %v10081_v5 = vsel %vm1222_vm14, 0.0, %v8465_v1  ;;  %vm1220_vm15 = vcmp.ne.f32.partialorder %v1001_v2, %v1001_v2  ;;  %v8466_v13 = vpop.f32.mrb[78].mxu0 }
 0x194   : > { %12492 = vst [vmem:[#allocation6_spill] sm:$0xff] %v10081_v5  ;;  %v7811_v16 = vpack.c.bf16 %v10081_v5, %v10081_v5  ;;  %v10085_v17 = vsel %vm1220_vm15, 0.0, %v1001_v2  ;;  %vm1223_vm1 = vcmp.ne.f32.partialorder %v8466_v13, %v8466_v13  ;;  %v1004_v18 = vpop.f32.mrb[79].mxu0 }
 0x195   : > { %v7809_v21 = vpack.c.bf16 %v10085_v17, %v10085_v17  ;;  %v10089_v29 = vsel %vm1223_vm1, 0.0, %v8466_v13  ;;  %vm1221_vm3 = vcmp.ne.f32.partialorder %v1004_v18, %v1004_v18 }
 0x196   : > { %12493 = vst [vmem:[#allocation7_spill] sm:$0xff] %v10089_v29  ;;  %1607 = vst.msk [vmem:[%s9990_s17 + $0x38] sm:$0xf] %vm1592_vm2, %v7811_v16  ;;  %v7812_v32 = vpack.c.bf16 %v10089_v29, %v10089_v29  ;;  %v10097_v54 = vsel %vm1221_vm3, 0.0, %v1004_v18  ;;  %8756 = vmatmul.mubr.msk.bf16.gmra.mrb[184].mxu0 %vm437_vm0, %v9609_v25 }
 0x197   : > { %1605 = vst.msk [vmem:[%s9990_s17 + $0x30] sm:$0xf] %vm1592_vm2, %v7809_v21  ;;  %v7810_v1 = vpack.c.bf16 %v10097_v54, %v10097_v54  ;;  %8759 = vmatprep.mubr.msk.bf16.mxu0 %vm437_vm0, %v9613_v27 }
 0x198   : > { %1608 = vst.msk [vmem:[%s9990_s17 + $0x3c] sm:$0xf] %vm1592_vm2, %v7812_v32 }
 0x199   : > { %1606 = vst.msk [vmem:[%s9990_s17 + $0x34] sm:$0xf] %vm1592_vm2, %v7810_v1  ;;  %v8469_v2 = vpop.f32.mrb[80].mxu0 }
 0x19a   : > { %vm1226_vm4 = vcmp.ne.f32.partialorder %v8469_v2, %v8469_v2  ;;  %v1017_v13 = vpop.f32.mrb[81].mxu0 }
 0x19b   : > { %v10113_v16 = vsel %vm1226_vm4, 0.0, %v8469_v2  ;;  %vm1224_vm5 = vcmp.ne.f32.partialorder %v1017_v13, %v1017_v13  ;;  %v8470_v18 = vpop.f32.mrb[82].mxu0 }
 0x19c   : > { %12494 = vst [vmem:[#allocation8_spill] sm:$0xff] %v10113_v16  ;;  %v7815_v21 = vpack.c.bf16 %v10113_v16, %v10113_v16  ;;  %v10117_v31 = vsel %vm1224_vm5, 0.0, %v1017_v13  ;;  %vm1227_vm6 = vcmp.ne.f32.partialorder %v8470_v18, %v8470_v18  ;;  %v1020_v36 = vpop.f32.mrb[83].mxu0 }
 0x19d   : > { %12495 = vst [vmem:[#allocation9_spill] sm:$0xff] %v10117_v31  ;;  %v7813_v32 = vpack.c.bf16 %v10117_v31, %v10117_v31  ;;  %v10121_v1 = vsel %vm1227_vm6, 0.0, %v8470_v18  ;;  %vm1225_vm7 = vcmp.ne.f32.partialorder %v1020_v36, %v1020_v36 }
 0x19e   : > { %12496 = vst [vmem:[#allocation10_spill] sm:$0xff] %v10121_v1  ;;  %1611 = vst.msk [vmem:[%s9990_s17 + $0x48] sm:$0xf] %vm1592_vm2, %v7815_v21  ;;  %v7816_v53 = vpack.c.bf16 %v10121_v1, %v10121_v1  ;;  %v10129_v58 = vsel %vm1225_vm7, 0.0, %v1020_v36  ;;  %8760 = vmatmul.mubr.msk.bf16.gmra.mrb[188].mxu0 %vm437_vm0, %v9631_v40 }
 0x19f   : > { %12497 = vst [vmem:[#allocation11_spill] sm:$0xff] %v10129_v58  ;;  %1609 = vst.msk [vmem:[%s9990_s17 + $0x40] sm:$0xf] %vm1592_vm2, %v7813_v32  ;;  %v7814_v18 = vpack.c.bf16 %v10129_v58, %v10129_v58  ;;  %8763 = vmatprep.mubr.msk.bf16.mxu0 %vm437_vm0, %v9482_v20 }
 0x1a0   : > { %1612 = vst.msk [vmem:[%s9990_s17 + $0x4c] sm:$0xf] %vm1592_vm2, %v7816_v53 }
 0x1a1   : > { %1610 = vst.msk [vmem:[%s9990_s17 + $0x44] sm:$0xf] %vm1592_vm2, %v7814_v18  ;;  %v8473_v36 = vpop.f32.mrb[84].mxu0 }
 0x1a2   : > { %vm1230_vm8 = vcmp.ne.f32.partialorder %v8473_v36, %v8473_v36  ;;  %v1033_v21 = vpop.f32.mrb[85].mxu0 }
 0x1a3   : > { %v10145_v2 = vsel %vm1230_vm8, 0.0, %v8473_v36  ;;  %vm1228_vm9 = vcmp.ne.f32.partialorder %v1033_v21, %v1033_v21  ;;  %v8474_v32 = vpop.f32.mrb[86].mxu0 }
 0x1a4   : > { %12498 = vst [vmem:[#allocation12_spill] sm:$0xff] %v10145_v2  ;;  %v7819_v13 = vpack.c.bf16 %v10145_v2, %v10145_v2  ;;  %v10149_v4 = vsel %vm1228_vm9, 0.0, %v1033_v21  ;;  %vm1231_vm10 = vcmp.ne.f32.partialorder %v8474_v32, %v8474_v32  ;;  %v1036_v12 = vpop.f32.mrb[87].mxu0 }
 0x1a5   : > { %12499 = vst [vmem:[#allocation13_spill] sm:$0xff] %v10149_v4  ;;  %v7817_v53 = vpack.c.bf16 %v10149_v4, %v10149_v4  ;;  %v10153_v18 = vsel %vm1231_vm10, 0.0, %v8474_v32  ;;  %vm1229_vm11 = vcmp.ne.f32.partialorder %v1036_v12, %v1036_v12  ;;  %vm2449_vm10 = vcmask 261120  }
 0x1a6   : > { %12500 = vst [vmem:[#allocation14_spill] sm:$0xff] %v10153_v18  ;;  %1615 = vst.msk [vmem:[%s9990_s17 + $0x58] sm:$0xf] %vm1592_vm2, %v7819_v13  ;;  %v7820_v39 = vpack.c.bf16 %v10153_v18, %v10153_v18  ;;  %v10161_v46 = vsel %vm1229_vm11, 0.0, %v1036_v12  ;;  %8764 = vmatmul.mubr.msk.bf16.gmra.mrb[192].mxu0 %vm437_vm0, %v9509_v35  ;;  %v9266_v13 = vld [vmem:[%s12429_s1 + $0x70] sm:$0xff]  }
 0x1a7   : > { %12501 = vst [vmem:[#allocation15_spill] sm:$0xff] %v10161_v46  ;;  %1613 = vst.msk [vmem:[%s9990_s17 + $0x50] sm:$0xf] %vm1592_vm2, %v7817_v53  ;;  %v7818_v32 = vpack.c.bf16 %v10161_v46, %v10161_v46  ;;  %8767 = vmatprep.mubr.msk.bf16.mxu0 %vm437_vm0, %v9518_v38  ;;  %8867 = vmatprep.subr.bf16.mxu0 %v9266_v13 }
 0x1a8   : > { %1616 = vst.msk [vmem:[%s9990_s17 + $0x5c] sm:$0xf] %vm1592_vm2, %v7820_v39  ;;  %8868 = vmatpush3.bf16.msra.mxu0 %v9266_v13 }
 0x1a9   : > { %1614 = vst.msk [vmem:[%s9990_s17 + $0x54] sm:$0xf] %vm1592_vm2, %v7818_v32  ;;  %v8477_v12 = vpop.f32.mrb[88].mxu0 }
 0x1aa   : > { %vm1234_vm12 = vcmp.ne.f32.partialorder %v8477_v12, %v8477_v12  ;;  %v1049_v53 = vpop.f32.mrb[89].mxu0 }
 0x1ab   : > { %v10180_v36 = vsel %vm1234_vm12, 0.0, %v8477_v12  ;;  %vm1232_vm13 = vcmp.ne.f32.partialorder %v1049_v53, %v1049_v53  ;;  %v8478_v21 = vpop.f32.mrb[90].mxu0 }
 0x1ac   : > { %12502 = vst [vmem:[#allocation16_spill] sm:$0xff] %v10180_v36  ;;  %v7823_v2 = vpack.c.bf16 %v10180_v36, %v10180_v36  ;;  %v10184_v39 = vsel %vm1232_vm13, 0.0, %v1049_v53  ;;  %vm1235_vm14 = vcmp.ne.f32.partialorder %v8478_v21, %v8478_v21  ;;  %v1052_v32 = vpop.f32.mrb[91].mxu0 }
 0x1ad   : > { %12503 = vst [vmem:[#allocation17_spill] sm:$0xff] %v10184_v39  ;;  %v7821_v18 = vpack.c.bf16 %v10184_v39, %v10184_v39  ;;  %v10188_v4 = vsel %vm1235_vm14, 0.0, %v8478_v21  ;;  %vm1233_vm15 = vcmp.ne.f32.partialorder %v1052_v32, %v1052_v32 }
 0x1ae   : > { %12504 = vst [vmem:[#allocation18_spill] sm:$0xff] %v10188_v4  ;;  %1619 = vst.msk [vmem:[%s9990_s17 + $0x68] sm:$0xf] %vm1592_vm2, %v7823_v2  ;;  %v7824_v53 = vpack.c.bf16 %v10188_v4, %v10188_v4  ;;  %v10196_v46 = vsel %vm1233_vm15, 0.0, %v1052_v32  ;;  %8768 = vmatmul.mubr.msk.bf16.gmra.mrb[196].mxu0 %vm437_vm0, %v9539_v48 }
 0x1af   : > { %12505 = vst [vmem:[#allocation19_spill] sm:$0xff] %v10196_v46  ;;  %1617 = vst.msk [vmem:[%s9990_s17 + $0x60] sm:$0xf] %vm1592_vm2, %v7821_v18  ;;  %v7822_v13 = vpack.c.bf16 %v10196_v46, %v10196_v46  ;;  %8771 = vmatprep.mubr.msk.bf16.mxu0 %vm437_vm0, %v9543_v50 }
 0x1b0   : > { %1620 = vst.msk [vmem:[%s9990_s17 + $0x6c] sm:$0xf] %vm1592_vm2, %v7824_v53 }
 0x1b1   : > { %1618 = vst.msk [vmem:[%s9990_s17 + $0x64] sm:$0xf] %vm1592_vm2, %v7822_v13  ;;  %v8481_v2 = vpop.f32.mrb[92].mxu0 }
 0x1b2   : > { %vm1238_vm1 = vcmp.ne.f32.partialorder %v8481_v2, %v8481_v2  ;;  %v1065_v32 = vpop.f32.mrb[93].mxu0 }
 0x1b3   : > { %v10212_v12 = vsel %vm1238_vm1, 0.0, %v8481_v2  ;;  %vm1236_vm3 = vcmp.ne.f32.partialorder %v1065_v32, %v1065_v32  ;;  %v8482_v18 = vpop.f32.mrb[94].mxu0 }
 0x1b4   : > { %12506 = vst [vmem:[#allocation20_spill] sm:$0xff] %v10212_v12  ;;  %v7827_v21 = vpack.c.bf16 %v10212_v12, %v10212_v12  ;;  %v10216_v36 = vsel %vm1236_vm3, 0.0, %v1065_v32  ;;  %vm1239_vm4 = vcmp.ne.f32.partialorder %v8482_v18, %v8482_v18  ;;  %v1068_v4 = vpop.f32.mrb[95].mxu0 }
 0x1b5   : > { %12507 = vst [vmem:[#allocation21_spill] sm:$0xff] %v10216_v36  ;;  %v7825_v53 = vpack.c.bf16 %v10216_v36, %v10216_v36  ;;  %v10220_v13 = vsel %vm1239_vm4, 0.0, %v8482_v18  ;;  %vm1237_vm5 = vcmp.ne.f32.partialorder %v1068_v4, %v1068_v4 }
 0x1b6   : > { %12508 = vst [vmem:[#allocation22_spill] sm:$0xff] %v10220_v13  ;;  %1623 = vst.msk [vmem:[%s9990_s17 + $0x78] sm:$0xf] %vm1592_vm2, %v7827_v21  ;;  %v7828_v39 = vpack.c.bf16 %v10220_v13, %v10220_v13  ;;  %v10228_v46 = vsel %vm1237_vm5, 0.0, %v1068_v4  ;;  %8772 = vmatmul.mubr.msk.bf16.gmra.mrb[200].mxu0 %vm437_vm0, %v9563_v60 }
 0x1b7   : > { %12509 = vst [vmem:[#allocation23_spill] sm:$0xff] %v10228_v46  ;;  %1621 = vst.msk [vmem:[%s9990_s17 + $0x70] sm:$0xf] %vm1592_vm2, %v7825_v53  ;;  %v7826_v18 = vpack.c.bf16 %v10228_v46, %v10228_v46  ;;  %8775 = vmatprep.mubr.msk.bf16.mxu0 %vm437_vm0, %v9567_v62 }
 0x1b8   : > { %1624 = vst.msk [vmem:[%s9990_s17 + $0x7c] sm:$0xf] %vm1592_vm2, %v7828_v39 }
 0x1b9   : > { %1622 = vst.msk [vmem:[%s9990_s17 + $0x74] sm:$0xf] %vm1592_vm2, %v7826_v18  ;;  %v8525_v4 = vpop.f32.mrb[96].mxu0 }
 0x1ba   : > { %vm1985_vm6 = vcmp.ne.f32.partialorder %v8525_v4, %v8525_v4  ;;  %v1728_v21 = vpop.f32.mrb[97].mxu0 }
 0x1bb   : > { %v2049_v2 = vsel %vm1985_vm6, 0.0, %v8525_v4  ;;  %vm1983_vm7 = vcmp.ne.f32.partialorder %v1728_v21, %v1728_v21  ;;  %v8526_v53 = vpop.f32.mrb[98].mxu0 }
 0x1bc   : > { %v7863_v12 = vpack.c.bf16 %v2049_v2, %v2049_v2  ;;  %v2047_v32 = vsel %vm1983_vm7, 0.0, %v1728_v21  ;;  %vm1986_vm8 = vcmp.ne.f32.partialorder %v8526_v53, %v8526_v53  ;;  %v1731_v13 = vpop.f32.mrb[99].mxu0 }
 0x1bd   : > { %v7861_v36 = vpack.c.bf16 %v2047_v32, %v2047_v32  ;;  %v2050_v46 = vsel %vm1986_vm8, 0.0, %v8526_v53  ;;  %vm1984_vm9 = vcmp.ne.f32.partialorder %v1731_v13, %v1731_v13 }
 0x1be   : > { %7235 = vst.msk [vmem:[%s9990_s17 + $0x108] sm:$0xf] %vm1592_vm2, %v7863_v12  ;;  %v2112_v39 = vpack.c.bf16 %v2050_v46, %v2049_v2  ;;  %v7864_v18 = vpack.c.bf16 %v2050_v46, %v2050_v46  ;;  %v2048_v16 = vsel %vm1984_vm9, 0.0, %v1731_v13  ;;  %8776 = vmatmul.mubr.msk.bf16.gmra.mrb[204].mxu0 %vm437_vm0, %v9587_v9  ;;  %v9264_v12 = vld [vmem:[%s12432_s4 + $0x8] sm:$0xff]   ;;  %v9268_v2 = vld [vmem:[%s12429_s1 + $0x78] sm:$0xff]  }
 0x1bf   : > { %7233 = vst.msk [vmem:[%s9990_s17 + $0x100] sm:$0xf] %vm1592_vm2, %v7861_v36  ;;  %v2111_v4 = vpack.c.bf16 %v2048_v16, %v2047_v32  ;;  %v7862_v21 = vpack.c.bf16 %v2048_v16, %v2048_v16  ;;  %8779 = vmatprep.mubr.msk.bf16.mxu0 %vm437_vm0, %v9591_v11  ;;  %8869 = vmatprep.subr.bf16.mxu0 %v9268_v2 }
 0x1c0   : > { %7236 = vst.msk [vmem:[%s9990_s17 + $0x10c] sm:$0xf] %vm1592_vm2, %v7864_v18  ;;  %8870 = vmatpush3.bf16.msra.mxu0 %v9268_v2 }
 0x1c1   : > { %7234 = vst.msk [vmem:[%s9990_s17 + $0x104] sm:$0xf] %vm1592_vm2, %v7862_v21  ;;  %v8529_v46 = vpop.f32.mrb[100].mxu0  ;;  %8591 = vmatprep.mubr.msk.bf16.mxu1 %vm2449_vm10, %v2111_v4 }
 0x1c2   : > { %vm1989_vm11 = vcmp.ne.f32.partialorder %v8529_v46, %v8529_v46  ;;  %v1744_v13 = vpop.f32.mrb[101].mxu0  ;;  %8592 = vmatmul.mubr.msk.bf16.vlgmr.msra.gmra.mrb[32].mxu1 %vm2449_vm10, %v2112_v39  ;;  %v9267_v39 = vld [vmem:[%s12432_s4 + $0x20] sm:$0xff]  }
 0x1c3   : > { %v2053_v16 = vsel %vm1989_vm11, 0.0, %v8529_v46  ;;  %vm1987_vm12 = vcmp.ne.f32.partialorder %v1744_v13, %v1744_v13  ;;  %v8530_v36 = vpop.f32.mrb[102].mxu0  ;;  %8656 = vmatpush3.bf16.msra.mxu1 %v9898_v44 }
 0x1c4   : > { %v7867_v32 = vpack.c.bf16 %v2053_v16, %v2053_v16  ;;  %v2051_v53 = vsel %vm1987_vm12, 0.0, %v1744_v13  ;;  %vm1990_vm13 = vcmp.ne.f32.partialorder %v8530_v36, %v8530_v36  ;;  %v1747_v18 = vpop.f32.mrb[103].mxu0  ;;  %8657 = vmatprep.subr.bf16.mxu1 %v9264_v12 }
 0x1c5   : > { %v7865_v4 = vpack.c.bf16 %v2051_v53, %v2051_v53  ;;  %v2054_v21 = vsel %vm1990_vm13, 0.0, %v8530_v36  ;;  %vm1988_vm14 = vcmp.ne.f32.partialorder %v1747_v18, %v1747_v18 }
 0x1c6   : > { %7239 = vst.msk [vmem:[%s9990_s17 + $0x118] sm:$0xf] %vm1592_vm2, %v7867_v32  ;;  %v2114_v44 = vpack.c.bf16 %v2054_v21, %v2053_v16  ;;  %v7868_v46 = vpack.c.bf16 %v2054_v21, %v2054_v21  ;;  %v2052_v1 = vsel %vm1988_vm14, 0.0, %v1747_v18  ;;  %8780 = vmatmul.mubr.msk.bf16.gmra.mrb[208].mxu0 %vm437_vm0, %v9611_v26 }
 0x1c7   : > { %7237 = vst.msk [vmem:[%s9990_s17 + $0x110] sm:$0xf] %vm1592_vm2, %v7865_v4  ;;  %v2113_v13 = vpack.c.bf16 %v2052_v1, %v2051_v53  ;;  %v7866_v31 = vpack.c.bf16 %v2052_v1, %v2052_v1  ;;  %8658 = vmatpush3.bf16.msra.mxu1 %v9264_v12  ;;  %8783 = vmatprep.mubr.msk.bf16.mxu0 %vm437_vm0, %v9615_v28  ;;  %v8485_v12 = vpop.f32.mrb[0].mxu1 }
 0x1c8   : > { %7240 = vst.msk [vmem:[%s9990_s17 + $0x11c] sm:$0xf] %vm1592_vm2, %v7868_v46  ;;  %8795 = vmatprep.subr.bf16.mxu1 %v9267_v39  ;;  %vm1242_vm4 = vcmp.ne.f32.partialorder %v8485_v12, %v8485_v12 }
 0x1c9   : > { %7238 = vst.msk [vmem:[%s9990_s17 + $0x114] sm:$0xf] %vm1592_vm2, %v7866_v31  ;;  %v8533_v16 = vpop.f32.mrb[104].mxu0  ;;  %8595 = vmatprep.mubr.msk.bf16.mxu1 %vm2449_vm10, %v2113_v13  ;;  %v10282_v4 = vsel %vm1242_vm4, 0.0, %v8485_v12  ;;  %v1081_v12 = vpop.f32.mrb[1].mxu1 }
 0x1ca   : > { %vm1993_vm15 = vcmp.ne.f32.partialorder %v8533_v16, %v8533_v16  ;;  %v1760_v36 = vpop.f32.mrb[105].mxu0  ;;  %8596 = vmatmul.mubr.msk.bf16.gmra.mrb[36].mxu1 %vm2449_vm10, %v2114_v44  ;;  %12510 = vst [vmem:[#allocation24_spill] sm:$0xff] %v10282_v4  ;;  %v7831_v13 = vpack.c.bf16 %v10282_v4, %v10282_v4  ;;  %vm1240_vm8 = vcmp.ne.f32.partialorder %v1081_v12, %v1081_v12 }
 0x1cb   : > { %v2057_v32 = vsel %vm1993_vm15, 0.0, %v8533_v16  ;;  %vm1991_vm1 = vcmp.ne.f32.partialorder %v1760_v36, %v1760_v36  ;;  %v8534_v1 = vpop.f32.mrb[106].mxu0 }
 0x1cc   : > { %v7871_v2 = vpack.c.bf16 %v2057_v32, %v2057_v32  ;;  %v2055_v53 = vsel %vm1991_vm1, 0.0, %v1760_v36  ;;  %vm1994_vm3 = vcmp.ne.f32.partialorder %v8534_v1, %v8534_v1  ;;  %v1763_v18 = vpop.f32.mrb[107].mxu0  ;;  %1627 = vst.msk [vmem:[%s9990_s17 + $0x88] sm:$0xf] %vm1592_vm2, %v7831_v13 }
 0x1cd   : > { %v7869_v31 = vpack.c.bf16 %v2055_v53, %v2055_v53  ;;  %v2058_v39 = vsel %vm1994_vm3, 0.0, %v8534_v1  ;;  %vm1992_vm5 = vcmp.ne.f32.partialorder %v1763_v18, %v1763_v18 }
 0x1ce   : > { %7243 = vst.msk [vmem:[%s9990_s17 + $0x128] sm:$0xf] %vm1592_vm2, %v7871_v2  ;;  %v2116_v21 = vpack.c.bf16 %v2058_v39, %v2057_v32  ;;  %v7872_v44 = vpack.c.bf16 %v2058_v39, %v2058_v39  ;;  %v2056_v46 = vsel %vm1992_vm5, 0.0, %v1763_v18  ;;  %8784 = vmatmul.mubr.msk.bf16.gmra.mrb[212].mxu0 %vm437_vm0, %v9633_v41  ;;  %v8486_v18 = vpop.f32.mrb[2].mxu1 }
 0x1cf   : > { %7241 = vst.msk [vmem:[%s9990_s17 + $0x120] sm:$0xf] %vm1592_vm2, %v7869_v31  ;;  %v2115_v16 = vpack.c.bf16 %v2056_v46, %v2055_v53  ;;  %v7870_v36 = vpack.c.bf16 %v2056_v46, %v2056_v46  ;;  %8787 = vmatprep.mubr.msk.bf16.mxu0 %vm437_vm0, %v9635_v42  ;;  %v10302_v46 = vsel %vm1240_vm8, 0.0, %v1081_v12  ;;  %v1084_v13 = vpop.f32.mrb[3].mxu1  ;;  %vm1243_vm12 = vcmp.ne.f32.partialorder %v8486_v18, %v8486_v18 }
 0x1d0   : > { %7244 = vst.msk [vmem:[%s9990_s17 + $0x12c] sm:$0xf] %vm1592_vm2, %v7872_v44  ;;  %12511 = vst [vmem:[#allocation25_spill] sm:$0xff] %v10302_v46  ;;  %v10314_v29 = vsel %vm1243_vm12, 0.0, %v8486_v18  ;;  %vm1241_vm13 = vcmp.ne.f32.partialorder %v1084_v13, %v1084_v13 }
 0x1d1   : > { %7242 = vst.msk [vmem:[%s9990_s17 + $0x124] sm:$0xf] %vm1592_vm2, %v7870_v36  ;;  %v8537_v32 = vpop.f32.mrb[108].mxu0  ;;  %8599 = vmatprep.mubr.msk.bf16.mxu1 %vm2449_vm10, %v2115_v16  ;;  %12512 = vst [vmem:[#allocation26_spill] sm:$0xff] %v10314_v29 }
 0x1d2   : > { %vm1997_vm6 = vcmp.ne.f32.partialorder %v8537_v32, %v8537_v32  ;;  %v1776_v1 = vpop.f32.mrb[109].mxu0  ;;  %8600 = vmatmul.mubr.msk.bf16.gmra.mrb[40].mxu1 %vm2449_vm10, %v2116_v21  ;;  %v7829_v21 = vpack.c.bf16 %v10302_v46, %v10302_v46 }
 0x1d3   : > { %v2061_v2 = vsel %vm1997_vm6, 0.0, %v8537_v32  ;;  %vm1995_vm7 = vcmp.ne.f32.partialorder %v1776_v1, %v1776_v1  ;;  %v8538_v53 = vpop.f32.mrb[110].mxu0  ;;  %v8489_v32 = vpop.f32.mrb[4].mxu1 }
 0x1d4   : > { %v7875_v31 = vpack.c.bf16 %v2061_v2, %v2061_v2  ;;  %v2059_v39 = vsel %vm1995_vm7, 0.0, %v1776_v1  ;;  %vm1998_vm9 = vcmp.ne.f32.partialorder %v8538_v53, %v8538_v53  ;;  %v1779_v44 = vpop.f32.mrb[111].mxu0  ;;  %1625 = vst.msk [vmem:[%s9990_s17 + $0x80] sm:$0xf] %vm1592_vm2, %v7829_v21  ;;  %vm1246_vm14 = vcmp.ne.f32.partialorder %v8489_v32, %v8489_v32  ;;  %v1097_v21 = vpop.f32.mrb[5].mxu1 }
 0x1d5   : > { %v7873_v16 = vpack.c.bf16 %v2059_v39, %v2059_v39  ;;  %v2062_v36 = vsel %vm1998_vm9, 0.0, %v8538_v53  ;;  %vm1996_vm11 = vcmp.ne.f32.partialorder %v1779_v44, %v1779_v44  ;;  %vm1244_vm3 = vcmp.ne.f32.partialorder %v1097_v21, %v1097_v21 }
 0x1d6   : > { %7247 = vst.msk [vmem:[%s9990_s17 + $0x138] sm:$0xf] %vm1592_vm2, %v7875_v31  ;;  %v2118_v58 = vpack.c.bf16 %v2062_v36, %v2061_v2  ;;  %v7876_v5 = vpack.c.bf16 %v2062_v36, %v2062_v36  ;;  %v2060_v1 = vsel %vm1996_vm11, 0.0, %v1779_v44  ;;  %8788 = vmatmul.mubr.msk.bf16.gmra.mrb[216].mxu0 %vm437_vm0, %v9649_v51  ;;  %v7832_v31 = vpack.c.bf16 %v10314_v29, %v10314_v29 }
 0x1d7   : > { %7245 = vst.msk [vmem:[%s9990_s17 + $0x130] sm:$0xf] %vm1592_vm2, %v7873_v16  ;;  %v2117_v12 = vpack.c.bf16 %v2060_v1, %v2059_v39  ;;  %v7874_v53 = vpack.c.bf16 %v2060_v1, %v2060_v1  ;;  %8791 = vmatprep.mubr.msk.bf16.mxu0 %vm437_vm0, %v9651_v52  ;;  %v10324_v44 = vsel %vm1241_vm13, 0.0, %v1084_v13  ;;  %v10333_v16 = vsel %vm1246_vm14, 0.0, %v8489_v32  ;;  %v8490_v32 = vpop.f32.mrb[6].mxu1 }
 0x1d8   : > { %7248 = vst.msk [vmem:[%s9990_s17 + $0x13c] sm:$0xf] %vm1592_vm2, %v7876_v5  ;;  %12513 = vst [vmem:[#allocation27_spill] sm:$0xff] %v10324_v44  ;;  %v7830_v5 = vpack.c.bf16 %v10324_v44, %v10324_v44  ;;  %v7835_v13 = vpack.c.bf16 %v10333_v16, %v10333_v16  ;;  %vm1247_vm6 = vcmp.ne.f32.partialorder %v8490_v32, %v8490_v32 }
 0x1d9   : > { %7246 = vst.msk [vmem:[%s9990_s17 + $0x134] sm:$0xf] %vm1592_vm2, %v7874_v53  ;;  %v8541_v18 = vpop.f32.mrb[112].mxu0  ;;  %8603 = vmatprep.mubr.msk.bf16.mxu1 %vm2449_vm10, %v2117_v12  ;;  %12514 = vst [vmem:[#allocation28_spill] sm:$0xff] %v10333_v16 }
 0x1da   : > { %vm2001_vm15 = vcmp.ne.f32.partialorder %v8541_v18, %v8541_v18  ;;  %v1792_v36 = vpop.f32.mrb[113].mxu0  ;;  %8604 = vmatmul.mubr.msk.bf16.gmra.mrb[44].mxu1 %vm2449_vm10, %v2118_v58  ;;  %1628 = vst.msk [vmem:[%s9990_s17 + $0x8c] sm:$0xf] %vm1592_vm2, %v7832_v31  ;;  %1626 = vst.msk [vmem:[%s9990_s17 + $0x84] sm:$0xf] %vm1592_vm2, %v7830_v5  ;;  %v10344_v58 = vsel %vm1244_vm3, 0.0, %v1097_v21 }
 0x1db   : > { %v2065_v1 = vsel %vm2001_vm15, 0.0, %v8541_v18  ;;  %vm1999_vm1 = vcmp.ne.f32.partialorder %v1792_v36, %v1792_v36  ;;  %v8542_v12 = vpop.f32.mrb[114].mxu0  ;;  %1631 = vst.msk [vmem:[%s9990_s17 + $0x98] sm:$0xf] %vm1592_vm2, %v7835_v13  ;;  %12515 = vst [vmem:[#allocation29_spill] sm:$0xff] %v10344_v58  ;;  %v1100_v31 = vpop.f32.mrb[7].mxu1  ;;  %v7833_v5 = vpack.c.bf16 %v10344_v58, %v10344_v58 }
 0x1dc   : > { %v7879_v53 = vpack.c.bf16 %v2065_v1, %v2065_v1  ;;  %v2063_v2 = vsel %vm1999_vm1, 0.0, %v1792_v36  ;;  %vm2002_vm4 = vcmp.ne.f32.partialorder %v8542_v12, %v8542_v12  ;;  %v1795_v39 = vpop.f32.mrb[115].mxu0  ;;  %v8493_v29 = vpop.f32.mrb[8].mxu1  ;;  %vm1245_vm7 = vcmp.ne.f32.partialorder %v1100_v31, %v1100_v31 }
 0x1dd   : > { %v7877_v4 = vpack.c.bf16 %v2063_v2, %v2063_v2  ;;  %v2066_v18 = vsel %vm2002_vm4, 0.0, %v8542_v12  ;;  %vm2000_vm5 = vcmp.ne.f32.partialorder %v1795_v39, %v1795_v39  ;;  %1629 = vst.msk [vmem:[%s9990_s17 + $0x90] sm:$0xf] %vm1592_vm2, %v7833_v5  ;;  %v10356_v12 = vsel %vm1247_vm6, 0.0, %v8490_v32 }
 0x1de   : > { %7251 = vst.msk [vmem:[%s9990_s17 + $0x148] sm:$0xf] %vm1592_vm2, %v7879_v53  ;;  %v2120_v36 = vpack.c.bf16 %v2066_v18, %v2065_v1  ;;  %v7880_v46 = vpack.c.bf16 %v2066_v18, %v2066_v18  ;;  %v2064_v44 = vsel %vm2000_vm5, 0.0, %v1795_v39  ;;  %8792 = vmatmul.mubr.msk.bf16.gmra.mrb[220].mxu0 %vm437_vm0, %v9663_v55  ;;  %12516 = vst [vmem:[#allocation30_spill] sm:$0xff] %v10356_v12 }
 0x1df   : > { %7249 = vst.msk [vmem:[%s9990_s17 + $0x140] sm:$0xf] %vm1592_vm2, %v7877_v4  ;;  %v2119_v13 = vpack.c.bf16 %v2064_v44, %v2063_v2  ;;  %v7878_v21 = vpack.c.bf16 %v2064_v44, %v2064_v44  ;;  %8871 = vmatprep.mubr.msk.bf16.mxu0 %vm437_vm0, %v9459_v8  ;;  %v7836_v1 = vpack.c.bf16 %v10356_v12, %v10356_v12  ;;  %v10366_v4 = vsel %vm1245_vm7, 0.0, %v1100_v31  ;;  %v1113_v31 = vpop.f32.mrb[9].mxu1 }
 0x1e0   : > { %7252 = vst.msk [vmem:[%s9990_s17 + $0x14c] sm:$0xf] %vm1592_vm2, %v7880_v46  ;;  %vm1250_vm8 = vcmp.ne.f32.partialorder %v8493_v29, %v8493_v29  ;;  %v7834_v46 = vpack.c.bf16 %v10366_v4, %v10366_v4  ;;  %vm1248_vm12 = vcmp.ne.f32.partialorder %v1113_v31, %v1113_v31 }
 0x1e1   : > { %7250 = vst.msk [vmem:[%s9990_s17 + $0x144] sm:$0xf] %vm1592_vm2, %v7878_v21  ;;  %v8545_v2 = vpop.f32.mrb[116].mxu0  ;;  %8607 = vmatprep.mubr.msk.bf16.mxu1 %vm2449_vm10, %v2119_v13  ;;  %v10375_v44 = vsel %vm1250_vm8, 0.0, %v8493_v29  ;;  %1632 = vst.msk [vmem:[%s9990_s17 + $0x9c] sm:$0xf] %vm1592_vm2, %v7836_v1 }
 0x1e2   : > { %12517 = vst [vmem:[#allocation31_spill] sm:$0xff] %v10375_v44  ;;  %vm2005_vm9 = vcmp.ne.f32.partialorder %v8545_v2, %v8545_v2  ;;  %v1808_v32 = vpop.f32.mrb[117].mxu0  ;;  %8608 = vmatmul.mubr.msk.bf16.gmra.mrb[48].mxu1 %vm2449_vm10, %v2120_v36  ;;  %v7839_v53 = vpack.c.bf16 %v10375_v44, %v10375_v44  ;;  %1630 = vst.msk [vmem:[%s9990_s17 + $0x94] sm:$0xf] %vm1592_vm2, %v7834_v46  ;;  %v8494_v29 = vpop.f32.mrb[10].mxu1  ;;  %v10386_v36 = vsel %vm1248_vm12, 0.0, %v1113_v31 }
 0x1e3   : > { %v2069_v18 = vsel %vm2005_vm9, 0.0, %v8545_v2  ;;  %vm2003_vm11 = vcmp.ne.f32.partialorder %v1808_v32, %v1808_v32  ;;  %v8546_v5 = vpop.f32.mrb[118].mxu0  ;;  %v1116_v1 = vpop.f32.mrb[11].mxu1  ;;  %v7837_v46 = vpack.c.bf16 %v10386_v36, %v10386_v36  ;;  %vm1251_vm15 = vcmp.ne.f32.partialorder %v8494_v29, %v8494_v29 }
 0x1e4   : > { %v7883_v13 = vpack.c.bf16 %v2069_v18, %v2069_v18  ;;  %v2067_v21 = vsel %vm2003_vm11, 0.0, %v1808_v32  ;;  %vm2006_vm13 = vcmp.ne.f32.partialorder %v8546_v5, %v8546_v5  ;;  %v1811_v39 = vpop.f32.mrb[119].mxu0  ;;  %1635 = vst.msk [vmem:[%s9990_s17 + $0xa8] sm:$0xf] %vm1592_vm2, %v7839_v53  ;;  %v8497_v16 = vpop.f32.mrb[12].mxu1  ;;  %vm1249_vm1 = vcmp.ne.f32.partialorder %v1116_v1, %v1116_v1 }
 0x1e5   : > { %v7881_v8 = vpack.c.bf16 %v2067_v21, %v2067_v21  ;;  %v2070_v2 = vsel %vm2006_vm13, 0.0, %v8546_v5  ;;  %vm2004_vm14 = vcmp.ne.f32.partialorder %v1811_v39, %v1811_v39  ;;  %1633 = vst.msk [vmem:[%s9990_s17 + $0xa0] sm:$0xf] %vm1592_vm2, %v7837_v46  ;;  %v10398_v5 = vsel %vm1251_vm15, 0.0, %v8494_v29 }
 0x1e6   : > { %7255 = vst.msk [vmem:[%s9990_s17 + $0x158] sm:$0xf] %vm1592_vm2, %v7883_v13  ;;  %v2122_v32 = vpack.c.bf16 %v2070_v2, %v2069_v18  ;;  %v7884_v12 = vpack.c.bf16 %v2070_v2, %v2070_v2  ;;  %v2068_v58 = vsel %vm2004_vm14, 0.0, %v1811_v39  ;;  %8872 = vmatmul.mubr.msk.bf16.vlgmr.msra.gmra.mrb[224].mxu0 %vm437_vm0, %v9470_v14  ;;  %12518 = vst [vmem:[#allocation32_spill] sm:$0xff] %v10398_v5 }
 0x1e7   : > { %7253 = vst.msk [vmem:[%s9990_s17 + $0x150] sm:$0xf] %vm1592_vm2, %v7881_v8  ;;  %v2121_v53 = vpack.c.bf16 %v2068_v58, %v2067_v21  ;;  %v7882_v31 = vpack.c.bf16 %v2068_v58, %v2068_v58  ;;  %8875 = vmatprep.mubr.msk.bf16.mxu0 %vm437_vm0, %v9472_v15  ;;  %v7840_v14 = vpack.c.bf16 %v10398_v5, %v10398_v5  ;;  %v10408_v8 = vsel %vm1249_vm1, 0.0, %v1116_v1  ;;  %v1129_v21 = vpop.f32.mrb[13].mxu1 }
 0x1e8   : > { %7256 = vst.msk [vmem:[%s9990_s17 + $0x15c] sm:$0xf] %vm1592_vm2, %v7884_v12  ;;  %vm1254_vm3 = vcmp.ne.f32.partialorder %v8497_v16, %v8497_v16  ;;  %v7838_v12 = vpack.c.bf16 %v10408_v8, %v10408_v8  ;;  %vm1252_vm6 = vcmp.ne.f32.partialorder %v1129_v21, %v1129_v21 }
 0x1e9   : > { %7254 = vst.msk [vmem:[%s9990_s17 + $0x154] sm:$0xf] %vm1592_vm2, %v7882_v31  ;;  %v8549_v58 = vpop.f32.mrb[120].mxu0  ;;  %8611 = vmatprep.mubr.msk.bf16.mxu1 %vm2449_vm10, %v2121_v53  ;;  %v10417_v18 = vsel %vm1254_vm3, 0.0, %v8497_v16  ;;  %1636 = vst.msk [vmem:[%s9990_s17 + $0xac] sm:$0xf] %vm1592_vm2, %v7840_v14 }
 0x1ea   : > { %12519 = vst [vmem:[#allocation33_spill] sm:$0xff] %v10417_v18  ;;  %vm2009_vm4 = vcmp.ne.f32.partialorder %v8549_v58, %v8549_v58  ;;  %v1824_v29 = vpop.f32.mrb[121].mxu0  ;;  %8612 = vmatmul.mubr.msk.bf16.gmra.mrb[52].mxu1 %vm2449_vm10, %v2122_v32  ;;  %v7843_v13 = vpack.c.bf16 %v10417_v18, %v10417_v18  ;;  %1634 = vst.msk [vmem:[%s9990_s17 + $0xa4] sm:$0xf] %vm1592_vm2, %v7838_v12  ;;  %v8498_v16 = vpop.f32.mrb[14].mxu1  ;;  %v10428_v32 = vsel %vm1252_vm6, 0.0, %v1129_v21 }
 0x1eb   : > { %v2073_v1 = vsel %vm2009_vm4, 0.0, %v8549_v58  ;;  %vm2007_vm5 = vcmp.ne.f32.partialorder %v1824_v29, %v1824_v29  ;;  %v8550_v2 = vpop.f32.mrb[122].mxu0  ;;  %v1132_v14 = vpop.f32.mrb[15].mxu1  ;;  %v7841_v12 = vpack.c.bf16 %v10428_v32, %v10428_v32  ;;  %vm1255_vm9 = vcmp.ne.f32.partialorder %v8498_v16, %v8498_v16 }
 0x1ec   : > { %v7887_v46 = vpack.c.bf16 %v2073_v1, %v2073_v1  ;;  %v2071_v53 = vsel %vm2007_vm5, 0.0, %v1824_v29  ;;  %vm2010_vm7 = vcmp.ne.f32.partialorder %v8550_v2, %v8550_v2  ;;  %v1827_v31 = vpop.f32.mrb[123].mxu0  ;;  %1639 = vst.msk [vmem:[%s9990_s17 + $0xb8] sm:$0xf] %vm1592_vm2, %v7843_v13  ;;  %v8501_v15 = vpop.f32.mrb[16].mxu1  ;;  %vm1253_vm11 = vcmp.ne.f32.partialorder %v1132_v14, %v1132_v14 }
 0x1ed   : > { %v7885_v39 = vpack.c.bf16 %v2071_v53, %v2071_v53  ;;  %v2074_v58 = vsel %vm2010_vm7, 0.0, %v8550_v2  ;;  %vm2008_vm8 = vcmp.ne.f32.partialorder %v1827_v31, %v1827_v31  ;;  %1637 = vst.msk [vmem:[%s9990_s17 + $0xb0] sm:$0xf] %vm1592_vm2, %v7841_v12  ;;  %v10440_v2 = vsel %vm1255_vm9, 0.0, %v8498_v16 }
 0x1ee   : > { %7259 = vst.msk [vmem:[%s9990_s17 + $0x168] sm:$0xf] %vm1592_vm2, %v7887_v46  ;;  %v2124_v29 = vpack.c.bf16 %v2074_v58, %v2073_v1  ;;  %v7888_v44 = vpack.c.bf16 %v2074_v58, %v2074_v58  ;;  %v2072_v5 = vsel %vm2008_vm8, 0.0, %v1827_v31  ;;  %8876 = vmatmul.mubr.msk.bf16.gmra.mrb[228].mxu0 %vm437_vm0, %v9488_v23  ;;  %12520 = vst [vmem:[#allocation34_spill] sm:$0xff] %v10440_v2  ;;  %v1145_v31 = vpop.f32.mrb[17].mxu1 }
 0x1ef   : > { %7257 = vst.msk [vmem:[%s9990_s17 + $0x160] sm:$0xf] %vm1592_vm2, %v7885_v39  ;;  %v2123_v13 = vpack.c.bf16 %v2072_v5, %v2071_v53  ;;  %v7886_v21 = vpack.c.bf16 %v2072_v5, %v2072_v5  ;;  %8879 = vmatprep.mubr.msk.bf16.mxu0 %vm437_vm0, %v9490_v24  ;;  %v7844_v23 = vpack.c.bf16 %v10440_v2, %v10440_v2  ;;  %v10450_v39 = vsel %vm1253_vm11, 0.0, %v1132_v14 }
 0x1f0   : > { %7260 = vst.msk [vmem:[%s9990_s17 + $0x16c] sm:$0xf] %vm1592_vm2, %v7888_v44  ;;  %vm1258_vm12 = vcmp.ne.f32.partialorder %v8501_v15, %v8501_v15  ;;  %v7842_v44 = vpack.c.bf16 %v10450_v39, %v10450_v39  ;;  %vm1256_vm15 = vcmp.ne.f32.partialorder %v1145_v31, %v1145_v31 }
 0x1f1   : > { %7258 = vst.msk [vmem:[%s9990_s17 + $0x164] sm:$0xf] %vm1592_vm2, %v7886_v21  ;;  %v8553_v5 = vpop.f32.mrb[124].mxu0  ;;  %8615 = vmatprep.mubr.msk.bf16.mxu1 %vm2449_vm10, %v2123_v13  ;;  %v10459_v16 = vsel %vm1258_vm12, 0.0, %v8501_v15  ;;  %1640 = vst.msk [vmem:[%s9990_s17 + $0xbc] sm:$0xf] %vm1592_vm2, %v7844_v23 }
 0x1f2   : > { %12521 = vst [vmem:[#allocation35_spill] sm:$0xff] %v10459_v16  ;;  %vm2013_vm13 = vcmp.ne.f32.partialorder %v8553_v5, %v8553_v5  ;;  %v1840_v46 = vpop.f32.mrb[125].mxu0  ;;  %8616 = vmatmul.mubr.msk.bf16.gmra.mrb[56].mxu1 %vm2449_vm10, %v2124_v29  ;;  %v7847_v53 = vpack.c.bf16 %v10459_v16, %v10459_v16  ;;  %1638 = vst.msk [vmem:[%s9990_s17 + $0xb4] sm:$0xf] %vm1592_vm2, %v7842_v44  ;;  %v8502_v15 = vpop.f32.mrb[18].mxu1  ;;  %v10470_v29 = vsel %vm1256_vm15, 0.0, %v1145_v31 }
 0x1f3   : > { %v2077_v14 = vsel %vm2013_vm13, 0.0, %v8553_v5  ;;  %vm2011_vm14 = vcmp.ne.f32.partialorder %v1840_v46, %v1840_v46  ;;  %v8554_v58 = vpop.f32.mrb[126].mxu0  ;;  %v1148_v23 = vpop.f32.mrb[19].mxu1  ;;  %v7845_v44 = vpack.c.bf16 %v10470_v29, %v10470_v29  ;;  %vm1259_vm4 = vcmp.ne.f32.partialorder %v8502_v15, %v8502_v15 }
 0x1f4   : > { %v7891_v12 = vpack.c.bf16 %v2077_v14, %v2077_v14  ;;  %v2075_v13 = vsel %vm2011_vm14, 0.0, %v1840_v46  ;;  %vm2014_vm1 = vcmp.ne.f32.partialorder %v8554_v58, %v8554_v58  ;;  %v1843_v21 = vpop.f32.mrb[127].mxu0  ;;  %1643 = vst.msk [vmem:[%s9990_s17 + $0xc8] sm:$0xf] %vm1592_vm2, %v7847_v53  ;;  %v8505_v24 = vpop.f32.mrb[20].mxu1  ;;  %vm1257_vm5 = vcmp.ne.f32.partialorder %v1148_v23, %v1148_v23 }
 0x1f5   : > { %v7889_v1 = vpack.c.bf16 %v2075_v13, %v2075_v13  ;;  %v2078_v5 = vsel %vm2014_vm1, 0.0, %v8554_v58  ;;  %vm2012_vm3 = vcmp.ne.f32.partialorder %v1843_v21, %v1843_v21  ;;  %1641 = vst.msk [vmem:[%s9990_s17 + $0xc0] sm:$0xf] %vm1592_vm2, %v7845_v44  ;;  %v10482_v58 = vsel %vm1259_vm4, 0.0, %v8502_v15 }
 0x1f6   : > { %7263 = vst.msk [vmem:[%s9990_s17 + $0x178] sm:$0xf] %vm1592_vm2, %v7891_v12  ;;  %v2126_v46 = vpack.c.bf16 %v2078_v5, %v2077_v14  ;;  %v7892_v18 = vpack.c.bf16 %v2078_v5, %v2078_v5  ;;  %v2076_v2 = vsel %vm2012_vm3, 0.0, %v1843_v21  ;;  %8880 = vmatmul.mubr.msk.bf16.gmra.mrb[232].mxu0 %vm437_vm0, %v9507_v34  ;;  %12522 = vst [vmem:[#allocation36_spill] sm:$0xff] %v10482_v58  ;;  %v1161_v21 = vpop.f32.mrb[21].mxu1 }
 0x1f7   : > { %7261 = vst.msk [vmem:[%s9990_s17 + $0x170] sm:$0xf] %vm1592_vm2, %v7889_v1  ;;  %v2125_v53 = vpack.c.bf16 %v2076_v2, %v2075_v13  ;;  %v7890_v31 = vpack.c.bf16 %v2076_v2, %v2076_v2  ;;  %8883 = vmatprep.mubr.msk.bf16.mxu0 %vm437_vm0, %v9516_v37  ;;  %v7848_v34 = vpack.c.bf16 %v10482_v58, %v10482_v58  ;;  %v10492_v1 = vsel %vm1257_vm5, 0.0, %v1148_v23 }
 0x1f8   : > { %7264 = vst.msk [vmem:[%s9990_s17 + $0x17c] sm:$0xf] %vm1592_vm2, %v7892_v18  ;;  %vm1262_vm6 = vcmp.ne.f32.partialorder %v8505_v24, %v8505_v24  ;;  %v7846_v18 = vpack.c.bf16 %v10492_v1, %v10492_v1  ;;  %vm1260_vm9 = vcmp.ne.f32.partialorder %v1161_v21, %v1161_v21 }
 0x1f9   : > { %7262 = vst.msk [vmem:[%s9990_s17 + $0x174] sm:$0xf] %vm1592_vm2, %v7890_v31  ;;  %v8557_v2 = vpop.f32.mrb[128].mxu0  ;;  %8619 = vmatprep.mubr.msk.bf16.mxu1 %vm2449_vm10, %v2125_v53  ;;  %v10501_v15 = vsel %vm1262_vm6, 0.0, %v8505_v24  ;;  %1644 = vst.msk [vmem:[%s9990_s17 + $0xcc] sm:$0xf] %vm1592_vm2, %v7848_v34 }
 0x1fa   : > { %12523 = vst [vmem:[#allocation37_spill] sm:$0xff] %v10501_v15  ;;  %vm2017_vm7 = vcmp.ne.f32.partialorder %v8557_v2, %v8557_v2  ;;  %v1856_v12 = vpop.f32.mrb[129].mxu0  ;;  %8620 = vmatmul.mubr.msk.bf16.gmra.mrb[60].mxu1 %vm2449_vm10, %v2126_v46  ;;  %v7851_v13 = vpack.c.bf16 %v10501_v15, %v10501_v15  ;;  %1642 = vst.msk [vmem:[%s9990_s17 + $0xc4] sm:$0xf] %vm1592_vm2, %v7846_v18  ;;  %v8506_v24 = vpop.f32.mrb[22].mxu1  ;;  %v10512_v46 = vsel %vm1260_vm9, 0.0, %v1161_v21 }
 0x1fb   : > { %v2081_v23 = vsel %vm2017_vm7, 0.0, %v8557_v2  ;;  %vm2015_vm8 = vcmp.ne.f32.partialorder %v1856_v12, %v1856_v12  ;;  %v8558_v5 = vpop.f32.mrb[130].mxu0  ;;  %v1164_v34 = vpop.f32.mrb[23].mxu1  ;;  %v7849_v18 = vpack.c.bf16 %v10512_v46, %v10512_v46  ;;  %vm1263_vm13 = vcmp.ne.f32.partialorder %v8506_v24, %v8506_v24 }
 0x1fc   : > { %v7895_v44 = vpack.c.bf16 %v2081_v23, %v2081_v23  ;;  %v2079_v53 = vsel %vm2015_vm8, 0.0, %v1856_v12  ;;  %vm2018_vm11 = vcmp.ne.f32.partialorder %v8558_v5, %v8558_v5  ;;  %v1859_v31 = vpop.f32.mrb[131].mxu0  ;;  %1647 = vst.msk [vmem:[%s9990_s17 + $0xd8] sm:$0xf] %vm1592_vm2, %v7851_v13  ;;  %v8509_v37 = vpop.f32.mrb[24].mxu1  ;;  %vm1261_vm14 = vcmp.ne.f32.partialorder %v1164_v34, %v1164_v34 }
 0x1fd   : > { %v7893_v14 = vpack.c.bf16 %v2079_v53, %v2079_v53  ;;  %v2082_v2 = vsel %vm2018_vm11, 0.0, %v8558_v5  ;;  %vm2016_vm12 = vcmp.ne.f32.partialorder %v1859_v31, %v1859_v31  ;;  %1645 = vst.msk [vmem:[%s9990_s17 + $0xd0] sm:$0xf] %vm1592_vm2, %v7849_v18  ;;  %v10524_v5 = vsel %vm1263_vm13, 0.0, %v8506_v24 }
 0x1fe   : > { %7267 = vst.msk [vmem:[%s9990_s17 + $0x188] sm:$0xf] %vm1592_vm2, %v7895_v44  ;;  %v2128_v12 = vpack.c.bf16 %v2082_v2, %v2081_v23  ;;  %v7896_v16 = vpack.c.bf16 %v2082_v2, %v2082_v2  ;;  %v2080_v58 = vsel %vm2016_vm12, 0.0, %v1859_v31  ;;  %8884 = vmatmul.mubr.msk.bf16.gmra.mrb[236].mxu0 %vm437_vm0, %v9537_v47  ;;  %12524 = vst [vmem:[#allocation38_spill] sm:$0xff] %v10524_v5  ;;  %v1177_v31 = vpop.f32.mrb[25].mxu1 }
 0x1ff   : > { %7265 = vst.msk [vmem:[%s9990_s17 + $0x180] sm:$0xf] %vm1592_vm2, %v7893_v14  ;;  %v2127_v13 = vpack.c.bf16 %v2080_v58, %v2079_v53  ;;  %v7894_v21 = vpack.c.bf16 %v2080_v58, %v2080_v58  ;;  %8887 = vmatprep.mubr.msk.bf16.mxu0 %vm437_vm0, %v9541_v49  ;;  %v7852_v47 = vpack.c.bf16 %v10524_v5, %v10524_v5  ;;  %v10534_v14 = vsel %vm1261_vm14, 0.0, %v1164_v34 }
 0x200   : > { %7268 = vst.msk [vmem:[%s9990_s17 + $0x18c] sm:$0xf] %vm1592_vm2, %v7896_v16  ;;  %vm1266_vm15 = vcmp.ne.f32.partialorder %v8509_v37, %v8509_v37  ;;  %v7850_v16 = vpack.c.bf16 %v10534_v14, %v10534_v14  ;;  %vm1264_vm4 = vcmp.ne.f32.partialorder %v1177_v31, %v1177_v31 }
 0x201   : > { %7266 = vst.msk [vmem:[%s9990_s17 + $0x184] sm:$0xf] %vm1592_vm2, %v7894_v21  ;;  %v8561_v58 = vpop.f32.mrb[132].mxu0  ;;  %8623 = vmatprep.mubr.msk.bf16.mxu1 %vm2449_vm10, %v2127_v13  ;;  %v10543_v24 = vsel %vm1266_vm15, 0.0, %v8509_v37  ;;  %1648 = vst.msk [vmem:[%s9990_s17 + $0xdc] sm:$0xf] %vm1592_vm2, %v7852_v47 }
 0x202   : > { %12525 = vst [vmem:[#allocation39_spill] sm:$0xff] %v10543_v24  ;;  %vm2021_vm1 = vcmp.ne.f32.partialorder %v8561_v58, %v8561_v58  ;;  %v1872_v44 = vpop.f32.mrb[133].mxu0  ;;  %8624 = vmatmul.mubr.msk.bf16.gmra.mrb[64].mxu1 %vm2449_vm10, %v2128_v12  ;;  %v7855_v53 = vpack.c.bf16 %v10543_v24, %v10543_v24  ;;  %1646 = vst.msk [vmem:[%s9990_s17 + $0xd4] sm:$0xf] %vm1592_vm2, %v7850_v16  ;;  %v8510_v37 = vpop.f32.mrb[26].mxu1  ;;  %v10554_v12 = vsel %vm1264_vm4, 0.0, %v1177_v31 }
 0x203   : > { %v2085_v34 = vsel %vm2021_vm1, 0.0, %v8561_v58  ;;  %vm2019_vm3 = vcmp.ne.f32.partialorder %v1872_v44, %v1872_v44  ;;  %v8562_v2 = vpop.f32.mrb[134].mxu0  ;;  %v1180_v47 = vpop.f32.mrb[27].mxu1  ;;  %v7853_v16 = vpack.c.bf16 %v10554_v12, %v10554_v12  ;;  %vm1267_vm7 = vcmp.ne.f32.partialorder %v8510_v37, %v8510_v37 }
 0x204   : > { %v7899_v18 = vpack.c.bf16 %v2085_v34, %v2085_v34  ;;  %v2083_v13 = vsel %vm2019_vm3, 0.0, %v1872_v44  ;;  %vm2022_vm5 = vcmp.ne.f32.partialorder %v8562_v2, %v8562_v2  ;;  %v1875_v21 = vpop.f32.mrb[135].mxu0  ;;  %1651 = vst.msk [vmem:[%s9990_s17 + $0xe8] sm:$0xf] %vm1592_vm2, %v7855_v53  ;;  %v8513_v49 = vpop.f32.mrb[28].mxu1  ;;  %vm1265_vm8 = vcmp.ne.f32.partialorder %v1180_v47, %v1180_v47 }
 0x205   : > { %v7897_v23 = vpack.c.bf16 %v2083_v13, %v2083_v13  ;;  %v2086_v58 = vsel %vm2022_vm5, 0.0, %v8562_v2  ;;  %vm2020_vm6 = vcmp.ne.f32.partialorder %v1875_v21, %v1875_v21  ;;  %1649 = vst.msk [vmem:[%s9990_s17 + $0xe0] sm:$0xf] %vm1592_vm2, %v7853_v16  ;;  %v10566_v2 = vsel %vm1267_vm7, 0.0, %v8510_v37 }
 0x206   : > { %7271 = vst.msk [vmem:[%s9990_s17 + $0x198] sm:$0xf] %vm1592_vm2, %v7899_v18  ;;  %v2130_v44 = vpack.c.bf16 %v2086_v58, %v2085_v34  ;;  %v7900_v15 = vpack.c.bf16 %v2086_v58, %v2086_v58  ;;  %v2084_v5 = vsel %vm2020_vm6, 0.0, %v1875_v21  ;;  %8888 = vmatmul.mubr.msk.bf16.gmra.mrb[240].mxu0 %vm437_vm0, %v9561_v59  ;;  %v7856_v59 = vpack.c.bf16 %v10566_v2, %v10566_v2  ;;  %v1193_v21 = vpop.f32.mrb[29].mxu1 }
 0x207   : > { %7269 = vst.msk [vmem:[%s9990_s17 + $0x190] sm:$0xf] %vm1592_vm2, %v7897_v23  ;;  %v2129_v53 = vpack.c.bf16 %v2084_v5, %v2083_v13  ;;  %v7898_v31 = vpack.c.bf16 %v2084_v5, %v2084_v5  ;;  %8891 = vmatprep.mubr.msk.bf16.mxu0 %vm437_vm0, %v9565_v61  ;;  %v10576_v23 = vsel %vm1265_vm8, 0.0, %v1180_v47  ;;  %vm1270_vm9 = vcmp.ne.f32.partialorder %v8513_v49, %v8513_v49 }
 0x208   : > { %7272 = vst.msk [vmem:[%s9990_s17 + $0x19c] sm:$0xf] %vm1592_vm2, %v7900_v15  ;;  %v7854_v15 = vpack.c.bf16 %v10576_v23, %v10576_v23  ;;  %v10585_v37 = vsel %vm1270_vm9, 0.0, %v8513_v49  ;;  %1652 = vst.msk [vmem:[%s9990_s17 + $0xec] sm:$0xf] %vm1592_vm2, %v7856_v59  ;;  %vm1268_vm13 = vcmp.ne.f32.partialorder %v1193_v21, %v1193_v21  ;;  %v8514_v49 = vpop.f32.mrb[30].mxu1 }
 0x209   : > { %7270 = vst.msk [vmem:[%s9990_s17 + $0x194] sm:$0xf] %vm1592_vm2, %v7898_v31  ;;  %v8565_v5 = vpop.f32.mrb[136].mxu0  ;;  %8627 = vmatprep.mubr.msk.bf16.mxu1 %vm2449_vm10, %v2129_v53  ;;  %v7859_v13 = vpack.c.bf16 %v10585_v37, %v10585_v37  ;;  %v1196_v59 = vpop.f32.mrb[31].mxu1  ;;  %vm1271_vm1 = vcmp.ne.f32.partialorder %v8514_v49, %v8514_v49 }
 0x20a   : > { %vm2025_vm11 = vcmp.ne.f32.partialorder %v8565_v5, %v8565_v5  ;;  %v1888_v18 = vpop.f32.mrb[137].mxu0  ;;  %8628 = vmatmul.mubr.msk.bf16.gmra.mrb[68].mxu1 %vm2449_vm10, %v2130_v44  ;;  %1650 = vst.msk [vmem:[%s9990_s17 + $0xe4] sm:$0xf] %vm1592_vm2, %v7854_v15  ;;  %v10596_v44 = vsel %vm1268_vm13, 0.0, %v1193_v21  ;;  %vm1269_vm3 = vcmp.ne.f32.partialorder %v1196_v59, %v1196_v59 }
 0x20b   : > { %v2089_v47 = vsel %vm2025_vm11, 0.0, %v8565_v5  ;;  %vm2023_vm12 = vcmp.ne.f32.partialorder %v1888_v18, %v1888_v18  ;;  %v8566_v58 = vpop.f32.mrb[138].mxu0  ;;  %1655 = vst.msk [vmem:[%s9990_s17 + $0xf8] sm:$0xf] %vm1592_vm2, %v7859_v13  ;;  %v7857_v15 = vpack.c.bf16 %v10596_v44, %v10596_v44 }
 0x20c   : > { %v7903_v16 = vpack.c.bf16 %v2089_v47, %v2089_v47  ;;  %v2087_v53 = vsel %vm2023_vm12, 0.0, %v1888_v18  ;;  %vm2026_vm14 = vcmp.ne.f32.partialorder %v8566_v58, %v8566_v58  ;;  %v1891_v31 = vpop.f32.mrb[139].mxu0 }
 0x20d   : > { %v7901_v34 = vpack.c.bf16 %v2087_v53, %v2087_v53  ;;  %v2090_v5 = vsel %vm2026_vm14, 0.0, %v8566_v58  ;;  %vm2024_vm15 = vcmp.ne.f32.partialorder %v1891_v31, %v1891_v31  ;;  %1653 = vst.msk [vmem:[%s9990_s17 + $0xf0] sm:$0xf] %vm1592_vm2, %v7857_v15  ;;  %v10608_v58 = vsel %vm1271_vm1, 0.0, %v8514_v49  ;;  %v12571_v49 = vld [vmem:[#allocation28_spill] sm:$0xff] }
 0x20e   : > { %7275 = vst.msk [vmem:[%s9990_s17 + $0x1a8] sm:$0xf] %vm1592_vm2, %v7903_v16  ;;  %v2132_v61 = vpack.c.bf16 %v2090_v5, %v2089_v47  ;;  %v7904_v18 = vpack.c.bf16 %v2090_v5, %v2090_v5  ;;  %v2088_v24 = vsel %vm2024_vm15, 0.0, %v1891_v31  ;;  %8892 = vmatmul.mubr.msk.bf16.gmra.mrb[244].mxu0 %vm437_vm0, %v9585_v7  ;;  %v10618_v47 = vsel %vm1269_vm3, 0.0, %v1196_v59 }
 0x20f   : > { %7273 = vst.msk [vmem:[%s9990_s17 + $0x1a0] sm:$0xf] %vm1592_vm2, %v7901_v34  ;;  %v2131_v13 = vpack.c.bf16 %v2088_v24, %v2087_v53  ;;  %v7902_v21 = vpack.c.bf16 %v2088_v24, %v2088_v24  ;;  %8895 = vmatprep.mubr.msk.bf16.mxu0 %vm437_vm0, %v9589_v10  ;;  %v7860_v34 = vpack.c.bf16 %v10608_v58, %v10608_v58 }
 0x210   : > { %7276 = vst.msk [vmem:[%s9990_s17 + $0x1ac] sm:$0xf] %vm1592_vm2, %v7904_v18  ;;  %v7858_v10 = vpack.c.bf16 %v10618_v47, %v10618_v47 }
 0x211   : > { %7274 = vst.msk [vmem:[%s9990_s17 + $0x1a4] sm:$0xf] %vm1592_vm2, %v7902_v21  ;;  %v8569_v24 = vpop.f32.mrb[140].mxu0  ;;  %8631 = vmatprep.mubr.msk.bf16.mxu1 %vm2449_vm10, %v2131_v13  ;;  %1656 = vst.msk [vmem:[%s9990_s17 + $0xfc] sm:$0xf] %vm1592_vm2, %v7860_v34 }
 0x212   : > { %vm2029_vm4 = vcmp.ne.f32.partialorder %v8569_v24, %v8569_v24  ;;  %v1904_v16 = vpop.f32.mrb[141].mxu0  ;;  %8632 = vmatmul.mubr.msk.bf16.gmra.mrb[72].mxu1 %vm2449_vm10, %v2132_v61  ;;  %1654 = vst.msk [vmem:[%s9990_s17 + $0xf4] sm:$0xf] %vm1592_vm2, %v7858_v10 }
 0x213   : > { %v2093_v53 = vsel %vm2029_vm4, 0.0, %v8569_v24  ;;  %vm2027_vm5 = vcmp.ne.f32.partialorder %v1904_v16, %v1904_v16  ;;  %v8570_v31 = vpop.f32.mrb[142].mxu0 }
 0x214   : > { %v7907_v59 = vpack.c.bf16 %v2093_v53, %v2093_v53  ;;  %v2091_v5 = vsel %vm2027_vm5, 0.0, %v1904_v16  ;;  %vm2030_vm6 = vcmp.ne.f32.partialorder %v8570_v31, %v8570_v31  ;;  %v1907_v15 = vpop.f32.mrb[143].mxu0 }
 0x215   : > { %v7905_v18 = vpack.c.bf16 %v2091_v5, %v2091_v5  ;;  %v2094_v13 = vsel %vm2030_vm6, 0.0, %v8570_v31  ;;  %vm2028_vm7 = vcmp.ne.f32.partialorder %v1907_v15, %v1907_v15 }
 0x216   : > { %7279 = vst.msk [vmem:[%s9990_s17 + $0x1b8] sm:$0xf] %vm1592_vm2, %v7907_v59  ;;  %v2134_v61 = vpack.c.bf16 %v2094_v13, %v2093_v53  ;;  %v7908_v21 = vpack.c.bf16 %v2094_v13, %v2094_v13  ;;  %v2092_v34 = vsel %vm2028_vm7, 0.0, %v1907_v15  ;;  %8896 = vmatmul.mubr.msk.bf16.gmra.mrb[248].mxu0 %vm437_vm0, %v9609_v25 }
 0x217   : > { %7277 = vst.msk [vmem:[%s9990_s17 + $0x1b0] sm:$0xf] %vm1592_vm2, %v7905_v18  ;;  %v2133_v24 = vpack.c.bf16 %v2092_v34, %v2091_v5  ;;  %v7906_v10 = vpack.c.bf16 %v2092_v34, %v2092_v34  ;;  %8899 = vmatprep.mubr.msk.bf16.mxu0 %vm437_vm0, %v9613_v27 }
 0x218   : > { %7280 = vst.msk [vmem:[%s9990_s17 + $0x1bc] sm:$0xf] %vm1592_vm2, %v7908_v21 }
 0x219   : > { %7278 = vst.msk [vmem:[%s9990_s17 + $0x1b4] sm:$0xf] %vm1592_vm2, %v7906_v10  ;;  %v8573_v16 = vpop.f32.mrb[144].mxu0  ;;  %8635 = vmatprep.mubr.msk.bf16.mxu1 %vm2449_vm10, %v2133_v24 }
 0x21a   : > { %vm2033_vm8 = vcmp.ne.f32.partialorder %v8573_v16, %v8573_v16  ;;  %v1920_v53 = vpop.f32.mrb[145].mxu0  ;;  %8636 = vmatmul.mubr.msk.bf16.gmra.mrb[76].mxu1 %vm2449_vm10, %v2134_v61 }
 0x21b   : > { %v2097_v25 = vsel %vm2033_vm8, 0.0, %v8573_v16  ;;  %vm2031_vm9 = vcmp.ne.f32.partialorder %v1920_v53, %v1920_v53  ;;  %v8574_v31 = vpop.f32.mrb[146].mxu0 }
 0x21c   : > { %v7911_v59 = vpack.c.bf16 %v2097_v25, %v2097_v25  ;;  %v2095_v5 = vsel %vm2031_vm9, 0.0, %v1920_v53  ;;  %vm2034_vm11 = vcmp.ne.f32.partialorder %v8574_v31, %v8574_v31  ;;  %v1923_v27 = vpop.f32.mrb[147].mxu0 }
 0x21d   : > { %v7909_v15 = vpack.c.bf16 %v2095_v5, %v2095_v5  ;;  %v2098_v18 = vsel %vm2034_vm11, 0.0, %v8574_v31  ;;  %vm2032_vm12 = vcmp.ne.f32.partialorder %v1923_v27, %v1923_v27 }
 0x21e   : > { %7283 = vst.msk [vmem:[%s9990_s17 + $0x1c8] sm:$0xf] %vm1592_vm2, %v7911_v59  ;;  %v2136_v13 = vpack.c.bf16 %v2098_v18, %v2097_v25  ;;  %v7912_v21 = vpack.c.bf16 %v2098_v18, %v2098_v18  ;;  %v2096_v34 = vsel %vm2032_vm12, 0.0, %v1923_v27  ;;  %8900 = vmatmul.mubr.msk.bf16.gmra.mrb[252].mxu0 %vm437_vm0, %v9631_v40 }
 0x21f   : > { %7281 = vst.msk [vmem:[%s9990_s17 + $0x1c0] sm:$0xf] %vm1592_vm2, %v7909_v15  ;;  %v2135_v61 = vpack.c.bf16 %v2096_v34, %v2095_v5  ;;  %v7910_v24 = vpack.c.bf16 %v2096_v34, %v2096_v34  ;;  %8903 = vmatprep.mubr.msk.bf16.mxu0 %vm437_vm0, %v9482_v20 }
 0x220   : > { %7284 = vst.msk [vmem:[%s9990_s17 + $0x1cc] sm:$0xf] %vm1592_vm2, %v7912_v21 }
 0x221   : > { %7282 = vst.msk [vmem:[%s9990_s17 + $0x1c4] sm:$0xf] %vm1592_vm2, %v7910_v24  ;;  %v8577_v10 = vpop.f32.mrb[148].mxu0  ;;  %8639 = vmatprep.mubr.msk.bf16.mxu1 %vm2449_vm10, %v2135_v61 }
 0x222   : > { %vm2037_vm13 = vcmp.ne.f32.partialorder %v8577_v10, %v8577_v10  ;;  %v1936_v16 = vpop.f32.mrb[149].mxu0  ;;  %8640 = vmatmul.mubr.msk.bf16.gmra.mrb[80].mxu1 %vm2449_vm10, %v2136_v13 }
 0x223   : > { %v2101_v40 = vsel %vm2037_vm13, 0.0, %v8577_v10  ;;  %vm2035_vm14 = vcmp.ne.f32.partialorder %v1936_v16, %v1936_v16  ;;  %v8578_v53 = vpop.f32.mrb[150].mxu0 }
 0x224   : > { %v7915_v25 = vpack.c.bf16 %v2101_v40, %v2101_v40  ;;  %v2099_v31 = vsel %vm2035_vm14, 0.0, %v1936_v16  ;;  %vm2038_vm15 = vcmp.ne.f32.partialorder %v8578_v53, %v8578_v53  ;;  %v1939_v20 = vpop.f32.mrb[151].mxu0 }
 0x225   : > { %v7913_v59 = vpack.c.bf16 %v2099_v31, %v2099_v31  ;;  %v2102_v5 = vsel %vm2038_vm15, 0.0, %v8578_v53  ;;  %vm2036_vm1 = vcmp.ne.f32.partialorder %v1939_v20, %v1939_v20 }
 0x226   : > { %7287 = vst.msk [vmem:[%s9990_s17 + $0x1d8] sm:$0xf] %vm1592_vm2, %v7915_v25  ;;  %v2138_v27 = vpack.c.bf16 %v2102_v5, %v2101_v40  ;;  %v7916_v15 = vpack.c.bf16 %v2102_v5, %v2102_v5  ;;  %v2100_v18 = vsel %vm2036_vm1, 0.0, %v1939_v20  ;;  %8904 = vmatmul.mubr.msk.bf16.gmra.mrb[0].mxu0 %vm437_vm0, %v9509_v35 }
 0x227   : > { %7285 = vst.msk [vmem:[%s9990_s17 + $0x1d0] sm:$0xf] %vm1592_vm2, %v7913_v59  ;;  %v2137_v13 = vpack.c.bf16 %v2100_v18, %v2099_v31  ;;  %v7914_v21 = vpack.c.bf16 %v2100_v18, %v2100_v18  ;;  %8907 = vmatprep.mubr.msk.bf16.mxu0 %vm437_vm0, %v9518_v38 }
 0x228   : > { %7288 = vst.msk [vmem:[%s9990_s17 + $0x1dc] sm:$0xf] %vm1592_vm2, %v7916_v15 }
 0x229   : > { %7286 = vst.msk [vmem:[%s9990_s17 + $0x1d4] sm:$0xf] %vm1592_vm2, %v7914_v21  ;;  %v8581_v34 = vpop.f32.mrb[152].mxu0  ;;  %8643 = vmatprep.mubr.msk.bf16.mxu1 %vm2449_vm10, %v2137_v13 }
 0x22a   : > { %vm2041_vm3 = vcmp.ne.f32.partialorder %v8581_v34, %v8581_v34  ;;  %v1952_v61 = vpop.f32.mrb[153].mxu0  ;;  %8644 = vmatmul.mubr.msk.bf16.gmra.mrb[84].mxu1 %vm2449_vm10, %v2138_v27 }
 0x22b   : > { %v2105_v35 = vsel %vm2041_vm3, 0.0, %v8581_v34  ;;  %vm2039_vm4 = vcmp.ne.f32.partialorder %v1952_v61, %v1952_v61  ;;  %v8582_v24 = vpop.f32.mrb[154].mxu0 }
 0x22c   : > { %v7919_v10 = vpack.c.bf16 %v2105_v35, %v2105_v35  ;;  %v2103_v16 = vsel %vm2039_vm4, 0.0, %v1952_v61  ;;  %vm2042_vm5 = vcmp.ne.f32.partialorder %v8582_v24, %v8582_v24  ;;  %v1955_v38 = vpop.f32.mrb[155].mxu0 }
 0x22d   : > { %v7917_v40 = vpack.c.bf16 %v2103_v16, %v2103_v16  ;;  %v2106_v53 = vsel %vm2042_vm5, 0.0, %v8582_v24  ;;  %vm2040_vm6 = vcmp.ne.f32.partialorder %v1955_v38, %v1955_v38 }
 0x22e   : > { %7291 = vst.msk [vmem:[%s9990_s17 + $0x1e8] sm:$0xf] %vm1592_vm2, %v7919_v10  ;;  %v2140_v25 = vpack.c.bf16 %v2106_v53, %v2105_v35  ;;  %v7920_v31 = vpack.c.bf16 %v2106_v53, %v2106_v53  ;;  %v2104_v20 = vsel %vm2040_vm6, 0.0, %v1955_v38  ;;  %8908 = vmatmul.mubr.msk.bf16.gmra.mrb[4].mxu0 %vm437_vm0, %v9539_v48 }
 0x22f   : > { %7289 = vst.msk [vmem:[%s9990_s17 + $0x1e0] sm:$0xf] %vm1592_vm2, %v7917_v40  ;;  %v2139_v59 = vpack.c.bf16 %v2104_v20, %v2103_v16  ;;  %v7918_v5 = vpack.c.bf16 %v2104_v20, %v2104_v20  ;;  %8911 = vmatprep.mubr.msk.bf16.mxu0 %vm437_vm0, %v9543_v50 }
 0x230   : > { %7292 = vst.msk [vmem:[%s9990_s17 + $0x1ec] sm:$0xf] %vm1592_vm2, %v7920_v31 }
 0x231   : > { %7290 = vst.msk [vmem:[%s9990_s17 + $0x1e4] sm:$0xf] %vm1592_vm2, %v7918_v5  ;;  %v8585_v27 = vpop.f32.mrb[156].mxu0  ;;  %8647 = vmatprep.mubr.msk.bf16.mxu1 %vm2449_vm10, %v2139_v59 }
 0x232   : > { %vm2045_vm7 = vcmp.ne.f32.partialorder %v8585_v27, %v8585_v27  ;;  %v1968_v15 = vpop.f32.mrb[157].mxu0  ;;  %8648 = vmatmul.mubr.msk.bf16.gmra.mrb[88].mxu1 %vm2449_vm10, %v2140_v25 }
 0x233   : > { %v2109_v48 = vsel %vm2045_vm7, 0.0, %v8585_v27  ;;  %vm2043_vm8 = vcmp.ne.f32.partialorder %v1968_v15, %v1968_v15  ;;  %v8586_v18 = vpop.f32.mrb[158].mxu0 }
 0x234   : > { %v7923_v13 = vpack.c.bf16 %v2109_v48, %v2109_v48  ;;  %v2107_v21 = vsel %vm2043_vm8, 0.0, %v1968_v15  ;;  %vm2046_vm9 = vcmp.ne.f32.partialorder %v8586_v18, %v8586_v18  ;;  %v1971_v50 = vpop.f32.mrb[159].mxu0 }
 0x235   : > { %v7921_v34 = vpack.c.bf16 %v2107_v21, %v2107_v21  ;;  %v2110_v61 = vsel %vm2046_vm9, 0.0, %v8586_v18  ;;  %vm2044_vm11 = vcmp.ne.f32.partialorder %v1971_v50, %v1971_v50 }
 0x236   : > { %7295 = vst.msk [vmem:[%s9990_s17 + $0x1f8] sm:$0xf] %vm1592_vm2, %v7923_v13  ;;  %v2142_v35 = vpack.c.bf16 %v2110_v61, %v2109_v48  ;;  %v7924_v24 = vpack.c.bf16 %v2110_v61, %v2110_v61  ;;  %v2108_v10 = vsel %vm2044_vm11, 0.0, %v1971_v50  ;;  %8912 = vmatmul.mubr.msk.bf16.gmra.mrb[8].mxu0 %vm437_vm0, %v9563_v60  ;;  %v12526_v60 = vpack.c.bf16 %v9998_v45, %v9984_v30  ;;  %v9269_v13 = vld [vmem:[%s12432_s4 + $0x28] sm:$0xff]   ;;  %v12564_v45 = vld [vmem:[#allocation24_spill] sm:$0xff] }
 0x237   : > { %7293 = vst.msk [vmem:[%s9990_s17 + $0x1f0] sm:$0xf] %vm1592_vm2, %v7921_v34  ;;  %v2141_v16 = vpack.c.bf16 %v2108_v10, %v2107_v21  ;;  %v7922_v38 = vpack.c.bf16 %v2108_v10, %v2108_v10  ;;  %8915 = vmatprep.mubr.msk.bf16.mxu0 %vm437_vm0, %v9567_v62  ;;  %v12527_v21 = vpack.c.bf16 %v9988_v33, %v9980_v22 }
 0x238   : > { %7296 = vst.msk [vmem:[%s9990_s17 + $0x1fc] sm:$0xf] %vm1592_vm2, %v7924_v24  ;;  %v12528_v34 = vpack.c.bf16 %v10030_v6, %v10018_v0  ;;  %v10761_v6 = vld [vmem:[%s12432_s4 + $0x30] sm:$0xff]  }
 0x239   : > { %7294 = vst.msk [vmem:[%s9990_s17 + $0x1f4] sm:$0xf] %vm1592_vm2, %v7922_v38  ;;  %8651 = vmatprep.mubr.msk.bf16.mxu1 %vm2449_vm10, %v2141_v16  ;;  %v8733_v40 = vpop.f32.mrb[160].mxu0  ;;  %v12561_v16 = vld [vmem:[#allocation25_spill] sm:$0xff] }
 0x23a   : > { %8652 = vmatmul.mubr.msk.bf16.gmra.mrb[92].mxu1 %vm2449_vm10, %v2142_v35  ;;  %vm3556_vm12 = vcmp.ne.f32.partialorder %v8733_v40, %v8733_v40  ;;  %v3299_v53 = vpop.f32.mrb[161].mxu0 }
 0x23b   : > { %8659 = vmatprep.mubr.msk.bf16.mxu1 %vm2449_vm10, %v12526_v60  ;;  %v10706_v25 = vsel %vm3556_vm12, 0.0, %v8733_v40  ;;  %vm3554_vm13 = vcmp.ne.f32.partialorder %v3299_v53, %v3299_v53  ;;  %v8734_v62 = vpop.f32.mrb[162].mxu0 }
 0x23c   : > { %v7927_v31 = vpack.c.bf16 %v10706_v25, %v10706_v25  ;;  %v10710_v20 = vsel %vm3554_vm13, 0.0, %v3299_v53  ;;  %vm3557_vm14 = vcmp.ne.f32.partialorder %v8734_v62, %v8734_v62  ;;  %v3302_v59 = vpop.f32.mrb[163].mxu0 }
 0x23d   : > { %v7925_v5 = vpack.c.bf16 %v10710_v20, %v10710_v20  ;;  %v10714_v30 = vsel %vm3557_vm14, 0.0, %v8734_v62  ;;  %vm3555_vm15 = vcmp.ne.f32.partialorder %v3302_v59, %v3302_v59  ;;  %v12529_v62 = vpack.c.bf16 %v10022_v3, %v10014_v57 }
 0x23e   : > { %7479 = vst.msk [vmem:[%s9990_s17 + $0x208] sm:$0xf] %vm1592_vm2, %v7927_v31  ;;  %v7928_v27 = vpack.c.bf16 %v10714_v30, %v10714_v30  ;;  %v10722_v15 = vsel %vm3555_vm15, 0.0, %v3302_v59  ;;  %8916 = vmatmul.mubr.msk.bf16.gmra.mrb[12].mxu0 %vm437_vm0, %v9587_v9  ;;  %v12530_v59 = vpack.c.bf16 %v10065_v56, %v10053_v63  ;;  %v12558_v56 = vld [vmem:[#allocation20_spill] sm:$0xff] }
 0x23f   : > { %7477 = vst.msk [vmem:[%s9990_s17 + $0x200] sm:$0xf] %vm1592_vm2, %v7925_v5  ;;  %v7926_v18 = vpack.c.bf16 %v10722_v15, %v10722_v15  ;;  %8919 = vmatprep.mubr.msk.bf16.mxu0 %vm437_vm0, %v9591_v11  ;;  %v9272_v11 = vld [vmem:[%s12432_s4 + $0x20] sm:$0xff]  }
 0x240   : > { %7480 = vst.msk [vmem:[%s9990_s17 + $0x20c] sm:$0xf] %vm1592_vm2, %v7928_v27 }
 0x241   : > { %7478 = vst.msk [vmem:[%s9990_s17 + $0x204] sm:$0xf] %vm1592_vm2, %v7926_v18  ;;  %v8737_v9 = vpop.f32.mrb[164].mxu0 }
 0x242   : > { %8660 = vmatmul.mubr.msk.bf16.vlgmr.msra.gmra.mrb[32].mxu1 %vm2449_vm10, %v12527_v21  ;;  %vm3560_vm1 = vcmp.ne.f32.partialorder %v8737_v9, %v8737_v9  ;;  %v3315_v50 = vpop.f32.mrb[165].mxu0 }
 0x243   : > { %8663 = vmatprep.mubr.msk.bf16.mxu1 %vm2449_vm10, %v12528_v34  ;;  %8796 = vmatpush3.bf16.msra.mxu1 %v9272_v11  ;;  %v10752_v61 = vsel %vm3560_vm1, 0.0, %v8737_v9  ;;  %vm3558_vm3 = vcmp.ne.f32.partialorder %v3315_v50, %v3315_v50  ;;  %v8738_v35 = vpop.f32.mrb[166].mxu0 }
 0x244   : > { %8797 = vmatprep.subr.bf16.mxu1 %v9269_v13  ;;  %v7931_v22 = vpack.c.bf16 %v10752_v61, %v10752_v61  ;;  %v10756_v33 = vsel %vm3558_vm3, 0.0, %v3315_v50  ;;  %vm3561_vm4 = vcmp.ne.f32.partialorder %v8738_v35, %v8738_v35  ;;  %v3318_v0 = vpop.f32.mrb[167].mxu0 }
 0x245   : > { %v7929_v24 = vpack.c.bf16 %v10756_v33, %v10756_v33  ;;  %v10765_v10 = vsel %vm3561_vm4, 0.0, %v8738_v35  ;;  %vm3559_vm5 = vcmp.ne.f32.partialorder %v3318_v0, %v3318_v0  ;;  %v12532_v35 = vpack.c.bf16 %v10097_v54, %v10085_v17  ;;  %v12555_v54 = vld [vmem:[#allocation21_spill] sm:$0xff] }
 0x246   : > { %7483 = vst.msk [vmem:[%s9990_s17 + $0x218] sm:$0xf] %vm1592_vm2, %v7931_v22  ;;  %v7932_v38 = vpack.c.bf16 %v10765_v10, %v10765_v10  ;;  %v10773_v40 = vsel %vm3559_vm5, 0.0, %v3318_v0  ;;  %8920 = vmatmul.mubr.msk.bf16.gmra.mrb[16].mxu0 %vm437_vm0, %v9611_v26 }
 0x247   : > { %8798 = vmatpush3.bf16.msra.mxu1 %v9269_v13  ;;  %7481 = vst.msk [vmem:[%s9990_s17 + $0x210] sm:$0xf] %vm1592_vm2, %v7929_v24  ;;  %v7930_v60 = vpack.c.bf16 %v10773_v40, %v10773_v40  ;;  %8923 = vmatprep.mubr.msk.bf16.mxu0 %vm437_vm0, %v9615_v28 }
 0x248   : > { %7484 = vst.msk [vmem:[%s9990_s17 + $0x21c] sm:$0xf] %vm1592_vm2, %v7932_v38  ;;  %8935 = vmatprep.subr.bf16.mxu1 %v10761_v6 }
 0x249   : > { %7482 = vst.msk [vmem:[%s9990_s17 + $0x214] sm:$0xf] %vm1592_vm2, %v7930_v60  ;;  %v8741_v26 = vpop.f32.mrb[168].mxu0 }
 0x24a   : > { %8664 = vmatmul.mubr.msk.bf16.gmra.mrb[36].mxu1 %vm2449_vm10, %v12529_v62  ;;  %vm3564_vm6 = vcmp.ne.f32.partialorder %v8741_v26, %v8741_v26  ;;  %v3331_v31 = vpop.f32.mrb[169].mxu0 }
 0x24b   : > { %8667 = vmatprep.mubr.msk.bf16.mxu1 %vm2449_vm10, %v12530_v59  ;;  %v10798_v28 = vsel %vm3564_vm6, 0.0, %v8741_v26  ;;  %vm3562_vm7 = vcmp.ne.f32.partialorder %v3331_v31, %v3331_v31  ;;  %v8742_v5 = vpop.f32.mrb[170].mxu0  ;;  %v12533_v59 = vld [vmem:[#allocation7_spill] sm:$0xff] }
 0x24c   : > { %v7935_v27 = vpack.c.bf16 %v10798_v28, %v10798_v28  ;;  %v10802_v18 = vsel %vm3562_vm7, 0.0, %v3331_v31  ;;  %vm3565_vm8 = vcmp.ne.f32.partialorder %v8742_v5, %v8742_v5  ;;  %v3334_v57 = vpop.f32.mrb[171].mxu0 }
 0x24d   : > { %v7933_v3 = vpack.c.bf16 %v10802_v18, %v10802_v18  ;;  %v10806_v63 = vsel %vm3565_vm8, 0.0, %v8742_v5  ;;  %vm3563_vm9 = vcmp.ne.f32.partialorder %v3334_v57, %v3334_v57  ;;  %v12534_v5 = vld [vmem:[#allocation6_spill] sm:$0xff] }
 0x24e   : > { %7487 = vst.msk [vmem:[%s9990_s17 + $0x228] sm:$0xf] %vm1592_vm2, %v7935_v27  ;;  %v7936_v13 = vpack.c.bf16 %v10806_v63, %v10806_v63  ;;  %v10814_v9 = vsel %vm3563_vm9, 0.0, %v3334_v57  ;;  %8924 = vmatmul.mubr.msk.bf16.gmra.mrb[20].mxu0 %vm437_vm0, %v9633_v41  ;;  %v12531_v41 = vpack.c.bf16 %v10057_v43, %v10049_v19  ;;  %v12536_v57 = vld [vmem:[#allocation11_spill] sm:$0xff] }
 0x24f   : > { %7485 = vst.msk [vmem:[%s9990_s17 + $0x220] sm:$0xf] %vm1592_vm2, %v7933_v3  ;;  %v7934_v50 = vpack.c.bf16 %v10814_v9, %v10814_v9  ;;  %8927 = vmatprep.mubr.msk.bf16.mxu0 %vm437_vm0, %v9635_v42  ;;  %v12537_v3 = vld [vmem:[#allocation9_spill] sm:$0xff] }
 0x250   : > { %7488 = vst.msk [vmem:[%s9990_s17 + $0x22c] sm:$0xf] %vm1592_vm2, %v7936_v13  ;;  %v12538_v13 = vpack.c.bf16 %v12536_v57, %v12537_v3  ;;  %v12543_v57 = vld [vmem:[#allocation13_spill] sm:$0xff] }
 0x251   : > { %7486 = vst.msk [vmem:[%s9990_s17 + $0x224] sm:$0xf] %vm1592_vm2, %v7934_v50  ;;  %v8745_v34 = vpop.f32.mrb[172].mxu0 }
 0x252   : > { %8668 = vmatmul.mubr.msk.bf16.gmra.mrb[40].mxu1 %vm2449_vm10, %v12531_v41  ;;  %vm3568_vm11 = vcmp.ne.f32.partialorder %v8745_v34, %v8745_v34  ;;  %v3347_v11 = vpop.f32.mrb[173].mxu0 }
 0x253   : > { %8671 = vmatprep.mubr.msk.bf16.mxu1 %vm2449_vm10, %v12532_v35  ;;  %v10838_v42 = vsel %vm3568_vm11, 0.0, %v8745_v34  ;;  %vm3566_vm12 = vcmp.ne.f32.partialorder %v3347_v11, %v3347_v11  ;;  %v8746_v22 = vpop.f32.mrb[174].mxu0 }
 0x254   : > { %v7939_v0 = vpack.c.bf16 %v10838_v42, %v10838_v42  ;;  %v10842_v24 = vsel %vm3566_vm12, 0.0, %v3347_v11  ;;  %vm3569_vm13 = vcmp.ne.f32.partialorder %v8746_v22, %v8746_v22  ;;  %v3350_v19 = vpop.f32.mrb[175].mxu0 }
 0x255   : > { %v7937_v43 = vpack.c.bf16 %v10842_v24, %v10842_v24  ;;  %v10846_v17 = vsel %vm3569_vm13, 0.0, %v8746_v22  ;;  %vm3567_vm14 = vcmp.ne.f32.partialorder %v3350_v19, %v3350_v19 }
 0x256   : > { %7491 = vst.msk [vmem:[%s9990_s17 + $0x238] sm:$0xf] %vm1592_vm2, %v7939_v0  ;;  %v7940_v38 = vpack.c.bf16 %v10846_v17, %v10846_v17  ;;  %v10854_v60 = vsel %vm3567_vm14, 0.0, %v3350_v19  ;;  %8928 = vmatmul.mubr.msk.bf16.gmra.mrb[24].mxu0 %vm437_vm0, %v9649_v51  ;;  %v12535_v51 = vpack.c.bf16 %v12533_v59, %v12534_v5  ;;  %v12539_v59 = vld [vmem:[#allocation10_spill] sm:$0xff]  ;;  %v12540_v5 = vld [vmem:[#allocation8_spill] sm:$0xff] }
 0x257   : > { %7489 = vst.msk [vmem:[%s9990_s17 + $0x230] sm:$0xf] %vm1592_vm2, %v7937_v43  ;;  %v7938_v62 = vpack.c.bf16 %v10854_v60, %v10854_v60  ;;  %8931 = vmatprep.mubr.msk.bf16.mxu0 %vm437_vm0, %v9651_v52  ;;  %v12552_v0 = vld [vmem:[#allocation16_spill] sm:$0xff] }
 0x258   : > { %7492 = vst.msk [vmem:[%s9990_s17 + $0x23c] sm:$0xf] %vm1592_vm2, %v7940_v38 }
 0x259   : > { %7490 = vst.msk [vmem:[%s9990_s17 + $0x234] sm:$0xf] %vm1592_vm2, %v7938_v62  ;;  %v8749_v31 = vpop.f32.mrb[176].mxu0 }
 0x25a   : > { %8672 = vmatmul.mubr.msk.bf16.gmra.mrb[44].mxu1 %vm2449_vm10, %v12535_v51  ;;  %vm3572_vm15 = vcmp.ne.f32.partialorder %v8749_v31, %v8749_v31  ;;  %v3363_v27 = vpop.f32.mrb[177].mxu0  ;;  %v12541_v51 = vpack.c.bf16 %v12539_v59, %v12540_v5 }
 0x25b   : > { %8675 = vmatprep.mubr.msk.bf16.mxu1 %vm2449_vm10, %v12538_v13  ;;  %v10878_v52 = vsel %vm3572_vm15, 0.0, %v8749_v31  ;;  %vm3570_vm1 = vcmp.ne.f32.partialorder %v3363_v27, %v3363_v27  ;;  %v8750_v50 = vpop.f32.mrb[178].mxu0 }
 0x25c   : > { %v7943_v34 = vpack.c.bf16 %v10878_v52, %v10878_v52  ;;  %v10882_v41 = vsel %vm3570_vm1, 0.0, %v3363_v27  ;;  %vm3573_vm3 = vcmp.ne.f32.partialorder %v8750_v50, %v8750_v50  ;;  %v3366_v11 = vpop.f32.mrb[179].mxu0  ;;  %v12542_v27 = vld [vmem:[#allocation15_spill] sm:$0xff] }
 0x25d   : > { %v7941_v35 = vpack.c.bf16 %v10882_v41, %v10882_v41  ;;  %v10886_v22 = vsel %vm3573_vm3, 0.0, %v8750_v50  ;;  %vm3571_vm4 = vcmp.ne.f32.partialorder %v3366_v11, %v3366_v11  ;;  %v12544_v3 = vpack.c.bf16 %v12542_v27, %v12543_v57  ;;  %v12545_v57 = vld [vmem:[#allocation14_spill] sm:$0xff] }
 0x25e   : > { %7495 = vst.msk [vmem:[%s9990_s17 + $0x248] sm:$0xf] %vm1592_vm2, %v7943_v34  ;;  %v7944_v19 = vpack.c.bf16 %v10886_v22, %v10886_v22  ;;  %v10894_v43 = vsel %vm3571_vm4, 0.0, %v3366_v11  ;;  %8932 = vmatmul.mubr.msk.bf16.gmra.mrb[28].mxu0 %vm437_vm0, %v9663_v55 }
 0x25f   : > { %7493 = vst.msk [vmem:[%s9990_s17 + $0x240] sm:$0xf] %vm1592_vm2, %v7941_v35  ;;  %v7942_v62 = vpack.c.bf16 %v10894_v43, %v10894_v43 }
 0x260   : > { %7496 = vst.msk [vmem:[%s9990_s17 + $0x24c] sm:$0xf] %vm1592_vm2, %v7944_v19 }
 0x261   : > { %7494 = vst.msk [vmem:[%s9990_s17 + $0x244] sm:$0xf] %vm1592_vm2, %v7942_v62  ;;  %v8753_v31 = vpop.f32.mrb[180].mxu0 }
 0x262   : > { %8676 = vmatmul.mubr.msk.bf16.gmra.mrb[48].mxu1 %vm2449_vm10, %v12541_v51  ;;  %vm3576_vm0 = vcmp.ne.f32.partialorder %v8753_v31, %v8753_v31  ;;  %v3379_v55 = vpop.f32.mrb[181].mxu0 }
 0x263   : > { %8679 = vmatprep.mubr.msk.bf16.mxu1 %vm2449_vm10, %v12544_v3  ;;  %v10916_v13 = vsel %vm3576_vm0, 0.0, %v8753_v31  ;;  %vm3574_vm5 = vcmp.ne.f32.partialorder %v3379_v55, %v3379_v55  ;;  %v8754_v50 = vpop.f32.mrb[182].mxu0  ;;  %v12546_v3 = vld [vmem:[#allocation12_spill] sm:$0xff] }
 0x264   : > { %v7947_v34 = vpack.c.bf16 %v10916_v13, %v10916_v13  ;;  %v10920_v11 = vsel %vm3574_vm5, 0.0, %v3379_v55  ;;  %vm3577_vm6 = vcmp.ne.f32.partialorder %v8754_v50, %v8754_v50  ;;  %v3382_v35 = vpop.f32.mrb[183].mxu0 }
 0x265   : > { %v7945_v19 = vpack.c.bf16 %v10920_v11, %v10920_v11  ;;  %v10924_v62 = vsel %vm3577_vm6, 0.0, %v8754_v50  ;;  %vm3575_vm7 = vcmp.ne.f32.partialorder %v3382_v35, %v3382_v35  ;;  %v12547_v50 = vpack.c.bf16 %v12545_v57, %v12546_v3 }
 0x266   : > { %7499 = vst.msk [vmem:[%s9990_s17 + $0x258] sm:$0xf] %vm1592_vm2, %v7947_v34  ;;  %v7948_v59 = vpack.c.bf16 %v10924_v62, %v10924_v62  ;;  %v10932_v5 = vsel %vm3575_vm7, 0.0, %v3382_v35  ;;  %v12548_v35 = vld [vmem:[#allocation19_spill] sm:$0xff] }
 0x267   : > { %7497 = vst.msk [vmem:[%s9990_s17 + $0x250] sm:$0xf] %vm1592_vm2, %v7945_v19  ;;  %v7946_v55 = vpack.c.bf16 %v10932_v5, %v10932_v5  ;;  %v12549_v19 = vld [vmem:[#allocation17_spill] sm:$0xff] }
 0x268   : > { %7500 = vst.msk [vmem:[%s9990_s17 + $0x25c] sm:$0xf] %vm1592_vm2, %v7948_v59  ;;  %v12550_v31 = vpack.c.bf16 %v12548_v35, %v12549_v19 }
 0x269   : > { %7498 = vst.msk [vmem:[%s9990_s17 + $0x254] sm:$0xf] %vm1592_vm2, %v7946_v55  ;;  %v8757_v27 = vpop.f32.mrb[184].mxu0 }
 0x26a   : > { %8680 = vmatmul.mubr.msk.bf16.gmra.mrb[52].mxu1 %vm2449_vm10, %v12547_v50  ;;  %vm3580_vm8 = vcmp.ne.f32.partialorder %v8757_v27, %v8757_v27  ;;  %v3395_v34 = vpop.f32.mrb[185].mxu0 }
 0x26b   : > { %8683 = vmatprep.mubr.msk.bf16.mxu1 %vm2449_vm10, %v12550_v31  ;;  %v10952_v51 = vsel %vm3580_vm8, 0.0, %v8757_v27  ;;  %vm3578_vm9 = vcmp.ne.f32.partialorder %v3395_v34, %v3395_v34  ;;  %v8758_v59 = vpop.f32.mrb[186].mxu0  ;;  %v12551_v31 = vld [vmem:[#allocation18_spill] sm:$0xff] }
 0x26c   : > { %v7951_v55 = vpack.c.bf16 %v10952_v51, %v10952_v51  ;;  %v10956_v57 = vsel %vm3578_vm9, 0.0, %v3395_v34  ;;  %vm3581_vm11 = vcmp.ne.f32.partialorder %v8758_v59, %v8758_v59  ;;  %v3398_v3 = vpop.f32.mrb[187].mxu0  ;;  %v12553_v38 = vpack.c.bf16 %v12551_v31, %v12552_v0 }
 0x26d   : > { %v7949_v50 = vpack.c.bf16 %v10956_v57, %v10956_v57  ;;  %v10960_v35 = vsel %vm3581_vm11, 0.0, %v8758_v59  ;;  %vm3579_vm12 = vcmp.ne.f32.partialorder %v3398_v3, %v3398_v3 }
 0x26e   : > { %7503 = vst.msk [vmem:[%s9990_s17 + $0x268] sm:$0xf] %vm1592_vm2, %v7951_v55  ;;  %v7952_v27 = vpack.c.bf16 %v10960_v35, %v10960_v35  ;;  %v10968_v19 = vsel %vm3579_vm12, 0.0, %v3398_v3 }
 0x26f   : > { %7501 = vst.msk [vmem:[%s9990_s17 + $0x260] sm:$0xf] %vm1592_vm2, %v7949_v50  ;;  %v7950_v59 = vpack.c.bf16 %v10968_v19, %v10968_v19  ;;  %v12554_v50 = vld [vmem:[#allocation23_spill] sm:$0xff] }
 0x270   : > { %7504 = vst.msk [vmem:[%s9990_s17 + $0x26c] sm:$0xf] %vm1592_vm2, %v7952_v27  ;;  %v12556_v26 = vpack.c.bf16 %v12554_v50, %v12555_v54 }
 0x271   : > { %7502 = vst.msk [vmem:[%s9990_s17 + $0x264] sm:$0xf] %vm1592_vm2, %v7950_v59  ;;  %v8761_v55 = vpop.f32.mrb[188].mxu0 }
 0x272   : > { %8684 = vmatmul.mubr.msk.bf16.gmra.mrb[56].mxu1 %vm2449_vm10, %v12553_v38  ;;  %vm3584_vm13 = vcmp.ne.f32.partialorder %v8761_v55, %v8761_v55  ;;  %v3411_v3 = vpop.f32.mrb[189].mxu0 }
 0x273   : > { %8687 = vmatprep.mubr.msk.bf16.mxu1 %vm2449_vm10, %v12556_v26  ;;  %v10988_v34 = vsel %vm3584_vm13, 0.0, %v8761_v55  ;;  %vm3582_vm14 = vcmp.ne.f32.partialorder %v3411_v3, %v3411_v3  ;;  %v8762_v27 = vpop.f32.mrb[190].mxu0  ;;  %v12557_v26 = vld [vmem:[#allocation22_spill] sm:$0xff] }
 0x274   : > { %v7955_v59 = vpack.c.bf16 %v10988_v34, %v10988_v34  ;;  %v10992_v0 = vsel %vm3582_vm14, 0.0, %v3411_v3  ;;  %vm3585_vm15 = vcmp.ne.f32.partialorder %v8762_v27, %v8762_v27  ;;  %v3414_v38 = vpop.f32.mrb[191].mxu0  ;;  %v12559_v21 = vpack.c.bf16 %v12557_v26, %v12558_v56 }
 0x275   : > { %v7953_v31 = vpack.c.bf16 %v10992_v0, %v10992_v0  ;;  %v10996_v54 = vsel %vm3585_vm15, 0.0, %v8762_v27  ;;  %vm3583_vm1 = vcmp.ne.f32.partialorder %v3414_v38, %v3414_v38 }
 0x276   : > { %7507 = vst.msk [vmem:[%s9990_s17 + $0x278] sm:$0xf] %vm1592_vm2, %v7955_v59  ;;  %v7956_v55 = vpack.c.bf16 %v10996_v54, %v10996_v54  ;;  %v11004_v50 = vsel %vm3583_vm1, 0.0, %v3414_v38 }
 0x277   : > { %7505 = vst.msk [vmem:[%s9990_s17 + $0x270] sm:$0xf] %vm1592_vm2, %v7953_v31  ;;  %v7954_v27 = vpack.c.bf16 %v11004_v50, %v11004_v50  ;;  %v12560_v31 = vld [vmem:[#allocation27_spill] sm:$0xff] }
 0x278   : > { %7508 = vst.msk [vmem:[%s9990_s17 + $0x27c] sm:$0xf] %vm1592_vm2, %v7956_v55  ;;  %v12562_v53 = vpack.c.bf16 %v12560_v31, %v12561_v16 }
 0x279   : > { %7506 = vst.msk [vmem:[%s9990_s17 + $0x274] sm:$0xf] %vm1592_vm2, %v7954_v27  ;;  %v8765_v59 = vpop.f32.mrb[192].mxu0 }
 0x27a   : > { %8688 = vmatmul.mubr.msk.bf16.gmra.mrb[60].mxu1 %vm2449_vm10, %v12559_v21  ;;  %vm3588_vm3 = vcmp.ne.f32.partialorder %v8765_v59, %v8765_v59  ;;  %v3427_v38 = vpop.f32.mrb[193].mxu0 }
 0x27b   : > { %8691 = vmatprep.mubr.msk.bf16.mxu1 %vm2449_vm10, %v12562_v53  ;;  %v11024_v3 = vsel %vm3588_vm3, 0.0, %v8765_v59  ;;  %vm3586_vm4 = vcmp.ne.f32.partialorder %v3427_v38, %v3427_v38  ;;  %v8766_v55 = vpop.f32.mrb[194].mxu0  ;;  %v12563_v53 = vld [vmem:[#allocation26_spill] sm:$0xff] }
 0x27c   : > { %v7959_v27 = vpack.c.bf16 %v11024_v3, %v11024_v3  ;;  %v11028_v56 = vsel %vm3586_vm4, 0.0, %v3427_v38  ;;  %vm3589_vm0 = vcmp.ne.f32.partialorder %v8766_v55, %v8766_v55  ;;  %v3430_v21 = vpop.f32.mrb[195].mxu0  ;;  %v12565_v48 = vpack.c.bf16 %v12563_v53, %v12564_v45 }
 0x27d   : > { %v7957_v26 = vpack.c.bf16 %v11028_v56, %v11028_v56  ;;  %v11032_v16 = vsel %vm3589_vm0, 0.0, %v8766_v55  ;;  %vm3587_vm5 = vcmp.ne.f32.partialorder %v3430_v21, %v3430_v21 }
 0x27e   : > { %7511 = vst.msk [vmem:[%s9990_s17 + $0x288] sm:$0xf] %vm1592_vm2, %v7959_v27  ;;  %v7960_v59 = vpack.c.bf16 %v11032_v16, %v11032_v16  ;;  %v11040_v31 = vsel %vm3587_vm5, 0.0, %v3430_v21 }
 0x27f   : > { %7509 = vst.msk [vmem:[%s9990_s17 + $0x280] sm:$0xf] %vm1592_vm2, %v7957_v26  ;;  %v7958_v55 = vpack.c.bf16 %v11040_v31, %v11040_v31  ;;  %v12566_v26 = vld [vmem:[#allocation29_spill] sm:$0xff] }
 0x280   : > { %7512 = vst.msk [vmem:[%s9990_s17 + $0x28c] sm:$0xf] %vm1592_vm2, %v7960_v59  ;;  %v12567_v7 = vpack.c.bf16 %v10366_v4, %v12566_v26 }
 0x281   : > { %7510 = vst.msk [vmem:[%s9990_s17 + $0x284] sm:$0xf] %vm1592_vm2, %v7958_v55  ;;  %v8769_v27 = vpop.f32.mrb[196].mxu0 }
 0x282   : > { %8692 = vmatmul.mubr.msk.bf16.gmra.mrb[64].mxu1 %vm2449_vm10, %v12565_v48  ;;  %vm3592_vm6 = vcmp.ne.f32.partialorder %v8769_v27, %v8769_v27  ;;  %v3443_v21 = vpop.f32.mrb[197].mxu0 }
 0x283   : > { %8695 = vmatprep.mubr.msk.bf16.mxu1 %vm2449_vm10, %v12567_v7  ;;  %v11060_v38 = vsel %vm3592_vm6, 0.0, %v8769_v27  ;;  %vm3590_vm7 = vcmp.ne.f32.partialorder %v3443_v21, %v3443_v21  ;;  %v8770_v59 = vpop.f32.mrb[198].mxu0  ;;  %v12570_v7 = vld [vmem:[#allocation30_spill] sm:$0xff] }
 0x284   : > { %12568 = vst [vmem:[#allocation7_spill] sm:$0xff] %v11060_v38  ;;  %v7963_v55 = vpack.c.bf16 %v11060_v38, %v11060_v38  ;;  %v11064_v45 = vsel %vm3590_vm7, 0.0, %v3443_v21  ;;  %vm3593_vm8 = vcmp.ne.f32.partialorder %v8770_v59, %v8770_v59  ;;  %v3446_v48 = vpop.f32.mrb[199].mxu0  ;;  %v12572_v38 = vpack.c.bf16 %v12570_v7, %v12571_v49 }
 0x285   : > { %v7961_v53 = vpack.c.bf16 %v11064_v45, %v11064_v45  ;;  %v11068_v4 = vsel %vm3593_vm8, 0.0, %v8770_v59  ;;  %vm3591_vm9 = vcmp.ne.f32.partialorder %v3446_v48, %v3446_v48 }
 0x286   : > { %12569 = vst [vmem:[#allocation6_spill] sm:$0xff] %v11068_v4  ;;  %7515 = vst.msk [vmem:[%s9990_s17 + $0x298] sm:$0xf] %vm1592_vm2, %v7963_v55  ;;  %v7964_v27 = vpack.c.bf16 %v11068_v4, %v11068_v4  ;;  %v11076_v26 = vsel %vm3591_vm9, 0.0, %v3446_v48 }
 0x287   : > { %7513 = vst.msk [vmem:[%s9990_s17 + $0x290] sm:$0xf] %vm1592_vm2, %v7961_v53  ;;  %v7962_v59 = vpack.c.bf16 %v11076_v26, %v11076_v26  ;;  %v12573_v53 = vpack.c.bf16 %v10408_v8, %v10386_v36  ;;  %v12576_v8 = vld [vmem:[#allocation32_spill] sm:$0xff] }
 0x288   : > { %7516 = vst.msk [vmem:[%s9990_s17 + $0x29c] sm:$0xf] %vm1592_vm2, %v7964_v27 }
 0x289   : > { %7514 = vst.msk [vmem:[%s9990_s17 + $0x294] sm:$0xf] %vm1592_vm2, %v7962_v59  ;;  %v8773_v55 = vpop.f32.mrb[200].mxu0 }
 0x28a   : > { %8696 = vmatmul.mubr.msk.bf16.gmra.mrb[68].mxu1 %vm2449_vm10, %v12572_v38  ;;  %vm3596_vm11 = vcmp.ne.f32.partialorder %v8773_v55, %v8773_v55  ;;  %v3459_v48 = vpop.f32.mrb[201].mxu0 }
 0x28b   : > { %8699 = vmatprep.mubr.msk.bf16.mxu1 %vm2449_vm10, %v12573_v53  ;;  %v11096_v21 = vsel %vm3596_vm11, 0.0, %v8773_v55  ;;  %vm3594_vm12 = vcmp.ne.f32.partialorder %v3459_v48, %v3459_v48  ;;  %v8774_v27 = vpop.f32.mrb[202].mxu0 }
 0x28c   : > { %12574 = vst [vmem:[#allocation11_spill] sm:$0xff] %v11096_v21  ;;  %v7967_v59 = vpack.c.bf16 %v11096_v21, %v11096_v21  ;;  %v11100_v49 = vsel %vm3594_vm12, 0.0, %v3459_v48  ;;  %vm3597_vm13 = vcmp.ne.f32.partialorder %v8774_v27, %v8774_v27  ;;  %v3462_v38 = vpop.f32.mrb[203].mxu0  ;;  %v12577_v21 = vld [vmem:[#allocation31_spill] sm:$0xff] }
 0x28d   : > { %v7965_v7 = vpack.c.bf16 %v11100_v49, %v11100_v49  ;;  %v11104_v36 = vsel %vm3597_vm13, 0.0, %v8774_v27  ;;  %vm3595_vm14 = vcmp.ne.f32.partialorder %v3462_v38, %v3462_v38  ;;  %v12578_v4 = vpack.c.bf16 %v12576_v8, %v12577_v21 }
 0x28e   : > { %12575 = vst [vmem:[#allocation9_spill] sm:$0xff] %v11104_v36  ;;  %7519 = vst.msk [vmem:[%s9990_s17 + $0x2a8] sm:$0xf] %vm1592_vm2, %v7967_v59  ;;  %v7968_v55 = vpack.c.bf16 %v11104_v36, %v11104_v36  ;;  %v11112_v53 = vsel %vm3595_vm14, 0.0, %v3462_v38 }
 0x28f   : > { %7517 = vst.msk [vmem:[%s9990_s17 + $0x2a0] sm:$0xf] %vm1592_vm2, %v7965_v7  ;;  %v7966_v27 = vpack.c.bf16 %v11112_v53, %v11112_v53  ;;  %v12579_v7 = vpack.c.bf16 %v10450_v39, %v10428_v32  ;;  %v12582_v39 = vld [vmem:[#allocation34_spill] sm:$0xff] }
 0x290   : > { %7520 = vst.msk [vmem:[%s9990_s17 + $0x2ac] sm:$0xf] %vm1592_vm2, %v7968_v55 }
 0x291   : > { %7518 = vst.msk [vmem:[%s9990_s17 + $0x2a4] sm:$0xf] %vm1592_vm2, %v7966_v27  ;;  %v8777_v59 = vpop.f32.mrb[204].mxu0 }
 0x292   : > { %8700 = vmatmul.mubr.msk.bf16.gmra.mrb[72].mxu1 %vm2449_vm10, %v12578_v4  ;;  %vm3600_vm15 = vcmp.ne.f32.partialorder %v8777_v59, %v8777_v59  ;;  %v3475_v38 = vpop.f32.mrb[205].mxu0 }
 0x293   : > { %8703 = vmatprep.mubr.msk.bf16.mxu1 %vm2449_vm10, %v12579_v7  ;;  %v11132_v48 = vsel %vm3600_vm15, 0.0, %v8777_v59  ;;  %vm3598_vm1 = vcmp.ne.f32.partialorder %v3475_v38, %v3475_v38  ;;  %v8778_v55 = vpop.f32.mrb[206].mxu0 }
 0x294   : > { %12580 = vst [vmem:[#allocation10_spill] sm:$0xff] %v11132_v48  ;;  %v7971_v27 = vpack.c.bf16 %v11132_v48, %v11132_v48  ;;  %v11136_v21 = vsel %vm3598_vm1, 0.0, %v3475_v38  ;;  %vm3601_vm3 = vcmp.ne.f32.partialorder %v8778_v55, %v8778_v55  ;;  %v3478_v4 = vpop.f32.mrb[207].mxu0  ;;  %v12583_v48 = vld [vmem:[#allocation33_spill] sm:$0xff] }
 0x295   : > { %v7969_v8 = vpack.c.bf16 %v11136_v21, %v11136_v21  ;;  %v11140_v32 = vsel %vm3601_vm3, 0.0, %v8778_v55  ;;  %vm3599_vm4 = vcmp.ne.f32.partialorder %v3478_v4, %v3478_v4  ;;  %v12584_v36 = vpack.c.bf16 %v12582_v39, %v12583_v48 }
 0x296   : > { %12581 = vst [vmem:[#allocation8_spill] sm:$0xff] %v11140_v32  ;;  %7523 = vst.msk [vmem:[%s9990_s17 + $0x2b8] sm:$0xf] %vm1592_vm2, %v7971_v27  ;;  %v7972_v59 = vpack.c.bf16 %v11140_v32, %v11140_v32  ;;  %v11148_v7 = vsel %vm3599_vm4, 0.0, %v3478_v4 }
 0x297   : > { %7521 = vst.msk [vmem:[%s9990_s17 + $0x2b0] sm:$0xf] %vm1592_vm2, %v7969_v8  ;;  %v7970_v55 = vpack.c.bf16 %v11148_v7, %v11148_v7  ;;  %v12585_v8 = vpack.c.bf16 %v10492_v1, %v10470_v29  ;;  %v12588_v1 = vld [vmem:[#allocation36_spill] sm:$0xff] }
 0x298   : > { %7524 = vst.msk [vmem:[%s9990_s17 + $0x2bc] sm:$0xf] %vm1592_vm2, %v7972_v59 }
 0x299   : > { %7522 = vst.msk [vmem:[%s9990_s17 + $0x2b4] sm:$0xf] %vm1592_vm2, %v7970_v55  ;;  %v8781_v27 = vpop.f32.mrb[208].mxu0 }
 0x29a   : > { %8704 = vmatmul.mubr.msk.bf16.gmra.mrb[76].mxu1 %vm2449_vm10, %v12584_v36  ;;  %vm3604_vm0 = vcmp.ne.f32.partialorder %v8781_v27, %v8781_v27  ;;  %v3491_v4 = vpop.f32.mrb[209].mxu0 }
 0x29b   : > { %8707 = vmatprep.mubr.msk.bf16.mxu1 %vm2449_vm10, %v12585_v8  ;;  %v11168_v38 = vsel %vm3604_vm0, 0.0, %v8781_v27  ;;  %vm3602_vm5 = vcmp.ne.f32.partialorder %v3491_v4, %v3491_v4  ;;  %v8782_v59 = vpop.f32.mrb[210].mxu0 }
 0x29c   : > { %12586 = vst [vmem:[#allocation15_spill] sm:$0xff] %v11168_v38  ;;  %v7975_v55 = vpack.c.bf16 %v11168_v38, %v11168_v38  ;;  %v11172_v48 = vsel %vm3602_vm5, 0.0, %v3491_v4  ;;  %vm3605_vm6 = vcmp.ne.f32.partialorder %v8782_v59, %v8782_v59  ;;  %v3494_v36 = vpop.f32.mrb[211].mxu0  ;;  %v12589_v38 = vld [vmem:[#allocation35_spill] sm:$0xff] }
 0x29d   : > { %v7973_v39 = vpack.c.bf16 %v11172_v48, %v11172_v48  ;;  %v11176_v29 = vsel %vm3605_vm6, 0.0, %v8782_v59  ;;  %vm3603_vm7 = vcmp.ne.f32.partialorder %v3494_v36, %v3494_v36  ;;  %v12590_v32 = vpack.c.bf16 %v12588_v1, %v12589_v38 }
 0x29e   : > { %12587 = vst [vmem:[#allocation13_spill] sm:$0xff] %v11176_v29  ;;  %7527 = vst.msk [vmem:[%s9990_s17 + $0x2c8] sm:$0xf] %vm1592_vm2, %v7975_v55  ;;  %v7976_v27 = vpack.c.bf16 %v11176_v29, %v11176_v29  ;;  %v11184_v8 = vsel %vm3603_vm7, 0.0, %v3494_v36 }
 0x29f   : > { %7525 = vst.msk [vmem:[%s9990_s17 + $0x2c0] sm:$0xf] %vm1592_vm2, %v7973_v39  ;;  %v7974_v59 = vpack.c.bf16 %v11184_v8, %v11184_v8  ;;  %v12591_v39 = vpack.c.bf16 %v10534_v14, %v10512_v46  ;;  %v12593_v14 = vld [vmem:[#allocation38_spill] sm:$0xff] }
 0x2a0   : > { %7528 = vst.msk [vmem:[%s9990_s17 + $0x2cc] sm:$0xf] %vm1592_vm2, %v7976_v27 }
 0x2a1   : > { %7526 = vst.msk [vmem:[%s9990_s17 + $0x2c4] sm:$0xf] %vm1592_vm2, %v7974_v59  ;;  %v8785_v55 = vpop.f32.mrb[212].mxu0 }
 0x2a2   : > { %8708 = vmatmul.mubr.msk.bf16.gmra.mrb[80].mxu1 %vm2449_vm10, %v12590_v32  ;;  %vm3608_vm8 = vcmp.ne.f32.partialorder %v8785_v55, %v8785_v55  ;;  %v3507_v36 = vpop.f32.mrb[213].mxu0 }
 0x2a3   : > { %8711 = vmatprep.mubr.msk.bf16.mxu1 %vm2449_vm10, %v12591_v39  ;;  %v11204_v4 = vsel %vm3608_vm8, 0.0, %v8785_v55  ;;  %vm3606_vm9 = vcmp.ne.f32.partialorder %v3507_v36, %v3507_v36  ;;  %v8786_v27 = vpop.f32.mrb[214].mxu0 }
 0x2a4   : > { %12592 = vst [vmem:[#allocation14_spill] sm:$0xff] %v11204_v4  ;;  %v7979_v59 = vpack.c.bf16 %v11204_v4, %v11204_v4  ;;  %v11208_v38 = vsel %vm3606_vm9, 0.0, %v3507_v36  ;;  %vm3609_vm11 = vcmp.ne.f32.partialorder %v8786_v27, %v8786_v27  ;;  %v3510_v32 = vpop.f32.mrb[215].mxu0  ;;  %v12594_v4 = vld [vmem:[#allocation37_spill] sm:$0xff] }
 0x2a5   : > { %v7977_v1 = vpack.c.bf16 %v11208_v38, %v11208_v38  ;;  %v11212_v46 = vsel %vm3609_vm11, 0.0, %v8786_v27  ;;  %vm3607_vm12 = vcmp.ne.f32.partialorder %v3510_v32, %v3510_v32  ;;  %v12595_v29 = vpack.c.bf16 %v12593_v14, %v12594_v4 }
 0x2a6   : > { %7531 = vst.msk [vmem:[%s9990_s17 + $0x2d8] sm:$0xf] %vm1592_vm2, %v7979_v59  ;;  %v7980_v55 = vpack.c.bf16 %v11212_v46, %v11212_v46  ;;  %v11220_v39 = vsel %vm3607_vm12, 0.0, %v3510_v32 }
 0x2a7   : > { %7529 = vst.msk [vmem:[%s9990_s17 + $0x2d0] sm:$0xf] %vm1592_vm2, %v7977_v1  ;;  %v7978_v27 = vpack.c.bf16 %v11220_v39, %v11220_v39  ;;  %v12596_v1 = vpack.c.bf16 %v10576_v23, %v10554_v12  ;;  %v12598_v23 = vld [vmem:[#allocation39_spill] sm:$0xff] }
 0x2a8   : > { %7532 = vst.msk [vmem:[%s9990_s17 + $0x2dc] sm:$0xf] %vm1592_vm2, %v7980_v55 }
 0x2a9   : > { %7530 = vst.msk [vmem:[%s9990_s17 + $0x2d4] sm:$0xf] %vm1592_vm2, %v7978_v27  ;;  %v8789_v59 = vpop.f32.mrb[216].mxu0 }
 0x2aa   : > { %8712 = vmatmul.mubr.msk.bf16.gmra.mrb[84].mxu1 %vm2449_vm10, %v12595_v29  ;;  %vm3612_vm13 = vcmp.ne.f32.partialorder %v8789_v59, %v8789_v59  ;;  %v3523_v32 = vpop.f32.mrb[217].mxu0 }
 0x2ab   : > { %8715 = vmatprep.mubr.msk.bf16.mxu1 %vm2449_vm10, %v12596_v1  ;;  %v11240_v36 = vsel %vm3612_vm13, 0.0, %v8789_v59  ;;  %vm3610_vm14 = vcmp.ne.f32.partialorder %v3523_v32, %v3523_v32  ;;  %v8790_v55 = vpop.f32.mrb[218].mxu0 }
 0x2ac   : > { %12597 = vst [vmem:[#allocation12_spill] sm:$0xff] %v11240_v36  ;;  %v7983_v27 = vpack.c.bf16 %v11240_v36, %v11240_v36  ;;  %v11244_v4 = vsel %vm3610_vm14, 0.0, %v3523_v32  ;;  %vm3613_vm15 = vcmp.ne.f32.partialorder %v8790_v55, %v8790_v55  ;;  %v3526_v29 = vpop.f32.mrb[219].mxu0  ;;  %v12599_v36 = vpack.c.bf16 %v10566_v2, %v12598_v23 }
 0x2ad   : > { %v7981_v14 = vpack.c.bf16 %v11244_v4, %v11244_v4  ;;  %v11248_v12 = vsel %vm3613_vm15, 0.0, %v8790_v55  ;;  %vm3611_vm1 = vcmp.ne.f32.partialorder %v3526_v29, %v3526_v29 }
 0x2ae   : > { %7535 = vst.msk [vmem:[%s9990_s17 + $0x2e8] sm:$0xf] %vm1592_vm2, %v7983_v27  ;;  %v7984_v59 = vpack.c.bf16 %v11248_v12, %v11248_v12  ;;  %v11256_v1 = vsel %vm3611_vm1, 0.0, %v3526_v29 }
 0x2af   : > { %7533 = vst.msk [vmem:[%s9990_s17 + $0x2e0] sm:$0xf] %vm1592_vm2, %v7981_v14  ;;  %v7982_v55 = vpack.c.bf16 %v11256_v1, %v11256_v1  ;;  %v12600_v14 = vpack.c.bf16 %v10618_v47, %v10596_v44  ;;  %v12601_v47 = vpack.c.bf16 %v10608_v58, %v10585_v37 }
 0x2b0   : > { %7536 = vst.msk [vmem:[%s9990_s17 + $0x2ec] sm:$0xf] %vm1592_vm2, %v7984_v59 }
 0x2b1   : > { %7534 = vst.msk [vmem:[%s9990_s17 + $0x2e4] sm:$0xf] %vm1592_vm2, %v7982_v55  ;;  %v8793_v27 = vpop.f32.mrb[220].mxu0 }
 0x2b2   : > { %8716 = vmatmul.mubr.msk.bf16.gmra.mrb[88].mxu1 %vm2449_vm10, %v12599_v36  ;;  %vm3616_vm3 = vcmp.ne.f32.partialorder %v8793_v27, %v8793_v27  ;;  %v3539_v29 = vpop.f32.mrb[221].mxu0 }
 0x2b3   : > { %8719 = vmatprep.mubr.msk.bf16.mxu1 %vm2449_vm10, %v12600_v14  ;;  %v11276_v32 = vsel %vm3616_vm3, 0.0, %v8793_v27  ;;  %vm3614_vm4 = vcmp.ne.f32.partialorder %v3539_v29, %v3539_v29  ;;  %v8794_v59 = vpop.f32.mrb[222].mxu0 }
 0x2b4   : > { %v7987_v55 = vpack.c.bf16 %v11276_v32, %v11276_v32  ;;  %v11280_v2 = vsel %vm3614_vm4, 0.0, %v3539_v29  ;;  %vm3617_vm0 = vcmp.ne.f32.partialorder %v8794_v59, %v8794_v59  ;;  %v3542_v36 = vpop.f32.mrb[223].mxu0 }
 0x2b5   : > { %v7985_v23 = vpack.c.bf16 %v11280_v2, %v11280_v2  ;;  %v11284_v44 = vsel %vm3617_vm0, 0.0, %v8794_v59  ;;  %vm3615_vm5 = vcmp.ne.f32.partialorder %v3542_v36, %v3542_v36 }
 0x2b6   : > { %7539 = vst.msk [vmem:[%s9990_s17 + $0x2f8] sm:$0xf] %vm1592_vm2, %v7987_v55  ;;  %v7988_v27 = vpack.c.bf16 %v11284_v44, %v11284_v44  ;;  %v11292_v14 = vsel %vm3615_vm5, 0.0, %v3542_v36 }
 0x2b7   : > { %7537 = vst.msk [vmem:[%s9990_s17 + $0x2f0] sm:$0xf] %vm1592_vm2, %v7985_v23  ;;  %v7986_v59 = vpack.c.bf16 %v11292_v14, %v11292_v14  ;;  %v12602_v23 = vpack.c.bf16 %v10722_v15, %v10710_v20 }
 0x2b8   : > { %7540 = vst.msk [vmem:[%s9990_s17 + $0x2fc] sm:$0xf] %vm1592_vm2, %v7988_v27 }
 0x2b9   : > { %7538 = vst.msk [vmem:[%s9990_s17 + $0x2f4] sm:$0xf] %vm1592_vm2, %v7986_v59  ;;  %v8873_v55 = vpop.f32.mrb[224].mxu0 }
 0x2ba   : > { %8720 = vmatmul.mubr.msk.bf16.gmra.mrb[92].mxu1 %vm2449_vm10, %v12601_v47  ;;  %vm4793_vm6 = vcmp.ne.f32.partialorder %v8873_v55, %v8873_v55  ;;  %v4536_v36 = vpop.f32.mrb[225].mxu0 }
 0x2bb   : > { %8799 = vmatprep.mubr.msk.bf16.mxu1 %vm2449_vm10, %v12602_v23  ;;  %v11312_v29 = vsel %vm4793_vm6, 0.0, %v8873_v55  ;;  %vm4791_vm7 = vcmp.ne.f32.partialorder %v4536_v36, %v4536_v36  ;;  %v8874_v27 = vpop.f32.mrb[226].mxu0 }
 0x2bc   : > { %12603 = vst [vmem:[#allocation19_spill] sm:$0xff] %v11312_v29  ;;  %v7991_v59 = vpack.c.bf16 %v11312_v29, %v11312_v29  ;;  %v11316_v37 = vsel %vm4791_vm7, 0.0, %v4536_v36  ;;  %vm4794_vm8 = vcmp.ne.f32.partialorder %v8874_v27, %v8874_v27  ;;  %v4539_v58 = vpop.f32.mrb[227].mxu0  ;;  %v12605_v36 = vpack.c.bf16 %v10773_v40, %v10756_v33 }
 0x2bd   : > { %v7989_v47 = vpack.c.bf16 %v11316_v37, %v11316_v37  ;;  %v11320_v20 = vsel %vm4794_vm8, 0.0, %v8874_v27  ;;  %vm4792_vm9 = vcmp.ne.f32.partialorder %v4539_v58, %v4539_v58 }
 0x2be   : > { %7689 = vst.msk [vmem:[%s9990_s17 + $0x308] sm:$0xf] %vm1592_vm2, %v7991_v59  ;;  %v7992_v55 = vpack.c.bf16 %v11320_v20, %v11320_v20  ;;  %v11328_v23 = vsel %vm4792_vm9, 0.0, %v4539_v58  ;;  %v9271_v59 = vld [vmem:[%s12432_s4 + $0x38] sm:$0xff]   ;;  %v12604_v58 = vpack.c.bf16 %v10714_v30, %v10706_v25 }
 0x2bf   : > { %7687 = vst.msk [vmem:[%s9990_s17 + $0x300] sm:$0xf] %vm1592_vm2, %v7989_v47  ;;  %v7990_v27 = vpack.c.bf16 %v11328_v23, %v11328_v23 }
 0x2c0   : > { %7690 = vst.msk [vmem:[%s9990_s17 + $0x30c] sm:$0xf] %vm1592_vm2, %v7992_v55 }
 0x2c1   : > { %7688 = vst.msk [vmem:[%s9990_s17 + $0x304] sm:$0xf] %vm1592_vm2, %v7990_v27  ;;  %v8877_v15 = vpop.f32.mrb[228].mxu0 }
 0x2c2   : > { %8800 = vmatmul.mubr.msk.bf16.vlgmr.msra.gmra.mrb[32].mxu1 %vm2449_vm10, %v12604_v58  ;;  %vm4797_vm11 = vcmp.ne.f32.partialorder %v8877_v15, %v8877_v15  ;;  %v4552_v47 = vpop.f32.mrb[229].mxu0 }
 0x2c3   : > { %8936 = vmatpush3.bf16.msra.mxu1 %v10761_v6  ;;  %8803 = vmatprep.mubr.msk.bf16.mxu1 %vm2449_vm10, %v12605_v36  ;;  %v11352_v29 = vsel %vm4797_vm11, 0.0, %v8877_v15  ;;  %vm4795_vm12 = vcmp.ne.f32.partialorder %v4552_v47, %v4552_v47  ;;  %v8878_v55 = vpop.f32.mrb[230].mxu0  ;;  %v12624_v15 = vld [vmem:[#allocation7_spill] sm:$0xff] }
 0x2c4   : > { %8937 = vmatprep.subr.bf16.mxu1 %v9271_v59  ;;  %v7995_v25 = vpack.c.bf16 %v11352_v29, %v11352_v29  ;;  %v11356_v30 = vsel %vm4795_vm12, 0.0, %v4552_v47  ;;  %vm4798_vm13 = vcmp.ne.f32.partialorder %v8878_v55, %v8878_v55  ;;  %v4555_v6 = vpop.f32.mrb[231].mxu0 }
 0x2c5   : > { %v7993_v33 = vpack.c.bf16 %v11356_v30, %v11356_v30  ;;  %v11360_v40 = vsel %vm4798_vm13, 0.0, %v8878_v55  ;;  %vm4796_vm14 = vcmp.ne.f32.partialorder %v4555_v6, %v4555_v6 }
 0x2c6   : > { %7693 = vst.msk [vmem:[%s9990_s17 + $0x318] sm:$0xf] %vm1592_vm2, %v7995_v25  ;;  %v7996_v36 = vpack.c.bf16 %v11360_v40, %v11360_v40  ;;  %v11368_v27 = vsel %vm4796_vm14, 0.0, %v4555_v6  ;;  %v12606_v25 = vpack.c.bf16 %v10765_v10, %v10752_v61  ;;  %v12607_v6 = vpack.c.bf16 %v10814_v9, %v10802_v18 }
 0x2c7   : > { %8938 = vmatpush3.bf16.msra.mxu1 %v9271_v59  ;;  %7691 = vst.msk [vmem:[%s9990_s17 + $0x310] sm:$0xf] %vm1592_vm2, %v7993_v33  ;;  %v7994_v47 = vpack.c.bf16 %v11368_v27, %v11368_v27  ;;  %v12608_v9 = vpack.c.bf16 %v10806_v63, %v10798_v28 }
 0x2c8   : > { %7694 = vst.msk [vmem:[%s9990_s17 + $0x31c] sm:$0xf] %vm1592_vm2, %v7996_v36 }
 0x2c9   : > { %7692 = vst.msk [vmem:[%s9990_s17 + $0x314] sm:$0xf] %vm1592_vm2, %v7994_v47  ;;  %v8881_v55 = vpop.f32.mrb[232].mxu0 }
 0x2ca   : > { %8804 = vmatmul.mubr.msk.bf16.gmra.mrb[36].mxu1 %vm2449_vm10, %v12606_v25  ;;  %vm4801_vm15 = vcmp.ne.f32.partialorder %v8881_v55, %v8881_v55  ;;  %v4568_v59 = vpop.f32.mrb[233].mxu0 }
 0x2cb   : > { %8807 = vmatprep.mubr.msk.bf16.mxu1 %vm2449_vm10, %v12607_v6  ;;  %v11388_v33 = vsel %vm4801_vm15, 0.0, %v8881_v55  ;;  %vm4799_vm1 = vcmp.ne.f32.partialorder %v4568_v59, %v4568_v59  ;;  %v8882_v36 = vpop.f32.mrb[234].mxu0 }
 0x2cc   : > { %v7999_v47 = vpack.c.bf16 %v11388_v33, %v11388_v33  ;;  %v11392_v61 = vsel %vm4799_vm1, 0.0, %v4568_v59  ;;  %vm4802_vm3 = vcmp.ne.f32.partialorder %v8882_v36, %v8882_v36  ;;  %v4571_v10 = vpop.f32.mrb[235].mxu0 }
 0x2cd   : > { %v7997_v25 = vpack.c.bf16 %v11392_v61, %v11392_v61  ;;  %v11396_v18 = vsel %vm4802_vm3, 0.0, %v8882_v36  ;;  %vm4800_vm4 = vcmp.ne.f32.partialorder %v4571_v10, %v4571_v10 }
 0x2ce   : > { %7697 = vst.msk [vmem:[%s9990_s17 + $0x328] sm:$0xf] %vm1592_vm2, %v7999_v47  ;;  %v8000_v55 = vpack.c.bf16 %v11396_v18, %v11396_v18  ;;  %v11404_v6 = vsel %vm4800_vm4, 0.0, %v4571_v10 }
 0x2cf   : > { %7695 = vst.msk [vmem:[%s9990_s17 + $0x320] sm:$0xf] %vm1592_vm2, %v7997_v25  ;;  %v7998_v36 = vpack.c.bf16 %v11404_v6, %v11404_v6  ;;  %v12609_v25 = vpack.c.bf16 %v10854_v60, %v10842_v24  ;;  %v12610_v60 = vpack.c.bf16 %v10846_v17, %v10838_v42 }
 0x2d0   : > { %7698 = vst.msk [vmem:[%s9990_s17 + $0x32c] sm:$0xf] %vm1592_vm2, %v8000_v55 }
 0x2d1   : > { %7696 = vst.msk [vmem:[%s9990_s17 + $0x324] sm:$0xf] %vm1592_vm2, %v7998_v36  ;;  %v8885_v47 = vpop.f32.mrb[236].mxu0 }
 0x2d2   : > { %8808 = vmatmul.mubr.msk.bf16.gmra.mrb[40].mxu1 %vm2449_vm10, %v12608_v9  ;;  %vm4805_vm0 = vcmp.ne.f32.partialorder %v8885_v47, %v8885_v47  ;;  %v4584_v10 = vpop.f32.mrb[237].mxu0 }
 0x2d3   : > { %8811 = vmatprep.mubr.msk.bf16.mxu1 %vm2449_vm10, %v12609_v25  ;;  %v11424_v59 = vsel %vm4805_vm0, 0.0, %v8885_v47  ;;  %vm4803_vm5 = vcmp.ne.f32.partialorder %v4584_v10, %v4584_v10  ;;  %v8886_v55 = vpop.f32.mrb[238].mxu0 }
 0x2d4   : > { %v8003_v36 = vpack.c.bf16 %v11424_v59, %v11424_v59  ;;  %v11428_v28 = vsel %vm4803_vm5, 0.0, %v4584_v10  ;;  %vm4806_vm6 = vcmp.ne.f32.partialorder %v8886_v55, %v8886_v55  ;;  %v4587_v63 = vpop.f32.mrb[239].mxu0 }
 0x2d5   : > { %v8001_v9 = vpack.c.bf16 %v11428_v28, %v11428_v28  ;;  %v11432_v24 = vsel %vm4806_vm6, 0.0, %v8886_v55  ;;  %vm4804_vm7 = vcmp.ne.f32.partialorder %v4587_v63, %v4587_v63 }
 0x2d6   : > { %7701 = vst.msk [vmem:[%s9990_s17 + $0x338] sm:$0xf] %vm1592_vm2, %v8003_v36  ;;  %v8004_v47 = vpack.c.bf16 %v11432_v24, %v11432_v24  ;;  %v11440_v25 = vsel %vm4804_vm7, 0.0, %v4587_v63 }
 0x2d7   : > { %7699 = vst.msk [vmem:[%s9990_s17 + $0x330] sm:$0xf] %vm1592_vm2, %v8001_v9  ;;  %v8002_v55 = vpack.c.bf16 %v11440_v25, %v11440_v25  ;;  %v12611_v9 = vpack.c.bf16 %v10894_v43, %v10882_v41  ;;  %v12612_v43 = vpack.c.bf16 %v10886_v22, %v10878_v52 }
 0x2d8   : > { %7702 = vst.msk [vmem:[%s9990_s17 + $0x33c] sm:$0xf] %vm1592_vm2, %v8004_v47 }
 0x2d9   : > { %7700 = vst.msk [vmem:[%s9990_s17 + $0x334] sm:$0xf] %vm1592_vm2, %v8002_v55  ;;  %v8889_v36 = vpop.f32.mrb[240].mxu0 }
 0x2da   : > { %8812 = vmatmul.mubr.msk.bf16.gmra.mrb[44].mxu1 %vm2449_vm10, %v12610_v60  ;;  %vm4809_vm8 = vcmp.ne.f32.partialorder %v8889_v36, %v8889_v36  ;;  %v4600_v63 = vpop.f32.mrb[241].mxu0 }
 0x2db   : > { %8815 = vmatprep.mubr.msk.bf16.mxu1 %vm2449_vm10, %v12611_v9  ;;  %v11460_v10 = vsel %vm4809_vm8, 0.0, %v8889_v36  ;;  %vm4807_vm9 = vcmp.ne.f32.partialorder %v4600_v63, %v4600_v63  ;;  %v8890_v47 = vpop.f32.mrb[242].mxu0 }
 0x2dc   : > { %v8007_v55 = vpack.c.bf16 %v11460_v10, %v11460_v10  ;;  %v11464_v42 = vsel %vm4807_vm9, 0.0, %v4600_v63  ;;  %vm4810_vm11 = vcmp.ne.f32.partialorder %v8890_v47, %v8890_v47  ;;  %v4603_v17 = vpop.f32.mrb[243].mxu0 }
 0x2dd   : > { %v8005_v60 = vpack.c.bf16 %v11464_v42, %v11464_v42  ;;  %v11468_v41 = vsel %vm4810_vm11, 0.0, %v8890_v47  ;;  %vm4808_vm12 = vcmp.ne.f32.partialorder %v4603_v17, %v4603_v17 }
 0x2de   : > { %7705 = vst.msk [vmem:[%s9990_s17 + $0x348] sm:$0xf] %vm1592_vm2, %v8007_v55  ;;  %v8008_v36 = vpack.c.bf16 %v11468_v41, %v11468_v41  ;;  %v11476_v9 = vsel %vm4808_vm12, 0.0, %v4603_v17 }
 0x2df   : > { %7703 = vst.msk [vmem:[%s9990_s17 + $0x340] sm:$0xf] %vm1592_vm2, %v8005_v60  ;;  %v8006_v47 = vpack.c.bf16 %v11476_v9, %v11476_v9  ;;  %v12613_v60 = vpack.c.bf16 %v10932_v5, %v10920_v11  ;;  %v12614_v5 = vpack.c.bf16 %v10924_v62, %v10916_v13 }
 0x2e0   : > { %7706 = vst.msk [vmem:[%s9990_s17 + $0x34c] sm:$0xf] %vm1592_vm2, %v8008_v36 }
 0x2e1   : > { %7704 = vst.msk [vmem:[%s9990_s17 + $0x344] sm:$0xf] %vm1592_vm2, %v8006_v47  ;;  %v8893_v55 = vpop.f32.mrb[244].mxu0 }
 0x2e2   : > { %8816 = vmatmul.mubr.msk.bf16.gmra.mrb[48].mxu1 %vm2449_vm10, %v12612_v43  ;;  %vm4813_vm13 = vcmp.ne.f32.partialorder %v8893_v55, %v8893_v55  ;;  %v4616_v17 = vpop.f32.mrb[245].mxu0 }
 0x2e3   : > { %8819 = vmatprep.mubr.msk.bf16.mxu1 %vm2449_vm10, %v12613_v60  ;;  %v11496_v63 = vsel %vm4813_vm13, 0.0, %v8893_v55  ;;  %vm4811_vm14 = vcmp.ne.f32.partialorder %v4616_v17, %v4616_v17  ;;  %v8894_v36 = vpop.f32.mrb[246].mxu0 }
 0x2e4   : > { %v8011_v47 = vpack.c.bf16 %v11496_v63, %v11496_v63  ;;  %v11500_v52 = vsel %vm4811_vm14, 0.0, %v4616_v17  ;;  %vm4814_vm15 = vcmp.ne.f32.partialorder %v8894_v36, %v8894_v36  ;;  %v4619_v22 = vpop.f32.mrb[247].mxu0 }
 0x2e5   : > { %v8009_v43 = vpack.c.bf16 %v11500_v52, %v11500_v52  ;;  %v11504_v11 = vsel %vm4814_vm15, 0.0, %v8894_v36  ;;  %vm4812_vm1 = vcmp.ne.f32.partialorder %v4619_v22, %v4619_v22 }
 0x2e6   : > { %7709 = vst.msk [vmem:[%s9990_s17 + $0x358] sm:$0xf] %vm1592_vm2, %v8011_v47  ;;  %v8012_v55 = vpack.c.bf16 %v11504_v11, %v11504_v11  ;;  %v11512_v60 = vsel %vm4812_vm1, 0.0, %v4619_v22 }
 0x2e7   : > { %7707 = vst.msk [vmem:[%s9990_s17 + $0x350] sm:$0xf] %vm1592_vm2, %v8009_v43  ;;  %v8010_v36 = vpack.c.bf16 %v11512_v60, %v11512_v60  ;;  %v12615_v43 = vpack.c.bf16 %v10968_v19, %v10956_v57  ;;  %v12616_v19 = vpack.c.bf16 %v10960_v35, %v10952_v51 }
 0x2e8   : > { %7710 = vst.msk [vmem:[%s9990_s17 + $0x35c] sm:$0xf] %vm1592_vm2, %v8012_v55 }
 0x2e9   : > { %7708 = vst.msk [vmem:[%s9990_s17 + $0x354] sm:$0xf] %vm1592_vm2, %v8010_v36  ;;  %v8897_v47 = vpop.f32.mrb[248].mxu0 }
 0x2ea   : > { %8820 = vmatmul.mubr.msk.bf16.gmra.mrb[52].mxu1 %vm2449_vm10, %v12614_v5  ;;  %vm4817_vm3 = vcmp.ne.f32.partialorder %v8897_v47, %v8897_v47  ;;  %v4632_v22 = vpop.f32.mrb[249].mxu0 }
 0x2eb   : > { %8823 = vmatprep.mubr.msk.bf16.mxu1 %vm2449_vm10, %v12615_v43  ;;  %v11532_v17 = vsel %vm4817_vm3, 0.0, %v8897_v47  ;;  %vm4815_vm4 = vcmp.ne.f32.partialorder %v4632_v22, %v4632_v22  ;;  %v8898_v55 = vpop.f32.mrb[250].mxu0 }
 0x2ec   : > { %v8015_v36 = vpack.c.bf16 %v11532_v17, %v11532_v17  ;;  %v11536_v13 = vsel %vm4815_vm4, 0.0, %v4632_v22  ;;  %vm4818_vm0 = vcmp.ne.f32.partialorder %v8898_v55, %v8898_v55  ;;  %v4635_v62 = vpop.f32.mrb[251].mxu0 }
 0x2ed   : > { %v8013_v5 = vpack.c.bf16 %v11536_v13, %v11536_v13  ;;  %v11540_v57 = vsel %vm4818_vm0, 0.0, %v8898_v55  ;;  %vm4816_vm5 = vcmp.ne.f32.partialorder %v4635_v62, %v4635_v62 }
 0x2ee   : > { %7713 = vst.msk [vmem:[%s9990_s17 + $0x368] sm:$0xf] %vm1592_vm2, %v8015_v36  ;;  %v8016_v47 = vpack.c.bf16 %v11540_v57, %v11540_v57  ;;  %v11548_v43 = vsel %vm4816_vm5, 0.0, %v4635_v62 }
 0x2ef   : > { %7711 = vst.msk [vmem:[%s9990_s17 + $0x360] sm:$0xf] %vm1592_vm2, %v8013_v5  ;;  %v8014_v55 = vpack.c.bf16 %v11548_v43, %v11548_v43  ;;  %v12617_v5 = vpack.c.bf16 %v11004_v50, %v10992_v0  ;;  %v12618_v50 = vpack.c.bf16 %v10996_v54, %v10988_v34 }
 0x2f0   : > { %7714 = vst.msk [vmem:[%s9990_s17 + $0x36c] sm:$0xf] %vm1592_vm2, %v8016_v47 }
 0x2f1   : > { %7712 = vst.msk [vmem:[%s9990_s17 + $0x364] sm:$0xf] %vm1592_vm2, %v8014_v55  ;;  %v8901_v36 = vpop.f32.mrb[252].mxu0 }
 0x2f2   : > { %8824 = vmatmul.mubr.msk.bf16.gmra.mrb[56].mxu1 %vm2449_vm10, %v12616_v19  ;;  %vm4821_vm6 = vcmp.ne.f32.partialorder %v8901_v36, %v8901_v36  ;;  %v4648_v62 = vpop.f32.mrb[253].mxu0 }
 0x2f3   : > { %8827 = vmatprep.mubr.msk.bf16.mxu1 %vm2449_vm10, %v12617_v5  ;;  %v11568_v22 = vsel %vm4821_vm6, 0.0, %v8901_v36  ;;  %vm4819_vm7 = vcmp.ne.f32.partialorder %v4648_v62, %v4648_v62  ;;  %v8902_v47 = vpop.f32.mrb[254].mxu0 }
 0x2f4   : > { %v8019_v55 = vpack.c.bf16 %v11568_v22, %v11568_v22  ;;  %v11572_v51 = vsel %vm4819_vm7, 0.0, %v4648_v62  ;;  %vm4822_vm8 = vcmp.ne.f32.partialorder %v8902_v47, %v8902_v47  ;;  %v4651_v35 = vpop.f32.mrb[255].mxu0 }
 0x2f5   : > { %v8017_v19 = vpack.c.bf16 %v11572_v51, %v11572_v51  ;;  %v11576_v0 = vsel %vm4822_vm8, 0.0, %v8902_v47  ;;  %vm4820_vm9 = vcmp.ne.f32.partialorder %v4651_v35, %v4651_v35 }
 0x2f6   : > { %7717 = vst.msk [vmem:[%s9990_s17 + $0x378] sm:$0xf] %vm1592_vm2, %v8019_v55  ;;  %v8020_v36 = vpack.c.bf16 %v11576_v0, %v11576_v0  ;;  %v11584_v5 = vsel %vm4820_vm9, 0.0, %v4651_v35 }
 0x2f7   : > { %7715 = vst.msk [vmem:[%s9990_s17 + $0x370] sm:$0xf] %vm1592_vm2, %v8017_v19  ;;  %v8018_v47 = vpack.c.bf16 %v11584_v5, %v11584_v5  ;;  %v12619_v19 = vpack.c.bf16 %v11040_v31, %v11028_v56  ;;  %v12620_v31 = vpack.c.bf16 %v11032_v16, %v11024_v3 }
 0x2f8   : > { %7718 = vst.msk [vmem:[%s9990_s17 + $0x37c] sm:$0xf] %vm1592_vm2, %v8020_v36 }
 0x2f9   : > { %7716 = vst.msk [vmem:[%s9990_s17 + $0x374] sm:$0xf] %vm1592_vm2, %v8018_v47  ;;  %v8905_v55 = vpop.f32.mrb[0].mxu0 }
 0x2fa   : > { %8828 = vmatmul.mubr.msk.bf16.gmra.mrb[60].mxu1 %vm2449_vm10, %v12618_v50  ;;  %vm4825_vm11 = vcmp.ne.f32.partialorder %v8905_v55, %v8905_v55  ;;  %v4664_v35 = vpop.f32.mrb[1].mxu0 }
 0x2fb   : > { %8831 = vmatprep.mubr.msk.bf16.mxu1 %vm2449_vm10, %v12619_v19  ;;  %v11604_v62 = vsel %vm4825_vm11, 0.0, %v8905_v55  ;;  %vm4823_vm12 = vcmp.ne.f32.partialorder %v4664_v35, %v4664_v35  ;;  %v8906_v36 = vpop.f32.mrb[2].mxu0 }
 0x2fc   : > { %v8023_v47 = vpack.c.bf16 %v11604_v62, %v11604_v62  ;;  %v11608_v34 = vsel %vm4823_vm12, 0.0, %v4664_v35  ;;  %vm4826_vm13 = vcmp.ne.f32.partialorder %v8906_v36, %v8906_v36  ;;  %v4667_v54 = vpop.f32.mrb[3].mxu0 }
 0x2fd   : > { %v8021_v50 = vpack.c.bf16 %v11608_v34, %v11608_v34  ;;  %v11612_v56 = vsel %vm4826_vm13, 0.0, %v8906_v36  ;;  %vm4824_vm14 = vcmp.ne.f32.partialorder %v4667_v54, %v4667_v54 }
 0x2fe   : > { %7721 = vst.msk [vmem:[%s9990_s17 + $0x388] sm:$0xf] %vm1592_vm2, %v8023_v47  ;;  %v8024_v55 = vpack.c.bf16 %v11612_v56, %v11612_v56  ;;  %v11620_v19 = vsel %vm4824_vm14, 0.0, %v4667_v54 }
 0x2ff   : > { %7719 = vst.msk [vmem:[%s9990_s17 + $0x380] sm:$0xf] %vm1592_vm2, %v8021_v50  ;;  %v8022_v36 = vpack.c.bf16 %v11620_v19, %v11620_v19  ;;  %v12621_v50 = vpack.c.bf16 %v11076_v26, %v11064_v45  ;;  %v12623_v26 = vld [vmem:[#allocation6_spill] sm:$0xff] }
 0x300   : > { %7722 = vst.msk [vmem:[%s9990_s17 + $0x38c] sm:$0xf] %vm1592_vm2, %v8024_v55  ;;  %v12625_v58 = vpack.c.bf16 %v12623_v26, %v12624_v15 }
 0x301   : > { %7720 = vst.msk [vmem:[%s9990_s17 + $0x384] sm:$0xf] %vm1592_vm2, %v8022_v36  ;;  %v8909_v47 = vpop.f32.mrb[4].mxu0 }
 0x302   : > { %8832 = vmatmul.mubr.msk.bf16.gmra.mrb[64].mxu1 %vm2449_vm10, %v12620_v31  ;;  %vm4829_vm15 = vcmp.ne.f32.partialorder %v8909_v47, %v8909_v47  ;;  %v4680_v54 = vpop.f32.mrb[5].mxu0 }
 0x303   : > { %8835 = vmatprep.mubr.msk.bf16.mxu1 %vm2449_vm10, %v12621_v50  ;;  %v11640_v35 = vsel %vm4829_vm15, 0.0, %v8909_v47  ;;  %vm4827_vm1 = vcmp.ne.f32.partialorder %v4680_v54, %v4680_v54  ;;  %v8910_v55 = vpop.f32.mrb[6].mxu0 }
 0x304   : > { %12622 = vst [vmem:[#allocation17_spill] sm:$0xff] %v11640_v35  ;;  %v8027_v36 = vpack.c.bf16 %v11640_v35, %v11640_v35  ;;  %v11644_v3 = vsel %vm4827_vm1, 0.0, %v4680_v54  ;;  %vm4830_vm3 = vcmp.ne.f32.partialorder %v8910_v55, %v8910_v55  ;;  %v4683_v16 = vpop.f32.mrb[7].mxu0 }
 0x305   : > { %v8025_v31 = vpack.c.bf16 %v11644_v3, %v11644_v3  ;;  %v11648_v45 = vsel %vm4830_vm3, 0.0, %v8910_v55  ;;  %vm4828_vm4 = vcmp.ne.f32.partialorder %v4683_v16, %v4683_v16 }
 0x306   : > { %7725 = vst.msk [vmem:[%s9990_s17 + $0x398] sm:$0xf] %vm1592_vm2, %v8027_v36  ;;  %v8028_v47 = vpack.c.bf16 %v11648_v45, %v11648_v45  ;;  %v11656_v50 = vsel %vm4828_vm4, 0.0, %v4683_v16 }
 0x307   : > { %7723 = vst.msk [vmem:[%s9990_s17 + $0x390] sm:$0xf] %vm1592_vm2, %v8025_v31  ;;  %v8026_v55 = vpack.c.bf16 %v11656_v50, %v11656_v50  ;;  %v12626_v31 = vpack.c.bf16 %v11112_v53, %v11100_v49  ;;  %v12629_v53 = vld [vmem:[#allocation9_spill] sm:$0xff] }
 0x308   : > { %7726 = vst.msk [vmem:[%s9990_s17 + $0x39c] sm:$0xf] %vm1592_vm2, %v8028_v47 }
 0x309   : > { %7724 = vst.msk [vmem:[%s9990_s17 + $0x394] sm:$0xf] %vm1592_vm2, %v8026_v55  ;;  %v8913_v36 = vpop.f32.mrb[8].mxu0 }
 0x30a   : > { %8836 = vmatmul.mubr.msk.bf16.gmra.mrb[68].mxu1 %vm2449_vm10, %v12625_v58  ;;  %vm4833_vm0 = vcmp.ne.f32.partialorder %v8913_v36, %v8913_v36  ;;  %v4696_v16 = vpop.f32.mrb[9].mxu0 }
 0x30b   : > { %8839 = vmatprep.mubr.msk.bf16.mxu1 %vm2449_vm10, %v12626_v31  ;;  %v11676_v54 = vsel %vm4833_vm0, 0.0, %v8913_v36  ;;  %vm4831_vm5 = vcmp.ne.f32.partialorder %v4696_v16, %v4696_v16  ;;  %v8914_v47 = vpop.f32.mrb[10].mxu0 }
 0x30c   : > { %12627 = vst [vmem:[#allocation18_spill] sm:$0xff] %v11676_v54  ;;  %v8031_v55 = vpack.c.bf16 %v11676_v54, %v11676_v54  ;;  %v11680_v15 = vsel %vm4831_vm5, 0.0, %v4696_v16  ;;  %vm4834_vm6 = vcmp.ne.f32.partialorder %v8914_v47, %v8914_v47  ;;  %v4699_v58 = vpop.f32.mrb[11].mxu0  ;;  %v12630_v54 = vld [vmem:[#allocation11_spill] sm:$0xff] }
 0x30d   : > { %v8029_v26 = vpack.c.bf16 %v11680_v15, %v11680_v15  ;;  %v11684_v49 = vsel %vm4834_vm6, 0.0, %v8914_v47  ;;  %vm4832_vm7 = vcmp.ne.f32.partialorder %v4699_v58, %v4699_v58  ;;  %v12631_v35 = vpack.c.bf16 %v12629_v53, %v12630_v54 }
 0x30e   : > { %12628 = vst [vmem:[#allocation16_spill] sm:$0xff] %v11684_v49  ;;  %7729 = vst.msk [vmem:[%s9990_s17 + $0x3a8] sm:$0xf] %vm1592_vm2, %v8031_v55  ;;  %v8032_v36 = vpack.c.bf16 %v11684_v49, %v11684_v49  ;;  %v11692_v31 = vsel %vm4832_vm7, 0.0, %v4699_v58 }
 0x30f   : > { %7727 = vst.msk [vmem:[%s9990_s17 + $0x3a0] sm:$0xf] %vm1592_vm2, %v8029_v26  ;;  %v8030_v47 = vpack.c.bf16 %v11692_v31, %v11692_v31  ;;  %v12632_v26 = vpack.c.bf16 %v11148_v7, %v11136_v21  ;;  %v12635_v7 = vld [vmem:[#allocation8_spill] sm:$0xff] }
 0x310   : > { %7730 = vst.msk [vmem:[%s9990_s17 + $0x3ac] sm:$0xf] %vm1592_vm2, %v8032_v36 }
 0x311   : > { %7728 = vst.msk [vmem:[%s9990_s17 + $0x3a4] sm:$0xf] %vm1592_vm2, %v8030_v47  ;;  %v8917_v55 = vpop.f32.mrb[12].mxu0 }
 0x312   : > { %8840 = vmatmul.mubr.msk.bf16.gmra.mrb[72].mxu1 %vm2449_vm10, %v12631_v35  ;;  %vm4837_vm8 = vcmp.ne.f32.partialorder %v8917_v55, %v8917_v55  ;;  %v4712_v58 = vpop.f32.mrb[13].mxu0 }
 0x313   : > { %8843 = vmatprep.mubr.msk.bf16.mxu1 %vm2449_vm10, %v12632_v26  ;;  %v11712_v16 = vsel %vm4837_vm8, 0.0, %v8917_v55  ;;  %vm4835_vm9 = vcmp.ne.f32.partialorder %v4712_v58, %v4712_v58  ;;  %v8918_v36 = vpop.f32.mrb[14].mxu0 }
 0x314   : > { %12633 = vst [vmem:[#allocation23_spill] sm:$0xff] %v11712_v16  ;;  %v8035_v47 = vpack.c.bf16 %v11712_v16, %v11712_v16  ;;  %v11716_v54 = vsel %vm4835_vm9, 0.0, %v4712_v58  ;;  %vm4838_vm11 = vcmp.ne.f32.partialorder %v8918_v36, %v8918_v36  ;;  %v4715_v35 = vpop.f32.mrb[15].mxu0  ;;  %v12636_v16 = vld [vmem:[#allocation10_spill] sm:$0xff] }
 0x315   : > { %v8033_v53 = vpack.c.bf16 %v11716_v54, %v11716_v54  ;;  %v11720_v21 = vsel %vm4838_vm11, 0.0, %v8918_v36  ;;  %vm4836_vm12 = vcmp.ne.f32.partialorder %v4715_v35, %v4715_v35  ;;  %v12637_v49 = vpack.c.bf16 %v12635_v7, %v12636_v16 }
 0x316   : > { %12634 = vst [vmem:[#allocation21_spill] sm:$0xff] %v11720_v21  ;;  %7733 = vst.msk [vmem:[%s9990_s17 + $0x3b8] sm:$0xf] %vm1592_vm2, %v8035_v47  ;;  %v8036_v55 = vpack.c.bf16 %v11720_v21, %v11720_v21  ;;  %v11728_v26 = vsel %vm4836_vm12, 0.0, %v4715_v35 }
 0x317   : > { %7731 = vst.msk [vmem:[%s9990_s17 + $0x3b0] sm:$0xf] %vm1592_vm2, %v8033_v53  ;;  %v8034_v36 = vpack.c.bf16 %v11728_v26, %v11728_v26  ;;  %v12638_v53 = vpack.c.bf16 %v11184_v8, %v11172_v48  ;;  %v12640_v8 = vld [vmem:[#allocation13_spill] sm:$0xff] }
 0x318   : > { %7734 = vst.msk [vmem:[%s9990_s17 + $0x3bc] sm:$0xf] %vm1592_vm2, %v8036_v55 }
 0x319   : > { %7732 = vst.msk [vmem:[%s9990_s17 + $0x3b4] sm:$0xf] %vm1592_vm2, %v8034_v36  ;;  %v8921_v47 = vpop.f32.mrb[16].mxu0 }
 0x31a   : > { %8844 = vmatmul.mubr.msk.bf16.gmra.mrb[76].mxu1 %vm2449_vm10, %v12637_v49  ;;  %vm4841_vm13 = vcmp.ne.f32.partialorder %v8921_v47, %v8921_v47  ;;  %v4728_v35 = vpop.f32.mrb[17].mxu0 }
 0x31b   : > { %8847 = vmatprep.mubr.msk.bf16.mxu1 %vm2449_vm10, %v12638_v53  ;;  %v11748_v58 = vsel %vm4841_vm13, 0.0, %v8921_v47  ;;  %vm4839_vm14 = vcmp.ne.f32.partialorder %v4728_v35, %v4728_v35  ;;  %v8922_v55 = vpop.f32.mrb[18].mxu0 }
 0x31c   : > { %12639 = vst [vmem:[#allocation22_spill] sm:$0xff] %v11748_v58  ;;  %v8039_v36 = vpack.c.bf16 %v11748_v58, %v11748_v58  ;;  %v11752_v16 = vsel %vm4839_vm14, 0.0, %v4728_v35  ;;  %vm4842_vm15 = vcmp.ne.f32.partialorder %v8922_v55, %v8922_v55  ;;  %v4731_v49 = vpop.f32.mrb[19].mxu0  ;;  %v12641_v58 = vld [vmem:[#allocation15_spill] sm:$0xff] }
 0x31d   : > { %v8037_v7 = vpack.c.bf16 %v11752_v16, %v11752_v16  ;;  %v11756_v48 = vsel %vm4842_vm15, 0.0, %v8922_v55  ;;  %vm4840_vm1 = vcmp.ne.f32.partialorder %v4731_v49, %v4731_v49  ;;  %v12642_v21 = vpack.c.bf16 %v12640_v8, %v12641_v58 }
 0x31e   : > { %7737 = vst.msk [vmem:[%s9990_s17 + $0x3c8] sm:$0xf] %vm1592_vm2, %v8039_v36  ;;  %v8040_v47 = vpack.c.bf16 %v11756_v48, %v11756_v48  ;;  %v11764_v53 = vsel %vm4840_vm1, 0.0, %v4731_v49 }
 0x31f   : > { %7735 = vst.msk [vmem:[%s9990_s17 + $0x3c0] sm:$0xf] %vm1592_vm2, %v8037_v7  ;;  %v8038_v55 = vpack.c.bf16 %v11764_v53, %v11764_v53  ;;  %v12643_v7 = vpack.c.bf16 %v11220_v39, %v11208_v38  ;;  %v12647_v39 = vld [vmem:[#allocation14_spill] sm:$0xff] }
 0x320   : > { %7738 = vst.msk [vmem:[%s9990_s17 + $0x3cc] sm:$0xf] %vm1592_vm2, %v8040_v47 }
 0x321   : > { %7736 = vst.msk [vmem:[%s9990_s17 + $0x3c4] sm:$0xf] %vm1592_vm2, %v8038_v55  ;;  %v8925_v36 = vpop.f32.mrb[20].mxu0 }
 0x322   : > { %8848 = vmatmul.mubr.msk.bf16.gmra.mrb[80].mxu1 %vm2449_vm10, %v12642_v21  ;;  %vm4845_vm3 = vcmp.ne.f32.partialorder %v8925_v36, %v8925_v36  ;;  %v4744_v49 = vpop.f32.mrb[21].mxu0 }
 0x323   : > { %8851 = vmatprep.mubr.msk.bf16.mxu1 %vm2449_vm10, %v12643_v7  ;;  %v11784_v35 = vsel %vm4845_vm3, 0.0, %v8925_v36  ;;  %vm4843_vm4 = vcmp.ne.f32.partialorder %v4744_v49, %v4744_v49  ;;  %v8926_v47 = vpop.f32.mrb[22].mxu0 }
 0x324   : > { %12644 = vst [vmem:[#allocation20_spill] sm:$0xff] %v11784_v35  ;;  %v8043_v55 = vpack.c.bf16 %v11784_v35, %v11784_v35  ;;  %v11788_v58 = vsel %vm4843_vm4, 0.0, %v4744_v49  ;;  %vm4846_vm0 = vcmp.ne.f32.partialorder %v8926_v47, %v8926_v47  ;;  %v4747_v21 = vpop.f32.mrb[23].mxu0  ;;  %v12648_v35 = vpack.c.bf16 %v11212_v46, %v12647_v39 }
 0x325   : > { %12645 = vst [vmem:[#allocation27_spill] sm:$0xff] %v11788_v58  ;;  %v8041_v8 = vpack.c.bf16 %v11788_v58, %v11788_v58  ;;  %v11792_v38 = vsel %vm4846_vm0, 0.0, %v8926_v47  ;;  %vm4844_vm5 = vcmp.ne.f32.partialorder %v4747_v21, %v4747_v21 }
 0x326   : > { %12646 = vst [vmem:[#allocation25_spill] sm:$0xff] %v11792_v38  ;;  %7741 = vst.msk [vmem:[%s9990_s17 + $0x3d8] sm:$0xf] %vm1592_vm2, %v8043_v55  ;;  %v8044_v36 = vpack.c.bf16 %v11792_v38, %v11792_v38  ;;  %v11800_v7 = vsel %vm4844_vm5, 0.0, %v4747_v21 }
 0x327   : > { %7739 = vst.msk [vmem:[%s9990_s17 + $0x3d0] sm:$0xf] %vm1592_vm2, %v8041_v8  ;;  %v8042_v47 = vpack.c.bf16 %v11800_v7, %v11800_v7  ;;  %v12649_v8 = vpack.c.bf16 %v11256_v1, %v11244_v4 }
 0x328   : > { %7742 = vst.msk [vmem:[%s9990_s17 + $0x3dc] sm:$0xf] %vm1592_vm2, %v8044_v36 }
 0x329   : > { %7740 = vst.msk [vmem:[%s9990_s17 + $0x3d4] sm:$0xf] %vm1592_vm2, %v8042_v47  ;;  %v8929_v55 = vpop.f32.mrb[24].mxu0 }
 0x32a   : > { %8852 = vmatmul.mubr.msk.bf16.gmra.mrb[84].mxu1 %vm2449_vm10, %v12648_v35  ;;  %vm4849_vm6 = vcmp.ne.f32.partialorder %v8929_v55, %v8929_v55  ;;  %v4760_v21 = vpop.f32.mrb[25].mxu0 }
 0x32b   : > { %8855 = vmatprep.mubr.msk.bf16.mxu1 %vm2449_vm10, %v12649_v8  ;;  %v11820_v49 = vsel %vm4849_vm6, 0.0, %v8929_v55  ;;  %vm4847_vm7 = vcmp.ne.f32.partialorder %v4760_v21, %v4760_v21  ;;  %v8930_v36 = vpop.f32.mrb[26].mxu0 }
 0x32c   : > { %v8047_v47 = vpack.c.bf16 %v11820_v49, %v11820_v49  ;;  %v11824_v46 = vsel %vm4847_vm7, 0.0, %v4760_v21  ;;  %vm4850_vm8 = vcmp.ne.f32.partialorder %v8930_v36, %v8930_v36  ;;  %v4763_v35 = vpop.f32.mrb[27].mxu0 }
 0x32d   : > { %v8045_v39 = vpack.c.bf16 %v11824_v46, %v11824_v46  ;;  %v11828_v4 = vsel %vm4850_vm8, 0.0, %v8930_v36  ;;  %vm4848_vm9 = vcmp.ne.f32.partialorder %v4763_v35, %v4763_v35 }
 0x32e   : > { %7745 = vst.msk [vmem:[%s9990_s17 + $0x3e8] sm:$0xf] %vm1592_vm2, %v8047_v47  ;;  %v4948_v1 = vpack.c.bf16 %v11828_v4, %v11820_v49  ;;  %v8048_v55 = vpack.c.bf16 %v11828_v4, %v11828_v4  ;;  %v4912_v8 = vsel %vm4848_vm9, 0.0, %v4763_v35  ;;  %v12650_v47 = vld [vmem:[#allocation12_spill] sm:$0xff]  ;;  %v12652_v35 = vpack.c.bf16 %v11292_v14, %v11280_v2 }
 0x32f   : > { %7743 = vst.msk [vmem:[%s9990_s17 + $0x3e0] sm:$0xf] %vm1592_vm2, %v8045_v39  ;;  %v4947_v21 = vpack.c.bf16 %v4912_v8, %v11824_v46  ;;  %v8046_v38 = vpack.c.bf16 %v4912_v8, %v4912_v8  ;;  %v12651_v58 = vpack.c.bf16 %v11248_v12, %v12650_v47 }
 0x330   : > { %7746 = vst.msk [vmem:[%s9990_s17 + $0x3ec] sm:$0xf] %vm1592_vm2, %v8048_v55 }
 0x331   : > { %7744 = vst.msk [vmem:[%s9990_s17 + $0x3e4] sm:$0xf] %vm1592_vm2, %v8046_v38  ;;  %v8933_v36 = vpop.f32.mrb[28].mxu0 }
 0x332   : > { %8856 = vmatmul.mubr.msk.bf16.gmra.mrb[88].mxu1 %vm2449_vm10, %v12651_v58  ;;  %vm4853_vm11 = vcmp.ne.f32.partialorder %v8933_v36, %v8933_v36  ;;  %v4776_v49 = vpop.f32.mrb[29].mxu0 }
 0x333   : > { %8859 = vmatprep.mubr.msk.bf16.mxu1 %vm2449_vm10, %v12652_v35  ;;  %v4917_v46 = vsel %vm4853_vm11, 0.0, %v8933_v36  ;;  %vm4851_vm12 = vcmp.ne.f32.partialorder %v4776_v49, %v4776_v49  ;;  %v8934_v39 = vpop.f32.mrb[30].mxu0  ;;  %v12654_v35 = vpack.c.bf16 %v11328_v23, %v11316_v37  ;;  %v12660_v37 = vpack.c.bf16 %v11396_v18, %v11388_v33 }
 0x334   : > { %v8051_v38 = vpack.c.bf16 %v4917_v46, %v4917_v46  ;;  %v4915_v4 = vsel %vm4851_vm12, 0.0, %v4776_v49  ;;  %vm4854_vm13 = vcmp.ne.f32.partialorder %v8934_v39, %v8934_v39  ;;  %v4779_v55 = vpop.f32.mrb[31].mxu0  ;;  %v12653_v49 = vpack.c.bf16 %v11284_v44, %v11276_v32 }
 0x335   : > { %v8049_v12 = vpack.c.bf16 %v4915_v4, %v4915_v4  ;;  %v4918_v8 = vsel %vm4854_vm13, 0.0, %v8934_v39  ;;  %vm4852_vm14 = vcmp.ne.f32.partialorder %v4779_v55, %v4779_v55  ;;  %v12658_v32 = vpack.c.bf16 %v11360_v40, %v11352_v29 }
 0x336   : > { %7749 = vst.msk [vmem:[%s9990_s17 + $0x3f8] sm:$0xf] %vm1592_vm2, %v8051_v38  ;;  %v4950_v58 = vpack.c.bf16 %v4918_v8, %v4917_v46  ;;  %v8052_v47 = vpack.c.bf16 %v4918_v8, %v4918_v8  ;;  %v4916_v2 = vsel %vm4852_vm14, 0.0, %v4779_v55  ;;  %v12655_v46 = vld [vmem:[#allocation19_spill] sm:$0xff]  ;;  %v12657_v38 = vpack.c.bf16 %v11368_v27, %v11356_v30 }
 0x337   : > { %7747 = vst.msk [vmem:[%s9990_s17 + $0x3f0] sm:$0xf] %vm1592_vm2, %v8049_v12  ;;  %v4949_v14 = vpack.c.bf16 %v4916_v2, %v4915_v4  ;;  %v8050_v36 = vpack.c.bf16 %v4916_v2, %v4916_v2  ;;  %v12656_v39 = vpack.c.bf16 %v11320_v20, %v12655_v46  ;;  %v12659_v44 = vpack.c.bf16 %v11404_v6, %v11392_v61 }
 0x338   : > { %7750 = vst.msk [vmem:[%s9990_s17 + $0x3fc] sm:$0xf] %vm1592_vm2, %v8052_v47  ;;  %v12661_v20 = vpack.c.bf16 %v11440_v25, %v11428_v28  ;;  %v12662_v29 = vpack.c.bf16 %v11432_v24, %v11424_v59  ;;  %v12663_v23 = vpack.c.bf16 %v11476_v9, %v11464_v42  ;;  %v12664_v30 = vpack.c.bf16 %v11468_v41, %v11460_v10  ;;  %v12674_v25 = vld [vmem:[#allocation17_spill] sm:$0xff]  ;;  %v12677_v41 = vld [vmem:[#allocation16_spill] sm:$0xff]  ;;  %v12678_v9 = vld [vmem:[#allocation18_spill] sm:$0xff] }
 0x339   : > { %7748 = vst.msk [vmem:[%s9990_s17 + $0x3f4] sm:$0xf] %vm1592_vm2, %v8050_v36  ;;  %v12665_v40 = vpack.c.bf16 %v11512_v60, %v11500_v52  ;;  %v12666_v27 = vpack.c.bf16 %v11504_v11, %v11496_v63  ;;  %v12667_v33 = vpack.c.bf16 %v11548_v43, %v11536_v13  ;;  %v12668_v61 = vpack.c.bf16 %v11540_v57, %v11532_v17  ;;  %v12681_v11 = vld [vmem:[#allocation21_spill] sm:$0xff]  ;;  %v12682_v60 = vld [vmem:[#allocation23_spill] sm:$0xff]  ;;  %v12685_v57 = vld [vmem:[#allocation22_spill] sm:$0xff] }
 0x33a   : > { %8860 = vmatmul.mubr.msk.bf16.gmra.mrb[92].mxu1 %vm2449_vm10, %v12653_v49  ;;  %v12669_v18 = vpack.c.bf16 %v11584_v5, %v11572_v51  ;;  %v12670_v6 = vpack.c.bf16 %v11576_v0, %v11568_v22  ;;  %v12671_v59 = vpack.c.bf16 %v11620_v19, %v11608_v34  ;;  %v12672_v28 = vpack.c.bf16 %v11612_v56, %v11604_v62  ;;  %v12687_v22 = vld [vmem:[#allocation27_spill] sm:$0xff]  ;;  %v12689_v0 = vld [vmem:[#allocation25_spill] sm:$0xff]  ;;  %v12690_v5 = vld [vmem:[#allocation20_spill] sm:$0xff] }
 0x33b   : > { %8939 = vmatprep.mubr.msk.bf16.mxu1 %vm2449_vm10, %v12654_v35  ;;  %v12673_v24 = vpack.c.bf16 %v11656_v50, %v11644_v3  ;;  %v12675_v10 = vpack.c.bf16 %v11648_v45, %v12674_v25  ;;  %v12676_v42 = vpack.c.bf16 %v11692_v31, %v11680_v15  ;;  %v12679_v63 = vpack.c.bf16 %v12677_v41, %v12678_v9 }
 0x33c   : > { %v12680_v52 = vpack.c.bf16 %v11728_v26, %v11716_v54  ;;  %v12683_v17 = vpack.c.bf16 %v12681_v11, %v12682_v60  ;;  %v12684_v13 = vpack.c.bf16 %v11764_v53, %v11752_v16  ;;  %v12686_v43 = vpack.c.bf16 %v11756_v48, %v12685_v57 }
 0x33d   : > { %v12688_v51 = vpack.c.bf16 %v11800_v7, %v12687_v22  ;;  %v12691_v62 = vpack.c.bf16 %v12689_v0, %v12690_v5  ;;  %vm5706_vm2 = vcmask 64512  }
 0x342   : > { %8940 = vmatmul.mubr.msk.bf16.vlgmr.msra.gmra.mrb[32].mxu1 %vm2449_vm10, %v12656_v39 }
 0x343   : > { %8943 = vmatprep.mubr.msk.bf16.mxu1 %vm2449_vm10, %v12657_v38 }
 0x34a   : > { %8944 = vmatmul.mubr.msk.bf16.gmra.mrb[36].mxu1 %vm2449_vm10, %v12658_v32 }
 0x34b   : > { %8947 = vmatprep.mubr.msk.bf16.mxu1 %vm2449_vm10, %v12659_v44 }
 0x352   : > { %8948 = vmatmul.mubr.msk.bf16.gmra.mrb[40].mxu1 %vm2449_vm10, %v12660_v37 }
 0x353   : > { %8951 = vmatprep.mubr.msk.bf16.mxu1 %vm2449_vm10, %v12661_v20 }
 0x35a   : > { %8952 = vmatmul.mubr.msk.bf16.gmra.mrb[44].mxu1 %vm2449_vm10, %v12662_v29 }
 0x35b   : > { %8955 = vmatprep.mubr.msk.bf16.mxu1 %vm2449_vm10, %v12663_v23 }
 0x362   : > { %8956 = vmatmul.mubr.msk.bf16.gmra.mrb[48].mxu1 %vm2449_vm10, %v12664_v30 }
 0x363   : > { %8959 = vmatprep.mubr.msk.bf16.mxu1 %vm2449_vm10, %v12665_v40 }
 0x36a   : > { %8960 = vmatmul.mubr.msk.bf16.gmra.mrb[52].mxu1 %vm2449_vm10, %v12666_v27 }
 0x36b   : > { %8963 = vmatprep.mubr.msk.bf16.mxu1 %vm2449_vm10, %v12667_v33 }
 0x372   : > { %8964 = vmatmul.mubr.msk.bf16.gmra.mrb[56].mxu1 %vm2449_vm10, %v12668_v61 }
 0x373   : > { %8967 = vmatprep.mubr.msk.bf16.mxu1 %vm2449_vm10, %v12669_v18 }
 0x37a   : > { %8968 = vmatmul.mubr.msk.bf16.gmra.mrb[60].mxu1 %vm2449_vm10, %v12670_v6 }
 0x37b   : > { %8971 = vmatprep.mubr.msk.bf16.mxu1 %vm2449_vm10, %v12671_v59 }
 0x382   : > { %8972 = vmatmul.mubr.msk.bf16.gmra.mrb[64].mxu1 %vm2449_vm10, %v12672_v28 }
 0x383   : > { %8975 = vmatprep.mubr.msk.bf16.mxu1 %vm2449_vm10, %v12673_v24 }
 0x38a   : > { %8976 = vmatmul.mubr.msk.bf16.gmra.mrb[68].mxu1 %vm2449_vm10, %v12675_v10 }
 0x38b   : > { %8979 = vmatprep.mubr.msk.bf16.mxu1 %vm2449_vm10, %v12676_v42 }
 0x392   : > { %8980 = vmatmul.mubr.msk.bf16.gmra.mrb[72].mxu1 %vm2449_vm10, %v12679_v63 }
 0x393   : > { %8983 = vmatprep.mubr.msk.bf16.mxu1 %vm2449_vm10, %v12680_v52 }
 0x39a   : > { %8984 = vmatmul.mubr.msk.bf16.gmra.mrb[76].mxu1 %vm2449_vm10, %v12683_v17 }
 0x39b   : > { %8987 = vmatprep.mubr.msk.bf16.mxu1 %vm2449_vm10, %v12684_v13 }
 0x3a2   : > { %8988 = vmatmul.mubr.msk.bf16.gmra.mrb[80].mxu1 %vm2449_vm10, %v12686_v43 }
 0x3a3   : > { %8991 = vmatprep.mubr.msk.bf16.mxu1 %vm2449_vm10, %v12688_v51 }
 0x3aa   : > { %8992 = vmatmul.mubr.msk.bf16.gmra.mrb[84].mxu1 %vm2449_vm10, %v12691_v62 }
 0x3ab   : > { %8995 = vmatprep.mubr.msk.bf16.mxu1 %vm2449_vm10, %v4947_v21 }
 0x3b2   : > { %8996 = vmatmul.mubr.msk.bf16.gmra.mrb[88].mxu1 %vm2449_vm10, %v4948_v1 }
 0x3b3   : > { %8999 = vmatprep.mubr.msk.bf16.mxu1 %vm2449_vm10, %v4949_v14 }
 0x3ba   : > { %9000 = vmatmul.mubr.msk.bf16.gmra.mrb[92].mxu1 %vm2449_vm10, %v4950_v58 }
 0x415   : > { %v8941_v34 = vpop.f32.mrb[32].mxu1 }
 0x416   : > { %5709 = vst.msk [vmem:[%s11984_s21 + $0x10] sm:$0xff] %vm5706_vm2, %v8941_v34  ;;  %v5387_v56 = vpop.f32.mrb[33].mxu1  ;;  %v5806_v34 = vld [vmem:[%s9990_s17] sm:$0xff] (%p9418_p5)  }
 0x417   : > { %5707 = vst.msk [vmem:[%s11984_s21] sm:$0xff] %vm5706_vm2, %v5387_v56  ;;  %v8942_v19 = vpop.f32.mrb[34].mxu1  ;;  %v5810_v56 = vld [vmem:[%s9990_s17 + $0x8] sm:$0xff] (%p9418_p5)   ;;  %5807 = vst [vmem:[%s12124_s9] sm:$0xff] (%p9418_p5), %v5806_v34   ;;  %v6062_v34 = vld [vmem:[%s9990_s17 + $0x200] sm:$0xff] (%p9418_p5)  }
 0x418   : > { %5710 = vst.msk [vmem:[%s11984_s21 + $0x18] sm:$0xff] %vm5706_vm2, %v8942_v19  ;;  %v5390_v3 = vpop.f32.mrb[35].mxu1  ;;  %v5814_v19 = vld [vmem:[%s9990_s17 + $0x10] sm:$0xff] (%p9418_p5)   ;;  %5811 = vst [vmem:[%s12124_s9 + $0x8] sm:$0xff] (%p9418_p5), %v5810_v56   ;;  %v6066_v56 = vld [vmem:[%s9990_s17 + $0x208] sm:$0xff] (%p9418_p5)  }
 0x419   : > { %5708 = vst.msk [vmem:[%s11984_s21 + $0x8] sm:$0xff] %vm5706_vm2, %v5390_v3  ;;  %v5818_v3 = vld [vmem:[%s9990_s17 + $0x18] sm:$0xff] (%p9418_p5)   ;;  %5815 = vst [vmem:[%s12124_s9 + $0x10] sm:$0xff] (%p9418_p5), %v5814_v19   ;;  %v6070_v19 = vld [vmem:[%s9990_s17 + $0x210] sm:$0xff] (%p9418_p5)  }
 0x41a   : > { %5819 = vst [vmem:[%s12124_s9 + $0x18] sm:$0xff] (%p9418_p5), %v5818_v3   ;;  %6063 = vst [vmem:[%s12124_s9 + $0x400] sm:$0xff] (%p9418_p5), %v6062_v34   ;;  %v6074_v3 = vld [vmem:[%s9990_s17 + $0x218] sm:$0xff] (%p9418_p5)  }
 0x41b   : > { %6067 = vst [vmem:[%s12124_s9 + $0x408] sm:$0xff] (%p9418_p5), %v6066_v56   ;;  %6071 = vst [vmem:[%s12124_s9 + $0x410] sm:$0xff] (%p9418_p5), %v6070_v19  }
 0x41c   : > { %6075 = vst [vmem:[%s12124_s9 + $0x418] sm:$0xff] (%p9418_p5), %v6074_v3  }
 0x41d   : > { %v8945_v45 = vpop.f32.mrb[36].mxu1 }
 0x41e   : > { %5713 = vst.msk [vmem:[%s11984_s21 + $0x30] sm:$0xff] %vm5706_vm2, %v8945_v45  ;;  %v5403_v50 = vpop.f32.mrb[37].mxu1  ;;  %v5822_v45 = vld [vmem:[%s9990_s17 + $0x20] sm:$0xff] (%p9418_p5)  }
 0x41f   : > { %5711 = vst.msk [vmem:[%s11984_s21 + $0x20] sm:$0xff] %vm5706_vm2, %v5403_v50  ;;  %v8946_v15 = vpop.f32.mrb[38].mxu1  ;;  %v5826_v50 = vld [vmem:[%s9990_s17 + $0x28] sm:$0xff] (%p9418_p5)   ;;  %5823 = vst [vmem:[%s12124_s9 + $0x20] sm:$0xff] (%p9418_p5), %v5822_v45   ;;  %v6078_v45 = vld [vmem:[%s9990_s17 + $0x220] sm:$0xff] (%p9418_p5)  }
 0x420   : > { %5714 = vst.msk [vmem:[%s11984_s21 + $0x38] sm:$0xff] %vm5706_vm2, %v8946_v15  ;;  %v5406_v31 = vpop.f32.mrb[39].mxu1  ;;  %5827 = vst [vmem:[%s12124_s9 + $0x28] sm:$0xff] (%p9418_p5), %v5826_v50   ;;  %v5830_v15 = vld [vmem:[%s9990_s17 + $0x30] sm:$0xff] (%p9418_p5)   ;;  %v6082_v50 = vld [vmem:[%s9990_s17 + $0x228] sm:$0xff] (%p9418_p5)  }
 0x421   : > { %5712 = vst.msk [vmem:[%s11984_s21 + $0x28] sm:$0xff] %vm5706_vm2, %v5406_v31  ;;  %v5834_v31 = vld [vmem:[%s9990_s17 + $0x38] sm:$0xff] (%p9418_p5)   ;;  %5831 = vst [vmem:[%s12124_s9 + $0x30] sm:$0xff] (%p9418_p5), %v5830_v15   ;;  %v6086_v15 = vld [vmem:[%s9990_s17 + $0x230] sm:$0xff] (%p9418_p5)  }
 0x422   : > { %5835 = vst [vmem:[%s12124_s9 + $0x38] sm:$0xff] (%p9418_p5), %v5834_v31   ;;  %6079 = vst [vmem:[%s12124_s9 + $0x420] sm:$0xff] (%p9418_p5), %v6078_v45   ;;  %v6090_v31 = vld [vmem:[%s9990_s17 + $0x238] sm:$0xff] (%p9418_p5)  }
 0x423   : > { %6083 = vst [vmem:[%s12124_s9 + $0x428] sm:$0xff] (%p9418_p5), %v6082_v50   ;;  %6087 = vst [vmem:[%s12124_s9 + $0x430] sm:$0xff] (%p9418_p5), %v6086_v15  }
 0x424   : > { %6091 = vst [vmem:[%s12124_s9 + $0x438] sm:$0xff] (%p9418_p5), %v6090_v31  }
 0x425   : > { %v8949_v54 = vpop.f32.mrb[40].mxu1 }
 0x426   : > { %5717 = vst.msk [vmem:[%s11984_s21 + $0x50] sm:$0xff] %vm5706_vm2, %v8949_v54  ;;  %v5419_v26 = vpop.f32.mrb[41].mxu1  ;;  %v5838_v54 = vld [vmem:[%s9990_s17 + $0x40] sm:$0xff] (%p9418_p5)  }
 0x427   : > { %5715 = vst.msk [vmem:[%s11984_s21 + $0x40] sm:$0xff] %vm5706_vm2, %v5419_v26  ;;  %v8950_v16 = vpop.f32.mrb[42].mxu1  ;;  %5839 = vst [vmem:[%s12124_s9 + $0x40] sm:$0xff] (%p9418_p5), %v5838_v54   ;;  %v5842_v26 = vld [vmem:[%s9990_s17 + $0x48] sm:$0xff] (%p9418_p5)   ;;  %v6094_v54 = vld [vmem:[%s9990_s17 + $0x240] sm:$0xff] (%p9418_p5)  }
 0x428   : > { %5718 = vst.msk [vmem:[%s11984_s21 + $0x58] sm:$0xff] %vm5706_vm2, %v8950_v16  ;;  %v5422_v48 = vpop.f32.mrb[43].mxu1  ;;  %v5846_v16 = vld [vmem:[%s9990_s17 + $0x50] sm:$0xff] (%p9418_p5)   ;;  %5843 = vst [vmem:[%s12124_s9 + $0x48] sm:$0xff] (%p9418_p5), %v5842_v26   ;;  %v6098_v26 = vld [vmem:[%s9990_s17 + $0x248] sm:$0xff] (%p9418_p5)  }
 0x429   : > { %5716 = vst.msk [vmem:[%s11984_s21 + $0x48] sm:$0xff] %vm5706_vm2, %v5422_v48  ;;  %v5850_v48 = vld [vmem:[%s9990_s17 + $0x58] sm:$0xff] (%p9418_p5)   ;;  %5847 = vst [vmem:[%s12124_s9 + $0x50] sm:$0xff] (%p9418_p5), %v5846_v16   ;;  %v6102_v16 = vld [vmem:[%s9990_s17 + $0x250] sm:$0xff] (%p9418_p5)  }
 0x42a   : > { %5851 = vst [vmem:[%s12124_s9 + $0x58] sm:$0xff] (%p9418_p5), %v5850_v48   ;;  %6095 = vst [vmem:[%s12124_s9 + $0x440] sm:$0xff] (%p9418_p5), %v6094_v54   ;;  %v6106_v48 = vld [vmem:[%s9990_s17 + $0x258] sm:$0xff] (%p9418_p5)  }
 0x42b   : > { %6099 = vst [vmem:[%s12124_s9 + $0x448] sm:$0xff] (%p9418_p5), %v6098_v26   ;;  %6103 = vst [vmem:[%s12124_s9 + $0x450] sm:$0xff] (%p9418_p5), %v6102_v16  }
 0x42c   : > { %6107 = vst [vmem:[%s12124_s9 + $0x458] sm:$0xff] (%p9418_p5), %v6106_v48  }
 0x42d   : > { %v8953_v53 = vpop.f32.mrb[44].mxu1 }
 0x42e   : > { %5721 = vst.msk [vmem:[%s11984_s21 + $0x70] sm:$0xff] %vm5706_vm2, %v8953_v53  ;;  %v5435_v7 = vpop.f32.mrb[45].mxu1  ;;  %v5854_v53 = vld [vmem:[%s9990_s17 + $0x60] sm:$0xff] (%p9418_p5)  }
 0x42f   : > { %5719 = vst.msk [vmem:[%s11984_s21 + $0x60] sm:$0xff] %vm5706_vm2, %v5435_v7  ;;  %v8954_v1 = vpop.f32.mrb[46].mxu1  ;;  %v5858_v7 = vld [vmem:[%s9990_s17 + $0x68] sm:$0xff] (%p9418_p5)   ;;  %5855 = vst [vmem:[%s12124_s9 + $0x60] sm:$0xff] (%p9418_p5), %v5854_v53   ;;  %v6110_v53 = vld [vmem:[%s9990_s17 + $0x260] sm:$0xff] (%p9418_p5)  }
 0x430   : > { %5722 = vst.msk [vmem:[%s11984_s21 + $0x78] sm:$0xff] %vm5706_vm2, %v8954_v1  ;;  %v5438_v21 = vpop.f32.mrb[47].mxu1  ;;  %v5862_v1 = vld [vmem:[%s9990_s17 + $0x70] sm:$0xff] (%p9418_p5)   ;;  %5859 = vst [vmem:[%s12124_s9 + $0x68] sm:$0xff] (%p9418_p5), %v5858_v7   ;;  %v6114_v7 = vld [vmem:[%s9990_s17 + $0x268] sm:$0xff] (%p9418_p5)  }
 0x431   : > { %5720 = vst.msk [vmem:[%s11984_s21 + $0x68] sm:$0xff] %vm5706_vm2, %v5438_v21  ;;  %5863 = vst [vmem:[%s12124_s9 + $0x70] sm:$0xff] (%p9418_p5), %v5862_v1   ;;  %v5866_v21 = vld [vmem:[%s9990_s17 + $0x78] sm:$0xff] (%p9418_p5)   ;;  %v6118_v1 = vld [vmem:[%s9990_s17 + $0x270] sm:$0xff] (%p9418_p5)  }
 0x432   : > { %5867 = vst [vmem:[%s12124_s9 + $0x78] sm:$0xff] (%p9418_p5), %v5866_v21   ;;  %6111 = vst [vmem:[%s12124_s9 + $0x460] sm:$0xff] (%p9418_p5), %v6110_v53   ;;  %v6122_v21 = vld [vmem:[%s9990_s17 + $0x278] sm:$0xff] (%p9418_p5)  }
 0x433   : > { %6115 = vst [vmem:[%s12124_s9 + $0x468] sm:$0xff] (%p9418_p5), %v6114_v7   ;;  %6119 = vst [vmem:[%s12124_s9 + $0x470] sm:$0xff] (%p9418_p5), %v6118_v1  }
 0x434   : > { %6123 = vst [vmem:[%s12124_s9 + $0x478] sm:$0xff] (%p9418_p5), %v6122_v21  }
 0x435   : > { %v8957_v4 = vpop.f32.mrb[48].mxu1 }
 0x436   : > { %5725 = vst.msk [vmem:[%s11984_s21 + $0x90] sm:$0xff] %vm5706_vm2, %v8957_v4  ;;  %v5451_v55 = vpop.f32.mrb[49].mxu1  ;;  %v5870_v4 = vld [vmem:[%s9990_s17 + $0x80] sm:$0xff] (%p9418_p5)  }
 0x437   : > { %5723 = vst.msk [vmem:[%s11984_s21 + $0x80] sm:$0xff] %vm5706_vm2, %v5451_v55  ;;  %v8958_v12 = vpop.f32.mrb[50].mxu1  ;;  %v5874_v55 = vld [vmem:[%s9990_s17 + $0x88] sm:$0xff] (%p9418_p5)   ;;  %5871 = vst [vmem:[%s12124_s9 + $0x80] sm:$0xff] (%p9418_p5), %v5870_v4   ;;  %v6126_v4 = vld [vmem:[%s9990_s17 + $0x280] sm:$0xff] (%p9418_p5)  }
 0x438   : > { %5726 = vst.msk [vmem:[%s11984_s21 + $0x98] sm:$0xff] %vm5706_vm2, %v8958_v12  ;;  %v5454_v8 = vpop.f32.mrb[51].mxu1  ;;  %5875 = vst [vmem:[%s12124_s9 + $0x88] sm:$0xff] (%p9418_p5), %v5874_v55   ;;  %v5878_v12 = vld [vmem:[%s9990_s17 + $0x90] sm:$0xff] (%p9418_p5)   ;;  %v6130_v55 = vld [vmem:[%s9990_s17 + $0x288] sm:$0xff] (%p9418_p5)  }
 0x439   : > { %5724 = vst.msk [vmem:[%s11984_s21 + $0x88] sm:$0xff] %vm5706_vm2, %v5454_v8  ;;  %v5882_v8 = vld [vmem:[%s9990_s17 + $0x98] sm:$0xff] (%p9418_p5)   ;;  %5879 = vst [vmem:[%s12124_s9 + $0x90] sm:$0xff] (%p9418_p5), %v5878_v12   ;;  %v6134_v12 = vld [vmem:[%s9990_s17 + $0x290] sm:$0xff] (%p9418_p5)  }
 0x43a   : > { %5883 = vst [vmem:[%s12124_s9 + $0x98] sm:$0xff] (%p9418_p5), %v5882_v8   ;;  %6127 = vst [vmem:[%s12124_s9 + $0x480] sm:$0xff] (%p9418_p5), %v6126_v4   ;;  %v6138_v8 = vld [vmem:[%s9990_s17 + $0x298] sm:$0xff] (%p9418_p5)  }
 0x43b   : > { %6131 = vst [vmem:[%s12124_s9 + $0x488] sm:$0xff] (%p9418_p5), %v6130_v55   ;;  %6135 = vst [vmem:[%s12124_s9 + $0x490] sm:$0xff] (%p9418_p5), %v6134_v12  }
 0x43c   : > { %6139 = vst [vmem:[%s12124_s9 + $0x498] sm:$0xff] (%p9418_p5), %v6138_v8  }
 0x43d   : > { %v8961_v58 = vpop.f32.mrb[52].mxu1 }
 0x43e   : > { %5729 = vst.msk [vmem:[%s11984_s21 + $0xb0] sm:$0xff] %vm5706_vm2, %v8961_v58  ;;  %v5467_v47 = vpop.f32.mrb[53].mxu1  ;;  %v5886_v58 = vld [vmem:[%s9990_s17 + $0xa0] sm:$0xff] (%p9418_p5)  }
 0x43f   : > { %5727 = vst.msk [vmem:[%s11984_s21 + $0xa0] sm:$0xff] %vm5706_vm2, %v5467_v47  ;;  %v8962_v2 = vpop.f32.mrb[54].mxu1  ;;  %5887 = vst [vmem:[%s12124_s9 + $0xa0] sm:$0xff] (%p9418_p5), %v5886_v58   ;;  %v5890_v47 = vld [vmem:[%s9990_s17 + $0xa8] sm:$0xff] (%p9418_p5)   ;;  %v6142_v58 = vld [vmem:[%s9990_s17 + $0x2a0] sm:$0xff] (%p9418_p5)  }
 0x440   : > { %5730 = vst.msk [vmem:[%s11984_s21 + $0xb8] sm:$0xff] %vm5706_vm2, %v8962_v2  ;;  %v5470_v14 = vpop.f32.mrb[55].mxu1  ;;  %v5894_v2 = vld [vmem:[%s9990_s17 + $0xb0] sm:$0xff] (%p9418_p5)   ;;  %5891 = vst [vmem:[%s12124_s9 + $0xa8] sm:$0xff] (%p9418_p5), %v5890_v47   ;;  %v6146_v47 = vld [vmem:[%s9990_s17 + $0x2a8] sm:$0xff] (%p9418_p5)  }
 0x441   : > { %5728 = vst.msk [vmem:[%s11984_s21 + $0xa8] sm:$0xff] %vm5706_vm2, %v5470_v14  ;;  %v5898_v14 = vld [vmem:[%s9990_s17 + $0xb8] sm:$0xff] (%p9418_p5)   ;;  %5895 = vst [vmem:[%s12124_s9 + $0xb0] sm:$0xff] (%p9418_p5), %v5894_v2   ;;  %v6150_v2 = vld [vmem:[%s9990_s17 + $0x2b0] sm:$0xff] (%p9418_p5)  }
 0x442   : > { %5899 = vst [vmem:[%s12124_s9 + $0xb8] sm:$0xff] (%p9418_p5), %v5898_v14   ;;  %6143 = vst [vmem:[%s12124_s9 + $0x4a0] sm:$0xff] (%p9418_p5), %v6142_v58   ;;  %v6154_v14 = vld [vmem:[%s9990_s17 + $0x2b8] sm:$0xff] (%p9418_p5)  }
 0x443   : > { %6147 = vst [vmem:[%s12124_s9 + $0x4a8] sm:$0xff] (%p9418_p5), %v6146_v47   ;;  %6151 = vst [vmem:[%s12124_s9 + $0x4b0] sm:$0xff] (%p9418_p5), %v6150_v2  }
 0x444   : > { %6155 = vst [vmem:[%s12124_s9 + $0x4b8] sm:$0xff] (%p9418_p5), %v6154_v14  }
 0x445   : > { %v8965_v36 = vpop.f32.mrb[56].mxu1 }
 0x446   : > { %5733 = vst.msk [vmem:[%s11984_s21 + $0xd0] sm:$0xff] %vm5706_vm2, %v8965_v36  ;;  %v5483_v49 = vpop.f32.mrb[57].mxu1  ;;  %v5902_v36 = vld [vmem:[%s9990_s17 + $0xc0] sm:$0xff] (%p9418_p5)  }
 0x447   : > { %5731 = vst.msk [vmem:[%s11984_s21 + $0xc0] sm:$0xff] %vm5706_vm2, %v5483_v49  ;;  %v8966_v35 = vpop.f32.mrb[58].mxu1  ;;  %v5906_v49 = vld [vmem:[%s9990_s17 + $0xc8] sm:$0xff] (%p9418_p5)   ;;  %5903 = vst [vmem:[%s12124_s9 + $0xc0] sm:$0xff] (%p9418_p5), %v5902_v36   ;;  %v6158_v36 = vld [vmem:[%s9990_s17 + $0x2c0] sm:$0xff] (%p9418_p5)  }
 0x448   : > { %5734 = vst.msk [vmem:[%s11984_s21 + $0xd8] sm:$0xff] %vm5706_vm2, %v8966_v35  ;;  %v5486_v46 = vpop.f32.mrb[59].mxu1  ;;  %v5910_v35 = vld [vmem:[%s9990_s17 + $0xd0] sm:$0xff] (%p9418_p5)   ;;  %5907 = vst [vmem:[%s12124_s9 + $0xc8] sm:$0xff] (%p9418_p5), %v5906_v49   ;;  %v6162_v49 = vld [vmem:[%s9990_s17 + $0x2c8] sm:$0xff] (%p9418_p5)  }
 0x449   : > { %5732 = vst.msk [vmem:[%s11984_s21 + $0xc8] sm:$0xff] %vm5706_vm2, %v5486_v46  ;;  %5911 = vst [vmem:[%s12124_s9 + $0xd0] sm:$0xff] (%p9418_p5), %v5910_v35   ;;  %v5914_v46 = vld [vmem:[%s9990_s17 + $0xd8] sm:$0xff] (%p9418_p5)   ;;  %v6166_v35 = vld [vmem:[%s9990_s17 + $0x2d0] sm:$0xff] (%p9418_p5)  }
 0x44a   : > { %5915 = vst [vmem:[%s12124_s9 + $0xd8] sm:$0xff] (%p9418_p5), %v5914_v46   ;;  %6159 = vst [vmem:[%s12124_s9 + $0x4c0] sm:$0xff] (%p9418_p5), %v6158_v36   ;;  %v6170_v46 = vld [vmem:[%s9990_s17 + $0x2d8] sm:$0xff] (%p9418_p5)  }
 0x44b   : > { %6163 = vst [vmem:[%s12124_s9 + $0x4c8] sm:$0xff] (%p9418_p5), %v6162_v49   ;;  %6167 = vst [vmem:[%s12124_s9 + $0x4d0] sm:$0xff] (%p9418_p5), %v6166_v35  }
 0x44c   : > { %6171 = vst [vmem:[%s12124_s9 + $0x4d8] sm:$0xff] (%p9418_p5), %v6170_v46  }
 0x44d   : > { %v8969_v39 = vpop.f32.mrb[60].mxu1 }
 0x44e   : > { %5737 = vst.msk [vmem:[%s11984_s21 + $0xf0] sm:$0xff] %vm5706_vm2, %v8969_v39  ;;  %v5499_v38 = vpop.f32.mrb[61].mxu1  ;;  %v5918_v39 = vld [vmem:[%s9990_s17 + $0xe0] sm:$0xff] (%p9418_p5)  }
 0x44f   : > { %5735 = vst.msk [vmem:[%s11984_s21 + $0xe0] sm:$0xff] %vm5706_vm2, %v5499_v38  ;;  %v8970_v32 = vpop.f32.mrb[62].mxu1  ;;  %v5922_v38 = vld [vmem:[%s9990_s17 + $0xe8] sm:$0xff] (%p9418_p5)   ;;  %5919 = vst [vmem:[%s12124_s9 + $0xe0] sm:$0xff] (%p9418_p5), %v5918_v39   ;;  %v6174_v39 = vld [vmem:[%s9990_s17 + $0x2e0] sm:$0xff] (%p9418_p5)  }
 0x450   : > { %5738 = vst.msk [vmem:[%s11984_s21 + $0xf8] sm:$0xff] %vm5706_vm2, %v8970_v32  ;;  %v5502_v44 = vpop.f32.mrb[63].mxu1  ;;  %5923 = vst [vmem:[%s12124_s9 + $0xe8] sm:$0xff] (%p9418_p5), %v5922_v38   ;;  %v5926_v32 = vld [vmem:[%s9990_s17 + $0xf0] sm:$0xff] (%p9418_p5)   ;;  %v6178_v38 = vld [vmem:[%s9990_s17 + $0x2e8] sm:$0xff] (%p9418_p5)  }
 0x451   : > { %5736 = vst.msk [vmem:[%s11984_s21 + $0xe8] sm:$0xff] %vm5706_vm2, %v5502_v44  ;;  %v5930_v44 = vld [vmem:[%s9990_s17 + $0xf8] sm:$0xff] (%p9418_p5)   ;;  %5927 = vst [vmem:[%s12124_s9 + $0xf0] sm:$0xff] (%p9418_p5), %v5926_v32   ;;  %v6182_v32 = vld [vmem:[%s9990_s17 + $0x2f0] sm:$0xff] (%p9418_p5)  }
 0x452   : > { %5931 = vst [vmem:[%s12124_s9 + $0xf8] sm:$0xff] (%p9418_p5), %v5930_v44   ;;  %6175 = vst [vmem:[%s12124_s9 + $0x4e0] sm:$0xff] (%p9418_p5), %v6174_v39   ;;  %v6186_v44 = vld [vmem:[%s9990_s17 + $0x2f8] sm:$0xff] (%p9418_p5)  }
 0x453   : > { %6179 = vst [vmem:[%s12124_s9 + $0x4e8] sm:$0xff] (%p9418_p5), %v6178_v38   ;;  %6183 = vst [vmem:[%s12124_s9 + $0x4f0] sm:$0xff] (%p9418_p5), %v6182_v32  }
 0x454   : > { %6187 = vst [vmem:[%s12124_s9 + $0x4f8] sm:$0xff] (%p9418_p5), %v6186_v44  }
 0x455   : > { %v8973_v37 = vpop.f32.mrb[64].mxu1 }
 0x456   : > { %5741 = vst.msk [vmem:[%s11984_s21 + $0x110] sm:$0xff] %vm5706_vm2, %v8973_v37  ;;  %v5515_v20 = vpop.f32.mrb[65].mxu1  ;;  %v5934_v37 = vld [vmem:[%s9990_s17 + $0x100] sm:$0xff] (%p9418_p5)  }
 0x457   : > { %5739 = vst.msk [vmem:[%s11984_s21 + $0x100] sm:$0xff] %vm5706_vm2, %v5515_v20  ;;  %v8974_v29 = vpop.f32.mrb[66].mxu1  ;;  %5935 = vst [vmem:[%s12124_s9 + $0x200] sm:$0xff] (%p9418_p5), %v5934_v37   ;;  %v5938_v20 = vld [vmem:[%s9990_s17 + $0x108] sm:$0xff] (%p9418_p5)   ;;  %v6190_v37 = vld [vmem:[%s9990_s17 + $0x300] sm:$0xff] (%p9418_p5)  }
 0x458   : > { %5742 = vst.msk [vmem:[%s11984_s21 + $0x118] sm:$0xff] %vm5706_vm2, %v8974_v29  ;;  %v5518_v23 = vpop.f32.mrb[67].mxu1  ;;  %v5942_v29 = vld [vmem:[%s9990_s17 + $0x110] sm:$0xff] (%p9418_p5)   ;;  %5939 = vst [vmem:[%s12124_s9 + $0x208] sm:$0xff] (%p9418_p5), %v5938_v20   ;;  %v6194_v20 = vld [vmem:[%s9990_s17 + $0x308] sm:$0xff] (%p9418_p5)  }
 0x459   : > { %5740 = vst.msk [vmem:[%s11984_s21 + $0x108] sm:$0xff] %vm5706_vm2, %v5518_v23  ;;  %v5946_v23 = vld [vmem:[%s9990_s17 + $0x118] sm:$0xff] (%p9418_p5)   ;;  %5943 = vst [vmem:[%s12124_s9 + $0x210] sm:$0xff] (%p9418_p5), %v5942_v29   ;;  %v6198_v29 = vld [vmem:[%s9990_s17 + $0x310] sm:$0xff] (%p9418_p5)  }
 0x45a   : > { %5947 = vst [vmem:[%s12124_s9 + $0x218] sm:$0xff] (%p9418_p5), %v5946_v23   ;;  %6191 = vst [vmem:[%s12124_s9 + $0x600] sm:$0xff] (%p9418_p5), %v6190_v37   ;;  %v6202_v23 = vld [vmem:[%s9990_s17 + $0x318] sm:$0xff] (%p9418_p5)  }
 0x45b   : > { %6195 = vst [vmem:[%s12124_s9 + $0x608] sm:$0xff] (%p9418_p5), %v6194_v20   ;;  %6199 = vst [vmem:[%s12124_s9 + $0x610] sm:$0xff] (%p9418_p5), %v6198_v29  }
 0x45c   : > { %6203 = vst [vmem:[%s12124_s9 + $0x618] sm:$0xff] (%p9418_p5), %v6202_v23  }
 0x45d   : > { %v8977_v30 = vpop.f32.mrb[68].mxu1 }
 0x45e   : > { %5745 = vst.msk [vmem:[%s11984_s21 + $0x130] sm:$0xff] %vm5706_vm2, %v8977_v30  ;;  %v5531_v40 = vpop.f32.mrb[69].mxu1  ;;  %v5950_v30 = vld [vmem:[%s9990_s17 + $0x120] sm:$0xff] (%p9418_p5)  }
 0x45f   : > { %5743 = vst.msk [vmem:[%s11984_s21 + $0x120] sm:$0xff] %vm5706_vm2, %v5531_v40  ;;  %v8978_v27 = vpop.f32.mrb[70].mxu1  ;;  %v5954_v40 = vld [vmem:[%s9990_s17 + $0x128] sm:$0xff] (%p9418_p5)   ;;  %5951 = vst [vmem:[%s12124_s9 + $0x220] sm:$0xff] (%p9418_p5), %v5950_v30   ;;  %v6206_v30 = vld [vmem:[%s9990_s17 + $0x320] sm:$0xff] (%p9418_p5)  }
 0x460   : > { %5746 = vst.msk [vmem:[%s11984_s21 + $0x138] sm:$0xff] %vm5706_vm2, %v8978_v27  ;;  %v5534_v33 = vpop.f32.mrb[71].mxu1  ;;  %v5958_v27 = vld [vmem:[%s9990_s17 + $0x130] sm:$0xff] (%p9418_p5)   ;;  %5955 = vst [vmem:[%s12124_s9 + $0x228] sm:$0xff] (%p9418_p5), %v5954_v40   ;;  %v6210_v40 = vld [vmem:[%s9990_s17 + $0x328] sm:$0xff] (%p9418_p5)  }
 0x461   : > { %5744 = vst.msk [vmem:[%s11984_s21 + $0x128] sm:$0xff] %vm5706_vm2, %v5534_v33  ;;  %5959 = vst [vmem:[%s12124_s9 + $0x230] sm:$0xff] (%p9418_p5), %v5958_v27   ;;  %v5962_v33 = vld [vmem:[%s9990_s17 + $0x138] sm:$0xff] (%p9418_p5)   ;;  %v6214_v27 = vld [vmem:[%s9990_s17 + $0x330] sm:$0xff] (%p9418_p5)  }
 0x462   : > { %5963 = vst [vmem:[%s12124_s9 + $0x238] sm:$0xff] (%p9418_p5), %v5962_v33   ;;  %6207 = vst [vmem:[%s12124_s9 + $0x620] sm:$0xff] (%p9418_p5), %v6206_v30   ;;  %v6218_v33 = vld [vmem:[%s9990_s17 + $0x338] sm:$0xff] (%p9418_p5)  }
 0x463   : > { %6211 = vst [vmem:[%s12124_s9 + $0x628] sm:$0xff] (%p9418_p5), %v6210_v40   ;;  %6215 = vst [vmem:[%s12124_s9 + $0x630] sm:$0xff] (%p9418_p5), %v6214_v27  }
 0x464   : > { %6219 = vst [vmem:[%s12124_s9 + $0x638] sm:$0xff] (%p9418_p5), %v6218_v33  }
 0x465   : > { %v8981_v61 = vpop.f32.mrb[72].mxu1 }
 0x466   : > { %5749 = vst.msk [vmem:[%s11984_s21 + $0x150] sm:$0xff] %vm5706_vm2, %v8981_v61  ;;  %v5547_v18 = vpop.f32.mrb[73].mxu1  ;;  %v5966_v61 = vld [vmem:[%s9990_s17 + $0x140] sm:$0xff] (%p9418_p5)  }
 0x467   : > { %5747 = vst.msk [vmem:[%s11984_s21 + $0x140] sm:$0xff] %vm5706_vm2, %v5547_v18  ;;  %v8982_v6 = vpop.f32.mrb[74].mxu1  ;;  %v5970_v18 = vld [vmem:[%s9990_s17 + $0x148] sm:$0xff] (%p9418_p5)   ;;  %5967 = vst [vmem:[%s12124_s9 + $0x240] sm:$0xff] (%p9418_p5), %v5966_v61   ;;  %v6222_v61 = vld [vmem:[%s9990_s17 + $0x340] sm:$0xff] (%p9418_p5)  }
 0x468   : > { %5750 = vst.msk [vmem:[%s11984_s21 + $0x158] sm:$0xff] %vm5706_vm2, %v8982_v6  ;;  %v5550_v59 = vpop.f32.mrb[75].mxu1  ;;  %5971 = vst [vmem:[%s12124_s9 + $0x248] sm:$0xff] (%p9418_p5), %v5970_v18   ;;  %v5974_v6 = vld [vmem:[%s9990_s17 + $0x150] sm:$0xff] (%p9418_p5)   ;;  %v6226_v18 = vld [vmem:[%s9990_s17 + $0x348] sm:$0xff] (%p9418_p5)  }
 0x469   : > { %5748 = vst.msk [vmem:[%s11984_s21 + $0x148] sm:$0xff] %vm5706_vm2, %v5550_v59  ;;  %v5978_v59 = vld [vmem:[%s9990_s17 + $0x158] sm:$0xff] (%p9418_p5)   ;;  %5975 = vst [vmem:[%s12124_s9 + $0x250] sm:$0xff] (%p9418_p5), %v5974_v6   ;;  %v6230_v6 = vld [vmem:[%s9990_s17 + $0x350] sm:$0xff] (%p9418_p5)  }
 0x46a   : > { %5979 = vst [vmem:[%s12124_s9 + $0x258] sm:$0xff] (%p9418_p5), %v5978_v59   ;;  %6223 = vst [vmem:[%s12124_s9 + $0x640] sm:$0xff] (%p9418_p5), %v6222_v61   ;;  %v6234_v59 = vld [vmem:[%s9990_s17 + $0x358] sm:$0xff] (%p9418_p5)  }
 0x46b   : > { %6227 = vst [vmem:[%s12124_s9 + $0x648] sm:$0xff] (%p9418_p5), %v6226_v18   ;;  %6231 = vst [vmem:[%s12124_s9 + $0x650] sm:$0xff] (%p9418_p5), %v6230_v6  }
 0x46c   : > { %6235 = vst [vmem:[%s12124_s9 + $0x658] sm:$0xff] (%p9418_p5), %v6234_v59  }
 0x46d   : > { %v8985_v28 = vpop.f32.mrb[76].mxu1 }
 0x46e   : > { %5753 = vst.msk [vmem:[%s11984_s21 + $0x170] sm:$0xff] %vm5706_vm2, %v8985_v28  ;;  %v5563_v24 = vpop.f32.mrb[77].mxu1  ;;  %v5982_v28 = vld [vmem:[%s9990_s17 + $0x160] sm:$0xff] (%p9418_p5)  }
 0x46f   : > { %5751 = vst.msk [vmem:[%s11984_s21 + $0x160] sm:$0xff] %vm5706_vm2, %v5563_v24  ;;  %v8986_v25 = vpop.f32.mrb[78].mxu1  ;;  %5983 = vst [vmem:[%s12124_s9 + $0x260] sm:$0xff] (%p9418_p5), %v5982_v28   ;;  %v5986_v24 = vld [vmem:[%s9990_s17 + $0x168] sm:$0xff] (%p9418_p5)   ;;  %v6238_v28 = vld [vmem:[%s9990_s17 + $0x360] sm:$0xff] (%p9418_p5)  }
 0x470   : > { %5754 = vst.msk [vmem:[%s11984_s21 + $0x178] sm:$0xff] %vm5706_vm2, %v8986_v25  ;;  %v5566_v10 = vpop.f32.mrb[79].mxu1  ;;  %v5990_v25 = vld [vmem:[%s9990_s17 + $0x170] sm:$0xff] (%p9418_p5)   ;;  %5987 = vst [vmem:[%s12124_s9 + $0x268] sm:$0xff] (%p9418_p5), %v5986_v24   ;;  %v6242_v24 = vld [vmem:[%s9990_s17 + $0x368] sm:$0xff] (%p9418_p5)  }
 0x471   : > { %5752 = vst.msk [vmem:[%s11984_s21 + $0x168] sm:$0xff] %vm5706_vm2, %v5566_v10  ;;  %v5994_v10 = vld [vmem:[%s9990_s17 + $0x178] sm:$0xff] (%p9418_p5)   ;;  %5991 = vst [vmem:[%s12124_s9 + $0x270] sm:$0xff] (%p9418_p5), %v5990_v25   ;;  %v6246_v25 = vld [vmem:[%s9990_s17 + $0x370] sm:$0xff] (%p9418_p5)  }
 0x472   : > { %5995 = vst [vmem:[%s12124_s9 + $0x278] sm:$0xff] (%p9418_p5), %v5994_v10   ;;  %6239 = vst [vmem:[%s12124_s9 + $0x660] sm:$0xff] (%p9418_p5), %v6238_v28   ;;  %v6250_v10 = vld [vmem:[%s9990_s17 + $0x378] sm:$0xff] (%p9418_p5)  }
 0x473   : > { %6243 = vst [vmem:[%s12124_s9 + $0x668] sm:$0xff] (%p9418_p5), %v6242_v24   ;;  %6247 = vst [vmem:[%s12124_s9 + $0x670] sm:$0xff] (%p9418_p5), %v6246_v25  }
 0x474   : > { %6251 = vst [vmem:[%s12124_s9 + $0x678] sm:$0xff] (%p9418_p5), %v6250_v10  }
 0x475   : > { %v8989_v42 = vpop.f32.mrb[80].mxu1 }
 0x476   : > { %5757 = vst.msk [vmem:[%s11984_s21 + $0x190] sm:$0xff] %vm5706_vm2, %v8989_v42  ;;  %v5579_v41 = vpop.f32.mrb[81].mxu1  ;;  %v5998_v42 = vld [vmem:[%s9990_s17 + $0x180] sm:$0xff] (%p9418_p5)  }
 0x477   : > { %5755 = vst.msk [vmem:[%s11984_s21 + $0x180] sm:$0xff] %vm5706_vm2, %v5579_v41  ;;  %v8990_v9 = vpop.f32.mrb[82].mxu1  ;;  %v6002_v41 = vld [vmem:[%s9990_s17 + $0x188] sm:$0xff] (%p9418_p5)   ;;  %5999 = vst [vmem:[%s12124_s9 + $0x280] sm:$0xff] (%p9418_p5), %v5998_v42   ;;  %v6254_v42 = vld [vmem:[%s9990_s17 + $0x380] sm:$0xff] (%p9418_p5)  }
 0x478   : > { %5758 = vst.msk [vmem:[%s11984_s21 + $0x198] sm:$0xff] %vm5706_vm2, %v8990_v9  ;;  %v5582_v63 = vpop.f32.mrb[83].mxu1  ;;  %v6006_v9 = vld [vmem:[%s9990_s17 + $0x190] sm:$0xff] (%p9418_p5)   ;;  %6003 = vst [vmem:[%s12124_s9 + $0x288] sm:$0xff] (%p9418_p5), %v6002_v41   ;;  %v6258_v41 = vld [vmem:[%s9990_s17 + $0x388] sm:$0xff] (%p9418_p5)  }
 0x479   : > { %5756 = vst.msk [vmem:[%s11984_s21 + $0x188] sm:$0xff] %vm5706_vm2, %v5582_v63  ;;  %6007 = vst [vmem:[%s12124_s9 + $0x290] sm:$0xff] (%p9418_p5), %v6006_v9   ;;  %v6010_v63 = vld [vmem:[%s9990_s17 + $0x198] sm:$0xff] (%p9418_p5)   ;;  %v6262_v9 = vld [vmem:[%s9990_s17 + $0x390] sm:$0xff] (%p9418_p5)  }
 0x47a   : > { %6011 = vst [vmem:[%s12124_s9 + $0x298] sm:$0xff] (%p9418_p5), %v6010_v63   ;;  %6255 = vst [vmem:[%s12124_s9 + $0x680] sm:$0xff] (%p9418_p5), %v6254_v42   ;;  %v6266_v63 = vld [vmem:[%s9990_s17 + $0x398] sm:$0xff] (%p9418_p5)  }
 0x47b   : > { %6259 = vst [vmem:[%s12124_s9 + $0x688] sm:$0xff] (%p9418_p5), %v6258_v41   ;;  %6263 = vst [vmem:[%s12124_s9 + $0x690] sm:$0xff] (%p9418_p5), %v6262_v9  }
 0x47c   : > { %6267 = vst [vmem:[%s12124_s9 + $0x698] sm:$0xff] (%p9418_p5), %v6266_v63  }
 0x47d   : > { %v8993_v52 = vpop.f32.mrb[84].mxu1 }
 0x47e   : > { %5761 = vst.msk [vmem:[%s11984_s21 + $0x1b0] sm:$0xff] %vm5706_vm2, %v8993_v52  ;;  %v5595_v11 = vpop.f32.mrb[85].mxu1  ;;  %v6014_v52 = vld [vmem:[%s9990_s17 + $0x1a0] sm:$0xff] (%p9418_p5)  }
 0x47f   : > { %5759 = vst.msk [vmem:[%s11984_s21 + $0x1a0] sm:$0xff] %vm5706_vm2, %v5595_v11  ;;  %v8994_v60 = vpop.f32.mrb[86].mxu1  ;;  %v6018_v11 = vld [vmem:[%s9990_s17 + $0x1a8] sm:$0xff] (%p9418_p5)   ;;  %6015 = vst [vmem:[%s12124_s9 + $0x2a0] sm:$0xff] (%p9418_p5), %v6014_v52   ;;  %v6270_v52 = vld [vmem:[%s9990_s17 + $0x3a0] sm:$0xff] (%p9418_p5)  }
 0x480   : > { %5762 = vst.msk [vmem:[%s11984_s21 + $0x1b8] sm:$0xff] %vm5706_vm2, %v8994_v60  ;;  %v5598_v17 = vpop.f32.mrb[87].mxu1  ;;  %6019 = vst [vmem:[%s12124_s9 + $0x2a8] sm:$0xff] (%p9418_p5), %v6018_v11   ;;  %v6022_v60 = vld [vmem:[%s9990_s17 + $0x1b0] sm:$0xff] (%p9418_p5)   ;;  %v6274_v11 = vld [vmem:[%s9990_s17 + $0x3a8] sm:$0xff] (%p9418_p5)  }
 0x481   : > { %5760 = vst.msk [vmem:[%s11984_s21 + $0x1a8] sm:$0xff] %vm5706_vm2, %v5598_v17  ;;  %v6026_v17 = vld [vmem:[%s9990_s17 + $0x1b8] sm:$0xff] (%p9418_p5)   ;;  %6023 = vst [vmem:[%s12124_s9 + $0x2b0] sm:$0xff] (%p9418_p5), %v6022_v60   ;;  %v6278_v60 = vld [vmem:[%s9990_s17 + $0x3b0] sm:$0xff] (%p9418_p5)  }
 0x482   : > { %6027 = vst [vmem:[%s12124_s9 + $0x2b8] sm:$0xff] (%p9418_p5), %v6026_v17   ;;  %6271 = vst [vmem:[%s12124_s9 + $0x6a0] sm:$0xff] (%p9418_p5), %v6270_v52   ;;  %v6282_v17 = vld [vmem:[%s9990_s17 + $0x3b8] sm:$0xff] (%p9418_p5)  }
 0x483   : > { %6275 = vst [vmem:[%s12124_s9 + $0x6a8] sm:$0xff] (%p9418_p5), %v6274_v11   ;;  %6279 = vst [vmem:[%s12124_s9 + $0x6b0] sm:$0xff] (%p9418_p5), %v6278_v60  }
 0x484   : > { %6283 = vst [vmem:[%s12124_s9 + $0x6b8] sm:$0xff] (%p9418_p5), %v6282_v17  }
 0x485   : > { %v8997_v13 = vpop.f32.mrb[88].mxu1 }
 0x486   : > { %5765 = vst.msk [vmem:[%s11984_s21 + $0x1d0] sm:$0xff] %vm5706_vm2, %v8997_v13  ;;  %v5611_v57 = vpop.f32.mrb[89].mxu1  ;;  %v6030_v13 = vld [vmem:[%s9990_s17 + $0x1c0] sm:$0xff] (%p9418_p5)  }
 0x487   : > { %5763 = vst.msk [vmem:[%s11984_s21 + $0x1c0] sm:$0xff] %vm5706_vm2, %v5611_v57  ;;  %v8998_v43 = vpop.f32.mrb[90].mxu1  ;;  %6031 = vst [vmem:[%s12124_s9 + $0x2c0] sm:$0xff] (%p9418_p5), %v6030_v13   ;;  %v6034_v57 = vld [vmem:[%s9990_s17 + $0x1c8] sm:$0xff] (%p9418_p5)   ;;  %v6286_v13 = vld [vmem:[%s9990_s17 + $0x3c0] sm:$0xff] (%p9418_p5)  }
 0x488   : > { %5766 = vst.msk [vmem:[%s11984_s21 + $0x1d8] sm:$0xff] %vm5706_vm2, %v8998_v43  ;;  %v5614_v22 = vpop.f32.mrb[91].mxu1  ;;  %v6038_v43 = vld [vmem:[%s9990_s17 + $0x1d0] sm:$0xff] (%p9418_p5)   ;;  %6035 = vst [vmem:[%s12124_s9 + $0x2c8] sm:$0xff] (%p9418_p5), %v6034_v57   ;;  %v6290_v57 = vld [vmem:[%s9990_s17 + $0x3c8] sm:$0xff] (%p9418_p5)  }
 0x489   : > { %5764 = vst.msk [vmem:[%s11984_s21 + $0x1c8] sm:$0xff] %vm5706_vm2, %v5614_v22  ;;  %v6042_v22 = vld [vmem:[%s9990_s17 + $0x1d8] sm:$0xff] (%p9418_p5)   ;;  %6039 = vst [vmem:[%s12124_s9 + $0x2d0] sm:$0xff] (%p9418_p5), %v6038_v43   ;;  %v6294_v43 = vld [vmem:[%s9990_s17 + $0x3d0] sm:$0xff] (%p9418_p5)  }
 0x48a   : > { %6043 = vst [vmem:[%s12124_s9 + $0x2d8] sm:$0xff] (%p9418_p5), %v6042_v22   ;;  %6287 = vst [vmem:[%s12124_s9 + $0x6c0] sm:$0xff] (%p9418_p5), %v6286_v13   ;;  %v6298_v22 = vld [vmem:[%s9990_s17 + $0x3d8] sm:$0xff] (%p9418_p5)  }
 0x48b   : > { %5787 = sbr.rel (!%p9418_p5) target bundleno = 1173 (0x495), region = 44  ;;  %6291 = vst [vmem:[%s12124_s9 + $0x6c8] sm:$0xff] (%p9418_p5), %v6290_v57   ;;  %6295 = vst [vmem:[%s12124_s9 + $0x6d0] sm:$0xff] (%p9418_p5), %v6294_v43  }
 0x48c   : > { %6299 = vst [vmem:[%s12124_s9 + $0x6d8] sm:$0xff] (%p9418_p5), %v6298_v22  }
 0x48d   : > { %v9001_v51 = vpop.f32.mrb[92].mxu1 }
 0x48e   : > { %5769 = vst.msk [vmem:[%s11984_s21 + $0x1f0] sm:$0xff] %vm5706_vm2, %v9001_v51  ;;  %v5627_v0 = vpop.f32.mrb[93].mxu1  ;;  %v6046_v51 = vld [vmem:[%s9990_s17 + $0x1e0] sm:$0xff] (%p9418_p5)  }
 0x48f   : > { %5767 = vst.msk [vmem:[%s11984_s21 + $0x1e0] sm:$0xff] %vm5706_vm2, %v5627_v0  ;;  %v9002_v5 = vpop.f32.mrb[94].mxu1  ;;  %v6050_v0 = vld [vmem:[%s9990_s17 + $0x1e8] sm:$0xff] (%p9418_p5)   ;;  %6047 = vst [vmem:[%s12124_s9 + $0x2e0] sm:$0xff] (%p9418_p5), %v6046_v51   ;;  %v6302_v51 = vld [vmem:[%s9990_s17 + $0x3e0] sm:$0xff] (%p9418_p5)  }
 0x490   : > { %5770 = vst.msk [vmem:[%s11984_s21 + $0x1f8] sm:$0xff] %vm5706_vm2, %v9002_v5  ;;  %v5630_v62 = vpop.f32.mrb[95].mxu1  ;;  %v6054_v5 = vld [vmem:[%s9990_s17 + $0x1f0] sm:$0xff] (%p9418_p5)   ;;  %6051 = vst [vmem:[%s12124_s9 + $0x2e8] sm:$0xff] (%p9418_p5), %v6050_v0   ;;  %v6306_v0 = vld [vmem:[%s9990_s17 + $0x3e8] sm:$0xff] (%p9418_p5)  }
 0x491   : > { %5768 = vst.msk [vmem:[%s11984_s21 + $0x1e8] sm:$0xff] %vm5706_vm2, %v5630_v62  ;;  %6055 = vst [vmem:[%s12124_s9 + $0x2f0] sm:$0xff] (%p9418_p5), %v6054_v5   ;;  %v6058_v62 = vld [vmem:[%s9990_s17 + $0x1f8] sm:$0xff] (%p9418_p5)   ;;  %v6310_v5 = vld [vmem:[%s9990_s17 + $0x3f0] sm:$0xff] (%p9418_p5)  }
 0x492   : > { %6059 = vst [vmem:[%s12124_s9 + $0x2f8] sm:$0xff] %v6058_v62   ;;  %6303 = vst [vmem:[%s12124_s9 + $0x6e0] sm:$0xff] %v6302_v51   ;;  %v6314_v62 = vld [vmem:[%s9990_s17 + $0x3f8] sm:$0xff]  }
 0x493   : > { %6307 = vst [vmem:[%s12124_s9 + $0x6e8] sm:$0xff] %v6306_v0   ;;  %6311 = vst [vmem:[%s12124_s9 + $0x6f0] sm:$0xff] %v6310_v5  }
 0x494   : > { %6315 = vst [vmem:[%s12124_s9 + $0x6f8] sm:$0xff] %v6314_v62  }
 0x495 PF: > { %s8054_s13 = sshll.u32 %s9401_s28, 13  ;;  %s6859_s14 = sshll.u32 %s9763_s29, 4  ;;  %s12386_s14 = int_to_ptr.vmem [resolvable:$true] %s6859_s14 }
 0x496   : > { %s12384_s20 = scalar_lea.hbm %s12434_s6, %s8054_s13  ;;  %s9273_s21 = scalar_lea.vmem %s12386_s14, 8192 }
 0x497   : > { %p9274_p11 = scmp.ne.s32.totalorder %s12386_s14, %s9273_s21  ;;  %s9337_s17 = smov [#allocation3]  }
 0x498   : > { %s9277_s22 = sshll.u32 %s9337_s17, 4  ;;  %s9278_s22 = int_to_ptr.vmem [resolvable:$false] %s9277_s22 }
 0x499   : > { %p9275_p12 = pnand %p9274_p11, %p9418_p5  ;;  %s9279_s28 = scalar_lea.vmem %s9278_s22, 16384 }
 0x49a   : > { %p9280_p0 = scmp.lt.s32.totalorder %s12386_s14, %s9278_s22  ;;  %p9281_p1 = scmp.lt.s32.totalorder %s9279_s28, %s9273_s21 }
 0x49b   : > { %p9276_p13 = pneg %p9275_p12 }
 0x49c   : > { %p9282_p2 = por %p9281_p1, %p9280_p0 }
 0x49e   : > { %p9283_p3 = pnand %p9282_p2, %p9276_p13 }
 0x4a0   : > { %9286 = shalt.err (!%p9283_p3)
}
 0x4a1   : > { %s9287_s29 = scalar_lea.hbm %s12384_s20, 8192  ;;  %s9291_s9 = scalar_lea.hbm %s12434_s6, 16384 }
 0x4a2   : > { %p9288_p4 = scmp.ne.s32.totalorder %s12384_s20, %s9287_s29  ;;  %p9292_p9 = scmp.lt.u32.totalorder %s12384_s20, %s12434_s6 }
 0x4a3   : > { %p9293_p10 = scmp.lt.u32.totalorder %s9291_s9, %s9287_s29  ;;  %p9295_p12 = scmp.lt.u32.totalorder %s9287_s29, %s12384_s20 }
 0x4a4   : > { %p9289_p7 = pnand %p9288_p4, %p9418_p5 }
 0x4a5   : > { %p9294_p11 = por %p9293_p10, %p9292_p9 }
 0x4a6   : > { %p9290_p8 = pneg %p9289_p7 }
 0x4a7   : > { %p9296_p13 = por %p9295_p12, %p9294_p11 }
 0x4a9   : > { %p9297_p0 = pnand %p9296_p13, %p9290_p8 }
 0x4ab   : > { %9300 = shalt.err (!%p9297_p0)
}
 0x4ac   : > { %s9338_s18 = smov 128   ;;  %s9339_s21 = smov 8  }
 0x4ad   : > { %9203 = dma.vmem_to_hbm [thread:$0]  (%p9418_p5), %s12386_s14, 8192, %s12384_s20, %s5776_s15, %s9338_s18, %s9338_s18, %s9339_s21  }
 0x4ae PF: > { %p9209_p1 = scmp.ge.s32.totalorder %s9335_s27, 2  ;;  %s6885_s17 = sand.u32 1, %s9323_s24  }
 0x4af   : > { %s6886_s22 = scalar_lea.sflag [#allocation4], %s6885_s17 }
 0x4b0   : > { %p9206_p2 = pnand %p9209_p1, %p9422_p6 }
 0x4b2   : > { %9318 = dma.done.wait (!%p9206_p2), %s6886_s22, 8192  }
 0x4b3   : > { %9320 = vsyncadd (!%p9206_p2), %s6886_s22, 4294959104  ;;  %p18_p3 = scmp.ge.s32.totalorder %s9405_s30, 4   ;;  %s12692_s24 = smov %s9327_s25 }
 0x4b4   : > { %s12693_s25 = smov %s9331_s26  ;;  %s12694_s26 = smov %s9416_s10 }
 0x4b5   : > { %s12695_s27 = smov %s9405_s30  ;;  %20 = sbr.rel (!%p18_p3) target bundleno = 3 (0x3), region = 149 }
 0x4bc   :  { %6899 = vsyncpa [#allocation4], 1 }
 0x4bd   :  { %6901 = vsyncpa [#allocation4 + $0x1], 1 }

</bundles_post_ra>
